<compile_context>
chip_gen: v7x
topology: tpu7x:2x2x1
jax: 0.10.0
libtpu: 0.0.40
codegen_flags: <defaults>
</compile_context>

<pallas_src>
import functools
import math

import numpy as np
import jax
import jax.numpy as jnp
from jax.experimental import pallas as pl
from jax.experimental.pallas import tpu as pltpu

EPS = 1e-12
_GELU_C = math.sqrt(2.0 / math.pi)


def _round_up(x, m):
    return ((x + m - 1) // m) * m


# ----------------------------- in-kernel helpers -----------------------------
def _layernorm(x, w, b, d_real):
    # Single-pass LayerNorm over the (possibly zero-padded) feature axis.
    # Padded feature columns are exactly zero, so dividing the raw sums by the
    # real feature count reproduces the unpadded statistics.
    inv_d = 1.0 / d_real
    u = jnp.sum(x, axis=-1, keepdims=True) * inv_d
    s = jnp.sum(x * x, axis=-1, keepdims=True) * inv_d - u * u
    s = jnp.maximum(s, 0.0)
    return w * ((x - u) * jax.lax.rsqrt(s + EPS)) + b


def _gelu_tanh(x):
    # TODO(synk): tanh-approx GELU (EUP); PyTorch reference uses the exact erf.
    return 0.5 * x * (1.0 + jnp.tanh(_GELU_C * (x + 0.044715 * x * x * x)))


# ----------------------------- kernels ---------------------------------------
def encoder_kernel(idx_ref, loc_ref, ln0w_ref, ln0b_ref,
                   fc_ref, fs_ref, gc_ref, gs_ref,
                   fr_ref, fi_ref, ln1w_ref, ln1b_ref,
                   w1_ref, b1_ref, w2_ref, b2_ref, ln2w_ref, ln2b_ref,
                   o_ref, x_scr, *, bb, np_, dp, d_real):
    """One grid step = one (BB sequences) x (one encoder layer)."""
    layer = pl.program_id(1)

    @pl.when(layer == 0)
    def _init():
        # add_position(): LayerNorm(emb_loc + emb_pos); dropout = identity.
        x_scr[...] = _layernorm(loc_ref[...], ln0w_ref[...], ln0b_ref[...],
                                d_real)

    # ---- FilterLayer: batched real DFT -> complex filter -> inverse DFT ----
    x2 = x_scr[...]                               # (BB*Np, Dp) f32
    x3 = x2.reshape(bb, np_, dp)                  # free view (Np % 8 == 0)
    xb = x3.astype(jnp.bfloat16)
    yr = jnp.einsum('bkn,bnd->bkd', fc_ref[...], xb,
                    preferred_element_type=jnp.float32)       # (BB, KP, Dp)
    yi = jnp.einsum('bkn,bnd->bkd', fs_ref[...], xb,
                    preferred_element_type=jnp.float32)
    fr = fr_ref[...]                              # (1, KP, Dp) broadcast on BB
    fi = fi_ref[...]
    zr = (yr * fr - yi * fi).astype(jnp.bfloat16)
    zi = (yr * fi + yi * fr).astype(jnp.bfloat16)
    xf = jnp.einsum('bnk,bkd->bnd', gc_ref[...], zr,
                    preferred_element_type=jnp.float32)
    xf = xf + jnp.einsum('bnk,bkd->bnd', gs_ref[...], zi,
                         preferred_element_type=jnp.float32)  # (BB, Np, Dp)
    # TODO(synk): Dropout(p=0.5) layers are identity here (eval mode).
    h = _layernorm(xf.reshape(bb * np_, dp) + x2,
                   ln1w_ref[0], ln1b_ref[0], d_real)

    # ---- FFN over the whole (BB*Np, Dp) slab + residual + LayerNorm2 ----
    t = jnp.dot(h.astype(jnp.bfloat16), w1_ref[0],
                preferred_element_type=jnp.float32) + b1_ref[0]
    t = _gelu_tanh(t)
    t = jnp.dot(t.astype(jnp.bfloat16), w2_ref[0],
                preferred_element_type=jnp.float32) + b2_ref[0]
    xo = _layernorm(t + h, ln2w_ref[0], ln2b_ref[0], d_real)
    x_scr[...] = xo

    # ---- emit only the last valid position of each sequence (eval path) ----
    @pl.when(layer == pl.num_programs(1) - 1)
    def _emit():
        rows = jax.lax.broadcasted_iota(jnp.int32, (bb, np_, dp), 1)
        sel = (rows == idx_ref[...]).astype(jnp.float32)      # (BB, Np, Dp)
        o_ref[...] = jnp.sum(xo.reshape(bb, np_, dp) * sel, axis=1)


def out_proj_kernel(x_ref, w_ref, b_ref, o_ref):
    o_ref[...] = (jnp.dot(x_ref[...], w_ref[...],
                          preferred_element_type=jnp.float32) + b_ref[...])


# ----------------------------- wrappers --------------------------------------
def encoder(last_idx3, loc2, kw):
    Np, Dp, KP, Hp, BB, L = (kw["Np"], kw["Dp"], kw["KP"], kw["Hp"],
                             kw["BB"], kw["L"])
    B_pad = loc2.shape[0] // Np
    nb = B_pad // BB

    def cspec(shape):                    # constant / shared blocks
        return pl.BlockSpec(shape, lambda i, l: (0,) * len(shape))

    def lspec(shape):                    # depth-stacked per-layer weights
        return pl.BlockSpec((1,) + shape, lambda i, l: (l,) + (0,) * len(shape))

    kernel = functools.partial(encoder_kernel, bb=BB, np_=Np, dp=Dp,
                               d_real=float(kw["D"]))
    return pl.pallas_call(
        kernel,
        out_shape=jax.ShapeDtypeStruct((B_pad, Dp), jnp.float32),
        grid_spec=pltpu.PrefetchScalarGridSpec(
            num_scalar_prefetch=0,
            grid=(nb, L),
            in_specs=[
                pl.BlockSpec((BB, 1, Dp), lambda i, l: (i, 0, 0)),     # last idx
                pl.BlockSpec((BB * Np, Dp), lambda i, l: (i, 0)),      # loc+pos
                cspec((1, Dp)), cspec((1, Dp)),                        # ln0 w,b
                cspec((BB, KP, Np)), cspec((BB, KP, Np)),              # Fc, Fs
                cspec((BB, Np, KP)), cspec((BB, Np, KP)),              # Gc, Gs
                lspec((KP, Dp)), lspec((KP, Dp)),                      # fr, fi
                lspec((1, Dp)), lspec((1, Dp)),                        # ln1 w,b
                lspec((Dp, Hp)), lspec((1, Hp)),                       # w1, b1
                lspec((Hp, Dp)), lspec((1, Dp)),                       # w2, b2
                lspec((1, Dp)), lspec((1, Dp)),                        # ln2 w,b
            ],
            out_specs=pl.BlockSpec((BB, Dp), lambda i, l: (i, 0)),
            scratch_shapes=[pltpu.VMEM((BB * Np, Dp), jnp.float32)]),
        compiler_params=pltpu.CompilerParams(
            dimension_semantics=("parallel", "arbitrary"),
            vmem_limit_bytes=48 * 1024 * 1024),
    )(last_idx3, loc2, kw["ln0_w"], kw["ln0_b"],
      kw["Fc"], kw["Fs"], kw["Gc"], kw["Gs"],
      kw["fr"], kw["fi"], kw["ln1_w"], kw["ln1_b"],
      kw["w1"], kw["b1"], kw["w2"], kw["b2"], kw["ln2_w"], kw["ln2_b"])


def out_proj(x_bf16, w_bf16, b, tn):
    Bp, Dp = x_bf16.shape
    Vp = w_bf16.shape[1]
    return pl.pallas_call(
        out_proj_kernel,
        out_shape=jax.ShapeDtypeStruct((Bp, Vp), jnp.float32),
        grid=(Vp // tn,),
        in_specs=[
            pl.BlockSpec((Bp, Dp), lambda j: (0, 0)),
            pl.BlockSpec((Dp, tn), lambda j: (0, j)),
            pl.BlockSpec((1, tn), lambda j: (0, j)),
        ],
        out_specs=pl.BlockSpec((Bp, tn), lambda j: (0, j)),
        compiler_params=pltpu.CompilerParams(
            dimension_semantics=("parallel",),
            vmem_limit_bytes=48 * 1024 * 1024),
    )(x_bf16, w_bf16, b)


def fmlp4rec_forward(params, kw, src_locs, data_size):
    B, N = src_locs.shape
    Np, Dp, BB = kw["Np"], kw["Dp"], kw["BB"]
    B_pad = _round_up(max(B, BB), BB)

    # Embedding gather + positional add (plain-JAX glue), padded to aligned
    # (B_pad, Np, Dp) and flattened to a batch-major 2D slab.
    x = kw["emb_loc_p"][src_locs] + kw["emb_pos_p"][None, :N]
    x = jnp.pad(x, ((0, B_pad - B), (0, Np - N), (0, 0)))
    loc2 = x.reshape(B_pad * Np, Dp)

    last_idx = jnp.pad((data_size - 1).astype(jnp.int32), (0, B_pad - B))
    last_idx3 = jnp.broadcast_to(last_idx.reshape(B_pad, 1, 1), (B_pad, 1, Dp))

    sel = encoder(last_idx3, loc2, kw)                          # (B_pad, Dp)
    logits = out_proj(sel.astype(jnp.bfloat16), kw["w_out"], kw["b_out"],
                      kw["TN"])                                 # (B_pad, Vp)
    return logits[:B, :kw["n_loc"]]


# ----------------------------- setup ------------------------------------------
def make_dft(N, Np, KP):
    """Real-DFT matrices equal to torch.fft.rfft/irfft (norm='ortho') for the
    N-point transform, zero-padded to (KP, Np)/(Np, KP) aligned shapes."""
    K = N // 2 + 1
    k = np.arange(K, dtype=np.float64)
    n = np.arange(N, dtype=np.float64)
    ang = 2.0 * np.pi * np.outer(k, n) / N                      # (K, N)
    fc = np.cos(ang) / np.sqrt(N)
    fs = -np.sin(ang) / np.sqrt(N)
    w = np.full(K, 2.0)
    w[0] = 1.0
    if N % 2 == 0:
        w[-1] = 1.0
    angi = 2.0 * np.pi * np.outer(n, k) / N                     # (N, K)
    gc = (w[None, :] * np.cos(angi)) / np.sqrt(N)
    gs = -(w[None, :] * np.sin(angi)) / np.sqrt(N)
    Fc = np.zeros((KP, Np)); Fc[:K, :N] = fc
    Fs = np.zeros((KP, Np)); Fs[:K, :N] = fs
    Gc = np.zeros((Np, KP)); Gc[:N, :K] = gc
    Gs = np.zeros((Np, KP)); Gs[:N, :K] = gs
    return Fc, Fs, Gc, Gs


def prepare_kernel_inputs(params, N, *, block_b=8, vocab_tile=2048):
    """Zero-pad every axis to aligned sizes, stack per-layer weights with a
    leading depth axis, pre-tile the DFT matrices over the batch block, and
    cast MXU operands to bf16.  block_b (sequences per grid step, multiple of
    8) and vmem limits default to v7x-safe values; raise on v5e/v6e."""
    D = params["emb_loc"].shape[1]
    n_loc = params["emb_loc"].shape[0]
    L = len(params["layers"])
    H = 4 * D
    Dp = _round_up(D, 128)
    Hp = _round_up(H, 128)
    Np = _round_up(N, 8)
    K = N // 2 + 1
    KP = _round_up(K, 8)
    BB = _round_up(max(block_b, 8), 8)

    Fc, Fs, Gc, Gs = make_dft(N, Np, KP)

    def tile_b(a):
        return jnp.asarray(np.broadcast_to(a, (BB,) + a.shape), jnp.bfloat16)

    def pad2(a, r, c):
        return jnp.pad(a, ((0, r - a.shape[0]), (0, c - a.shape[1])))

    def stack(name, r, c, dtype=jnp.float32):
        return jnp.stack([pad2(lp[name], r, c)
                          for lp in params["layers"]]).astype(dtype)

    Vb = _round_up(n_loc, 128)
    TN = min(vocab_tile, Vb)
    Vp = _round_up(Vb, TN)

    return dict(
        D=D, Dp=Dp, Np=Np, KP=KP, Hp=Hp, BB=BB, L=L, n_loc=n_loc, TN=TN,
        emb_loc_p=pad2(params["emb_loc"], n_loc, Dp),
        emb_pos_p=pad2(params["emb_pos"], params["emb_pos"].shape[0], Dp),
        ln0_w=pad2(params["ln0_w"], 1, Dp), ln0_b=pad2(params["ln0_b"], 1, Dp),
        Fc=tile_b(Fc), Fs=tile_b(Fs), Gc=tile_b(Gc), Gs=tile_b(Gs),
        fr=stack("fr", KP, Dp), fi=stack("fi", KP, Dp),
        ln1_w=stack("ln1_w", 1, Dp), ln1_b=stack("ln1_b", 1, Dp),
        w1=stack("w1", Dp, Hp, jnp.bfloat16), b1=stack("b1", 1, Hp),
        w2=stack("w2", Hp, Dp, jnp.bfloat16), b2=stack("b2", 1, Dp),
        ln2_w=stack("ln2_w", 1, Dp), ln2_b=stack("ln2_b", 1, Dp),
        w_out=pad2(params["w_out"], Dp, Vp).astype(jnp.bfloat16),
        b_out=pad2(params["b_out"], 1, Vp),
    )


def make_params(key, n_loc, d_model, max_len, depth):
    std = 0.02
    keys = jax.random.split(key, 3 + depth * 3)
    emb_loc = jax.random.normal(keys[0], (n_loc, d_model), jnp.float32) * std
    emb_loc = emb_loc.at[0].set(0.0)                 # padding_idx=0
    emb_pos = jax.random.normal(keys[1], (max_len, d_model), jnp.float32) * std
    layers = []
    for l in range(depth):
        k0, k1, k2 = keys[3 + 3 * l: 3 + 3 * (l + 1)]
        filt = jax.random.normal(
            k0, (max_len // 2 + 1, d_model, 2), jnp.float32) * std
        layers.append(dict(
            fr=filt[..., 0], fi=filt[..., 1],
            ln1_w=jnp.ones((1, d_model), jnp.float32),
            ln1_b=jnp.zeros((1, d_model), jnp.float32),
            w1=jax.random.normal(k1, (d_model, 4 * d_model), jnp.float32) * std,
            b1=jnp.zeros((1, 4 * d_model), jnp.float32),
            w2=jax.random.normal(k2, (4 * d_model, d_model), jnp.float32) * std,
            b2=jnp.zeros((1, d_model), jnp.float32),
            ln2_w=jnp.ones((1, d_model), jnp.float32),
            ln2_b=jnp.zeros((1, d_model), jnp.float32),
        ))
    w_out = jax.random.normal(keys[2], (d_model, n_loc), jnp.float32) * std
    b_out = jnp.zeros((1, n_loc), jnp.float32)
    return dict(emb_loc=emb_loc, emb_pos=emb_pos,
                ln0_w=jnp.ones((1, d_model), jnp.float32),
                ln0_b=jnp.zeros((1, d_model), jnp.float32),
                layers=layers, w_out=w_out, b_out=b_out)


# ----------------------------- reference (pure JAX, f32) ----------------------
def _layernorm_ref(x, w, b):
    u = jnp.mean(x, axis=-1, keepdims=True)
    s = jnp.mean((x - u) ** 2, axis=-1, keepdims=True)
    return w * ((x - u) / jnp.sqrt(s + EPS)) + b


def reference_forward(params, src_locs, data_size):
    """Faithful f32 port of the PyTorch module (eval mode) using jnp.fft."""
    B, N = src_locs.shape
    hp = jax.lax.Precision.HIGHEST
    x = params["emb_loc"][src_locs] + params["emb_pos"][:N]
    x = _layernorm_ref(x, params["ln0_w"], params["ln0_b"])
    for lp in params["layers"]:
        y = jnp.fft.rfft(x, axis=1, norm="ortho")
        y = y * (lp["fr"] + 1j * lp["fi"])[None]
        y = jnp.fft.irfft(y, n=N, axis=1, norm="ortho")
        h = _layernorm_ref(y + x, lp["ln1_w"], lp["ln1_b"])
        t = jnp.matmul(h, lp["w1"], precision=hp) + lp["b1"]
        t = t * 0.5 * (1.0 + jax.scipy.special.erf(t / math.sqrt(2.0)))
        t = jnp.matmul(t, lp["w2"], precision=hp) + lp["b2"]
        x = _layernorm_ref(t + h, lp["ln2_w"], lp["ln2_b"])
    sel = x[jnp.arange(B), data_size - 1]
    return jnp.matmul(sel, params["w_out"], precision=hp) + params["b_out"]


if __name__ == "__main__":
    # Small shapes, chosen to exercise every padding/tiling path:
    #   N=12 -> Np=16, K=7 -> KP=8, D=48 -> Dp=128, H=192 -> Hp=256,
    #   B=12 with BB=8 -> B_pad=16, nb=2 batch blocks, n_loc=200 -> Vp=256.
    B, N, D, n_loc, depth = 12, 12, 48, 200, 2      # seq len == max_len

    key = jax.random.PRNGKey(0)
    pkey, lkey, dkey = jax.random.split(key, 3)
    params = make_params(pkey, n_loc, D, N, depth)

    src_locs = jax.random.randint(lkey, (B, N), 1, n_loc, dtype=jnp.int32)
    data_size = jax.random.randint(dkey, (B,), 1, N + 1, dtype=jnp.int32)
    mask = jnp.arange(N)[None, :] < data_size[:, None]
    src_locs = jnp.where(mask, src_locs, 0)          # pad with padding_idx=0

    kw = prepare_kernel_inputs(params, N, block_b=8)
    out = fmlp4rec_forward(params, kw, src_locs, data_size)
    out = jax.block_until_ready(out)

    ref = reference_forward(params, src_locs, data_size)
    assert out.shape == (B, n_loc)
    # bf16 MXU operands + tanh-approx GELU vs exact-f32 reference -> loose tol.
    err = float(jnp.max(jnp.abs(out - ref)))
    if not bool(jnp.allclose(out, ref, atol=2e-2, rtol=2e-2)):
        raise AssertionError(f"mismatch vs reference, max_err={err}")
    print("KERNEL_OK")
</pallas_src>

<mosaic_0001>
module attributes {stable_mosaic.version = 11 : i64} {
  func.func @encoder_kernel(%arg0: i32, %arg1: i32, %arg2: memref<8x1x128xi32, #tpu.memory_space<vmem>>, %arg3: memref<128x128xf32, #tpu.memory_space<vmem>>, %arg4: memref<1x128xf32, #tpu.memory_space<vmem>>, %arg5: memref<1x128xf32, #tpu.memory_space<vmem>>, %arg6: memref<8x8x16xbf16, #tpu.memory_space<vmem>>, %arg7: memref<8x8x16xbf16, #tpu.memory_space<vmem>>, %arg8: memref<8x16x8xbf16, #tpu.memory_space<vmem>>, %arg9: memref<8x16x8xbf16, #tpu.memory_space<vmem>>, %arg10: memref<1x8x128xf32, #tpu.memory_space<vmem>>, %arg11: memref<1x8x128xf32, #tpu.memory_space<vmem>>, %arg12: memref<1x1x128xf32, #tpu.memory_space<vmem>>, %arg13: memref<1x1x128xf32, #tpu.memory_space<vmem>>, %arg14: memref<1x128x256xbf16, #tpu.memory_space<vmem>>, %arg15: memref<1x1x256xf32, #tpu.memory_space<vmem>>, %arg16: memref<1x256x128xbf16, #tpu.memory_space<vmem>>, %arg17: memref<1x1x128xf32, #tpu.memory_space<vmem>>, %arg18: memref<1x1x128xf32, #tpu.memory_space<vmem>>, %arg19: memref<1x1x128xf32, #tpu.memory_space<vmem>>, %arg20: memref<8x128xf32, #tpu.memory_space<vmem>>, %arg21: memref<128x128xf32, #tpu.memory_space<vmem>>) attributes {dimension_semantics = [#tpu.dimension_semantics<parallel>, #tpu.dimension_semantics<arbitrary>], iteration_bounds = array<i64: 2, 2>, scalar_prefetch = 0 : i64, scratch_operands = 1 : i64, tpu.core_type = #tpu.core_type<tc>, window_params = [{transform_indices = @transform_0, window_bounds = array<i64: 8, 1, 128>}, {transform_indices = @transform_1, window_bounds = array<i64: 128, 128>}, {pipeline_mode = #tpu.pipeline_mode<synchronous>, transform_indices = @transform_2, window_bounds = array<i64: 1, 128>}, {pipeline_mode = #tpu.pipeline_mode<synchronous>, transform_indices = @transform_3, window_bounds = array<i64: 1, 128>}, {pipeline_mode = #tpu.pipeline_mode<synchronous>, transform_indices = @transform_4, window_bounds = array<i64: 8, 8, 16>}, {pipeline_mode = #tpu.pipeline_mode<synchronous>, transform_indices = @transform_5, window_bounds = array<i64: 8, 8, 16>}, {pipeline_mode = #tpu.pipeline_mode<synchronous>, transform_indices = @transform_6, window_bounds = array<i64: 8, 16, 8>}, {pipeline_mode = #tpu.pipeline_mode<synchronous>, transform_indices = @transform_7, window_bounds = array<i64: 8, 16, 8>}, {transform_indices = @transform_8, window_bounds = array<i64: 1, 8, 128>}, {transform_indices = @transform_9, window_bounds = array<i64: 1, 8, 128>}, {transform_indices = @transform_10, window_bounds = array<i64: 1, 1, 128>}, {transform_indices = @transform_11, window_bounds = array<i64: 1, 1, 128>}, {transform_indices = @transform_12, window_bounds = array<i64: 1, 128, 256>}, {transform_indices = @transform_13, window_bounds = array<i64: 1, 1, 256>}, {transform_indices = @transform_14, window_bounds = array<i64: 1, 256, 128>}, {transform_indices = @transform_15, window_bounds = array<i64: 1, 1, 128>}, {transform_indices = @transform_16, window_bounds = array<i64: 1, 1, 128>}, {transform_indices = @transform_17, window_bounds = array<i64: 1, 1, 128>}, {transform_indices = @transform_18, window_bounds = array<i64: 8, 128>}]} {
    %c0_i32 = arith.constant 0 : i32
    %0 = arith.cmpi eq, %arg1, %c0_i32 : i32
    %1 = arith.extui %0 : i1 to i32
    %c0_i32_0 = arith.constant 0 : i32
    %2 = arith.cmpi ne, %1, %c0_i32_0 : i32
    scf.if %2 {
      %c0_68 = arith.constant 0 : index
      %c0_69 = arith.constant 0 : index
      %121 = vector.load %arg3[%c0_68, %c0_69] : memref<128x128xf32, #tpu.memory_space<vmem>>, vector<128x128xf32>
      %c0_70 = arith.constant 0 : index
      %c0_71 = arith.constant 0 : index
      %122 = vector.load %arg4[%c0_70, %c0_71] : memref<1x128xf32, #tpu.memory_space<vmem>>, vector<1x128xf32>
      %c0_72 = arith.constant 0 : index
      %c0_73 = arith.constant 0 : index
      %123 = vector.load %arg5[%c0_72, %c0_73] : memref<1x128xf32, #tpu.memory_space<vmem>>, vector<1x128xf32>
      %cst_74 = arith.constant dense<0.000000e+00> : vector<128xf32>
      %124 = vector.multi_reduction <add>, %121, %cst_74 [1] : vector<128x128xf32> to vector<128xf32>
      %125 = vector.shape_cast %124 : vector<128xf32> to vector<128x1xf32>
      %cst_75 = arith.constant 0.020833334 : f32
      %126 = vector.broadcast %cst_75 : f32 to vector<128x1xf32>
      %127 = arith.mulf %125, %126 : vector<128x1xf32>
      %128 = arith.mulf %121, %121 : vector<128x128xf32>
      %cst_76 = arith.constant dense<0.000000e+00> : vector<128xf32>
      %129 = vector.multi_reduction <add>, %128, %cst_76 [1] : vector<128x128xf32> to vector<128xf32>
      %130 = vector.shape_cast %129 : vector<128xf32> to vector<128x1xf32>
      %cst_77 = arith.constant 0.020833334 : f32
      %131 = vector.broadcast %cst_77 : f32 to vector<128x1xf32>
      %132 = arith.mulf %130, %131 : vector<128x1xf32>
      %133 = arith.mulf %127, %127 : vector<128x1xf32>
      %134 = arith.subf %132, %133 : vector<128x1xf32>
      %cst_78 = arith.constant 0.000000e+00 : f32
      %135 = vector.broadcast %cst_78 : f32 to vector<128x1xf32>
      %136 = arith.maximumf %134, %135 : vector<128x1xf32>
      %137 = vector.broadcast %127 : vector<128x1xf32> to vector<128x128xf32>
      %138 = arith.subf %121, %137 : vector<128x128xf32>
      %cst_79 = arith.constant 9.99999996E-13 : f32
      %139 = vector.broadcast %cst_79 : f32 to vector<128x1xf32>
      %140 = arith.addf %136, %139 : vector<128x1xf32>
      %141 = math.rsqrt %140 : vector<128x1xf32>
      %142 = vector.broadcast %141 : vector<128x1xf32> to vector<128x128xf32>
      %143 = arith.mulf %138, %142 : vector<128x128xf32>
      %144 = vector.broadcast %122 : vector<1x128xf32> to vector<128x128xf32>
      %145 = arith.mulf %144, %143 : vector<128x128xf32>
      %146 = vector.broadcast %123 : vector<1x128xf32> to vector<128x128xf32>
      %147 = arith.addf %145, %146 : vector<128x128xf32>
      %c0_80 = arith.constant 0 : index
      %c0_81 = arith.constant 0 : index
      %148 = vector.load %arg21[%c0_80, %c0_81] : memref<128x128xf32, #tpu.memory_space<vmem>>, vector<128x128xf32>
      tpu.vector_store %arg21[%c0_80, %c0_81], %147 {strides = array<i32>} : memref<128x128xf32, #tpu.memory_space<vmem>>, vector<128x128xf32>,
    } else {
    }
    %c0 = arith.constant 0 : index
    %c0_1 = arith.constant 0 : index
    %3 = vector.load %arg21[%c0, %c0_1] : memref<128x128xf32, #tpu.memory_space<vmem>>, vector<128x128xf32>
    %4 = vector.shape_cast %3 : vector<128x128xf32> to vector<8x16x128xf32>
    %5 = arith.truncf %4 : vector<8x16x128xf32> to vector<8x16x128xbf16>
    %c0_2 = arith.constant 0 : index
    %c0_3 = arith.constant 0 : index
    %c0_4 = arith.constant 0 : index
    %6 = vector.load %arg6[%c0_2, %c0_3, %c0_4] : memref<8x8x16xbf16, #tpu.memory_space<vmem>>, vector<8x8x16xbf16>
    "tpu.trace_start"() <{level = 10 : i32, message = "bkn,bnd->bkd"}> : () -> ()
    %cst = arith.constant dense<0.000000e+00> : vector<8x8x128xf32>
    %7 = tpu.matmul %6, %5, %cst {dimension_numbers = #tpu.dot_dimension_numbers<[2], [1], [1], [2], [0, 0, 0, 1, 1, 2], [0], [0]>} : vector<8x8x16xbf16>, vector<8x16x128xbf16>, vector<8x8x128xf32> -> vector<8x8x128xf32>
    "tpu.trace_stop"() : () -> ()
    %c0_5 = arith.constant 0 : index
    %c0_6 = arith.constant 0 : index
    %c0_7 = arith.constant 0 : index
    %8 = vector.load %arg7[%c0_5, %c0_6, %c0_7] : memref<8x8x16xbf16, #tpu.memory_space<vmem>>, vector<8x8x16xbf16>
    "tpu.trace_start"() <{level = 10 : i32, message = "bkn,bnd->bkd"}> : () -> ()
    %cst_8 = arith.constant dense<0.000000e+00> : vector<8x8x128xf32>
    %9 = tpu.matmul %8, %5, %cst_8 {dimension_numbers = #tpu.dot_dimension_numbers<[2], [1], [1], [2], [0, 0, 0, 1, 1, 2], [0], [0]>} : vector<8x8x16xbf16>, vector<8x16x128xbf16>, vector<8x8x128xf32> -> vector<8x8x128xf32>
    "tpu.trace_stop"() : () -> ()
    %c0_9 = arith.constant 0 : index
    %c0_10 = arith.constant 0 : index
    %c0_11 = arith.constant 0 : index
    %10 = vector.load %arg10[%c0_9, %c0_10, %c0_11] : memref<1x8x128xf32, #tpu.memory_space<vmem>>, vector<1x8x128xf32>
    %c0_12 = arith.constant 0 : index
    %c0_13 = arith.constant 0 : index
    %c0_14 = arith.constant 0 : index
    %11 = vector.load %arg11[%c0_12, %c0_13, %c0_14] : memref<1x8x128xf32, #tpu.memory_space<vmem>>, vector<1x8x128xf32>
    %12 = vector.broadcast %10 : vector<1x8x128xf32> to vector<8x8x128xf32>
    %13 = arith.mulf %7, %12 : vector<8x8x128xf32>
    %14 = vector.broadcast %11 : vector<1x8x128xf32> to vector<8x8x128xf32>
    %15 = arith.mulf %9, %14 : vector<8x8x128xf32>
    %16 = arith.subf %13, %15 : vector<8x8x128xf32>
    %17 = arith.truncf %16 : vector<8x8x128xf32> to vector<8x8x128xbf16>
    %18 = vector.broadcast %11 : vector<1x8x128xf32> to vector<8x8x128xf32>
    %19 = arith.mulf %7, %18 : vector<8x8x128xf32>
    %20 = vector.broadcast %10 : vector<1x8x128xf32> to vector<8x8x128xf32>
    %21 = arith.mulf %9, %20 : vector<8x8x128xf32>
    %22 = arith.addf %19, %21 : vector<8x8x128xf32>
    %23 = arith.truncf %22 : vector<8x8x128xf32> to vector<8x8x128xbf16>
    %c0_15 = arith.constant 0 : index
    %c0_16 = arith.constant 0 : index
    %c0_17 = arith.constant 0 : index
    %24 = vector.load %arg8[%c0_15, %c0_16, %c0_17] : memref<8x16x8xbf16, #tpu.memory_space<vmem>>, vector<8x16x8xbf16>
    "tpu.trace_start"() <{level = 10 : i32, message = "bnk,bkd->bnd"}> : () -> ()
    %cst_18 = arith.constant dense<0.000000e+00> : vector<8x16x128xf32>
    %25 = tpu.matmul %24, %17, %cst_18 {dimension_numbers = #tpu.dot_dimension_numbers<[2], [1], [1], [2], [0, 0, 0, 1, 1, 2], [0], [0]>} : vector<8x16x8xbf16>, vector<8x8x128xbf16>, vector<8x16x128xf32> -> vector<8x16x128xf32>
    "tpu.trace_stop"() : () -> ()
    %c0_19 = arith.constant 0 : index
    %c0_20 = arith.constant 0 : index
    %c0_21 = arith.constant 0 : index
    %26 = vector.load %arg9[%c0_19, %c0_20, %c0_21] : memref<8x16x8xbf16, #tpu.memory_space<vmem>>, vector<8x16x8xbf16>
    "tpu.trace_start"() <{level = 10 : i32, message = "bnk,bkd->bnd"}> : () -> ()
    %cst_22 = arith.constant dense<0.000000e+00> : vector<8x16x128xf32>
    %27 = tpu.matmul %26, %23, %cst_22 {dimension_numbers = #tpu.dot_dimension_numbers<[2], [1], [1], [2], [0, 0, 0, 1, 1, 2], [0], [0]>} : vector<8x16x8xbf16>, vector<8x8x128xbf16>, vector<8x16x128xf32> -> vector<8x16x128xf32>
    "tpu.trace_stop"() : () -> ()
    %28 = arith.addf %25, %27 : vector<8x16x128xf32>
    %29 = vector.shape_cast %28 : vector<8x16x128xf32> to vector<128x128xf32>
    %30 = arith.addf %29, %3 : vector<128x128xf32>
    %c0_23 = arith.constant 0 : index
    %c0_24 = arith.constant 0 : index
    %c0_25 = arith.constant 0 : index
    %31 = vector.load %arg12[%c0_23, %c0_24, %c0_25] : memref<1x1x128xf32, #tpu.memory_space<vmem>>, vector<1x1x128xf32>
    %32 = vector.shape_cast %31 : vector<1x1x128xf32> to vector<1x128xf32>
    %c0_26 = arith.constant 0 : index
    %c0_27 = arith.constant 0 : index
    %c0_28 = arith.constant 0 : index
    %33 = vector.load %arg13[%c0_26, %c0_27, %c0_28] : memref<1x1x128xf32, #tpu.memory_space<vmem>>, vector<1x1x128xf32>
    %34 = vector.shape_cast %33 : vector<1x1x128xf32> to vector<1x128xf32>
    %cst_29 = arith.constant dense<0.000000e+00> : vector<128xf32>
    %35 = vector.multi_reduction <add>, %30, %cst_29 [1] : vector<128x128xf32> to vector<128xf32>
    %36 = vector.shape_cast %35 : vector<128xf32> to vector<128x1xf32>
    %cst_30 = arith.constant 0.020833334 : f32
    %37 = vector.broadcast %cst_30 : f32 to vector<128x1xf32>
    %38 = arith.mulf %36, %37 : vector<128x1xf32>
    %39 = arith.mulf %30, %30 : vector<128x128xf32>
    %cst_31 = arith.constant dense<0.000000e+00> : vector<128xf32>
    %40 = vector.multi_reduction <add>, %39, %cst_31 [1] : vector<128x128xf32> to vector<128xf32>
    %41 = vector.shape_cast %40 : vector<128xf32> to vector<128x1xf32>
    %cst_32 = arith.constant 0.020833334 : f32
    %42 = vector.broadcast %cst_32 : f32 to vector<128x1xf32>
    %43 = arith.mulf %41, %42 : vector<128x1xf32>
    %44 = arith.mulf %38, %38 : vector<128x1xf32>
    %45 = arith.subf %43, %44 : vector<128x1xf32>
    %cst_33 = arith.constant 0.000000e+00 : f32
    %46 = vector.broadcast %cst_33 : f32 to vector<128x1xf32>
    %47 = arith.maximumf %45, %46 : vector<128x1xf32>
    %48 = vector.broadcast %38 : vector<128x1xf32> to vector<128x128xf32>
    %49 = arith.subf %30, %48 : vector<128x128xf32>
    %cst_34 = arith.constant 9.99999996E-13 : f32
    %50 = vector.broadcast %cst_34 : f32 to vector<128x1xf32>
    %51 = arith.addf %47, %50 : vector<128x1xf32>
    %52 = math.rsqrt %51 : vector<128x1xf32>
    %53 = vector.broadcast %52 : vector<128x1xf32> to vector<128x128xf32>
    %54 = arith.mulf %49, %53 : vector<128x128xf32>
    %55 = vector.broadcast %32 : vector<1x128xf32> to vector<128x128xf32>
    %56 = arith.mulf %55, %54 : vector<128x128xf32>
    %57 = vector.broadcast %34 : vector<1x128xf32> to vector<128x128xf32>
    %58 = arith.addf %56, %57 : vector<128x128xf32>
    %59 = arith.truncf %58 : vector<128x128xf32> to vector<128x128xbf16>
    %c0_35 = arith.constant 0 : index
    %c0_36 = arith.constant 0 : index
    %c0_37 = arith.constant 0 : index
    %60 = vector.load %arg14[%c0_35, %c0_36, %c0_37] : memref<1x128x256xbf16, #tpu.memory_space<vmem>>, vector<1x128x256xbf16>
    %61 = vector.shape_cast %60 : vector<1x128x256xbf16> to vector<128x256xbf16>
    %cst_38 = arith.constant dense<0.000000e+00> : vector<128x256xf32>
    %62 = tpu.matmul %59, %61, %cst_38 {dimension_numbers = #tpu.dot_dimension_numbers<[1], [0], [0], [1], [0, 0, 1, 1], [], []>} : vector<128x128xbf16>, vector<128x256xbf16>, vector<128x256xf32> -> vector<128x256xf32>
    %c0_39 = arith.constant 0 : index
    %c0_40 = arith.constant 0 : index
    %c0_41 = arith.constant 0 : index
    %63 = vector.load %arg15[%c0_39, %c0_40, %c0_41] : memref<1x1x256xf32, #tpu.memory_space<vmem>>, vector<1x1x256xf32>
    %64 = vector.shape_cast %63 : vector<1x1x256xf32> to vector<1x256xf32>
    %65 = vector.broadcast %64 : vector<1x256xf32> to vector<128x256xf32>
    %66 = arith.addf %62, %65 : vector<128x256xf32>
    %cst_42 = arith.constant 5.000000e-01 : f32
    %67 = vector.broadcast %cst_42 : f32 to vector<128x256xf32>
    %68 = arith.mulf %67, %66 : vector<128x256xf32>
    %cst_43 = arith.constant 4.471500e-02 : f32
    %69 = vector.broadcast %cst_43 : f32 to vector<128x256xf32>
    %70 = arith.mulf %69, %66 : vector<128x256xf32>
    %71 = arith.mulf %70, %66 : vector<128x256xf32>
    %72 = arith.mulf %71, %66 : vector<128x256xf32>
    %73 = arith.addf %66, %72 : vector<128x256xf32>
    %cst_44 = arith.constant 0.797884583 : f32
    %74 = vector.broadcast %cst_44 : f32 to vector<128x256xf32>
    %75 = arith.mulf %74, %73 : vector<128x256xf32>
    %76 = math.tanh %75 : vector<128x256xf32>
    %cst_45 = arith.constant 1.000000e+00 : f32
    %77 = vector.broadcast %cst_45 : f32 to vector<128x256xf32>
    %78 = arith.addf %77, %76 : vector<128x256xf32>
    %79 = arith.mulf %68, %78 : vector<128x256xf32>
    %80 = arith.truncf %79 : vector<128x256xf32> to vector<128x256xbf16>
    %c0_46 = arith.constant 0 : index
    %c0_47 = arith.constant 0 : index
    %c0_48 = arith.constant 0 : index
    %81 = vector.load %arg16[%c0_46, %c0_47, %c0_48] : memref<1x256x128xbf16, #tpu.memory_space<vmem>>, vector<1x256x128xbf16>
    %82 = vector.shape_cast %81 : vector<1x256x128xbf16> to vector<256x128xbf16>
    %cst_49 = arith.constant dense<0.000000e+00> : vector<128x128xf32>
    %83 = tpu.matmul %80, %82, %cst_49 {dimension_numbers = #tpu.dot_dimension_numbers<[1], [0], [0], [1], [0, 0, 1, 1], [], []>} : vector<128x256xbf16>, vector<256x128xbf16>, vector<128x128xf32> -> vector<128x128xf32>
    %c0_50 = arith.constant 0 : index
    %c0_51 = arith.constant 0 : index
    %c0_52 = arith.constant 0 : index
    %84 = vector.load %arg17[%c0_50, %c0_51, %c0_52] : memref<1x1x128xf32, #tpu.memory_space<vmem>>, vector<1x1x128xf32>
    %85 = vector.shape_cast %84 : vector<1x1x128xf32> to vector<1x128xf32>
    %86 = vector.broadcast %85 : vector<1x128xf32> to vector<128x128xf32>
    %87 = arith.addf %83, %86 : vector<128x128xf32>
    %88 = arith.addf %87, %58 : vector<128x128xf32>
    %c0_53 = arith.constant 0 : index
    %c0_54 = arith.constant 0 : index
    %c0_55 = arith.constant 0 : index
    %89 = vector.load %arg18[%c0_53, %c0_54, %c0_55] : memref<1x1x128xf32, #tpu.memory_space<vmem>>, vector<1x1x128xf32>
    %90 = vector.shape_cast %89 : vector<1x1x128xf32> to vector<1x128xf32>
    %c0_56 = arith.constant 0 : index
    %c0_57 = arith.constant 0 : index
    %c0_58 = arith.constant 0 : index
    %91 = vector.load %arg19[%c0_56, %c0_57, %c0_58] : memref<1x1x128xf32, #tpu.memory_space<vmem>>, vector<1x1x128xf32>
    %92 = vector.shape_cast %91 : vector<1x1x128xf32> to vector<1x128xf32>
    %cst_59 = arith.constant dense<0.000000e+00> : vector<128xf32>
    %93 = vector.multi_reduction <add>, %88, %cst_59 [1] : vector<128x128xf32> to vector<128xf32>
    %94 = vector.shape_cast %93 : vector<128xf32> to vector<128x1xf32>
    %cst_60 = arith.constant 0.020833334 : f32
    %95 = vector.broadcast %cst_60 : f32 to vector<128x1xf32>
    %96 = arith.mulf %94, %95 : vector<128x1xf32>
    %97 = arith.mulf %88, %88 : vector<128x128xf32>
    %cst_61 = arith.constant dense<0.000000e+00> : vector<128xf32>
    %98 = vector.multi_reduction <add>, %97, %cst_61 [1] : vector<128x128xf32> to vector<128xf32>
    %99 = vector.shape_cast %98 : vector<128xf32> to vector<128x1xf32>
    %cst_62 = arith.constant 0.020833334 : f32
    %100 = vector.broadcast %cst_62 : f32 to vector<128x1xf32>
    %101 = arith.mulf %99, %100 : vector<128x1xf32>
    %102 = arith.mulf %96, %96 : vector<128x1xf32>
    %103 = arith.subf %101, %102 : vector<128x1xf32>
    %cst_63 = arith.constant 0.000000e+00 : f32
    %104 = vector.broadcast %cst_63 : f32 to vector<128x1xf32>
    %105 = arith.maximumf %103, %104 : vector<128x1xf32>
    %106 = vector.broadcast %96 : vector<128x1xf32> to vector<128x128xf32>
    %107 = arith.subf %88, %106 : vector<128x128xf32>
    %cst_64 = arith.constant 9.99999996E-13 : f32
    %108 = vector.broadcast %cst_64 : f32 to vector<128x1xf32>
    %109 = arith.addf %105, %108 : vector<128x1xf32>
    %110 = math.rsqrt %109 : vector<128x1xf32>
    %111 = vector.broadcast %110 : vector<128x1xf32> to vector<128x128xf32>
    %112 = arith.mulf %107, %111 : vector<128x128xf32>
    %113 = vector.broadcast %90 : vector<1x128xf32> to vector<128x128xf32>
    %114 = arith.mulf %113, %112 : vector<128x128xf32>
    %115 = vector.broadcast %92 : vector<1x128xf32> to vector<128x128xf32>
    %116 = arith.addf %114, %115 : vector<128x128xf32>
    %c0_65 = arith.constant 0 : index
    %c0_66 = arith.constant 0 : index
    %117 = vector.load %arg21[%c0_65, %c0_66] : memref<128x128xf32, #tpu.memory_space<vmem>>, vector<128x128xf32>
    tpu.vector_store %arg21[%c0_65, %c0_66], %116 {strides = array<i32>} : memref<128x128xf32, #tpu.memory_space<vmem>>, vector<128x128xf32>,
    %c1_i32 = arith.constant 1 : i32
    %118 = arith.cmpi eq, %arg1, %c1_i32 : i32
    %119 = arith.extui %118 : i1 to i32
    %c0_i32_67 = arith.constant 0 : i32
    %120 = arith.cmpi ne, %119, %c0_i32_67 : i32
    scf.if %120 {
      %121 = tpu.iota {dimensions = array<i32: 1>} : vector<8x16x128xi32>
      %c0_68 = arith.constant 0 : index
      %c0_69 = arith.constant 0 : index
      %c0_70 = arith.constant 0 : index
      %122 = vector.load %arg2[%c0_68, %c0_69, %c0_70] : memref<8x1x128xi32, #tpu.memory_space<vmem>>, vector<8x1x128xi32>
      %123 = vector.broadcast %122 : vector<8x1x128xi32> to vector<8x16x128xi32>
      %124 = arith.cmpi eq, %121, %123 : vector<8x16x128xi32>
      %125 = arith.extui %124 : vector<8x16x128xi1> to vector<8x16x128xi32>
      %126 = arith.sitofp %125 : vector<8x16x128xi32> to vector<8x16x128xf32>
      %127 = vector.shape_cast %116 : vector<128x128xf32> to vector<8x16x128xf32>
      %128 = arith.mulf %127, %126 : vector<8x16x128xf32>
      %cst_71 = arith.constant dense<0.000000e+00> : vector<8x128xf32>
      %129 = vector.multi_reduction <add>, %128, %cst_71 [1] : vector<8x16x128xf32> to vector<8x128xf32>
      %c0_72 = arith.constant 0 : index
      %c0_73 = arith.constant 0 : index
      %130 = vector.load %arg20[%c0_72, %c0_73] : memref<8x128xf32, #tpu.memory_space<vmem>>, vector<8x128xf32>
      tpu.vector_store %arg20[%c0_72, %c0_73], %129 {strides = array<i32>} : memref<8x128xf32, #tpu.memory_space<vmem>>, vector<8x128xf32>,
    } else {
    }
    return
  }
  func.func @transform_0(%arg0: i32, %arg1: i32) -> (i32, i32, i32) {
    %c0_i32 = arith.constant 0 : i32
    %c0_i32_0 = arith.constant 0 : i32
    %c0_i32_1 = arith.constant 0 : i32
    return %arg0, %c0_i32, %c0_i32_0 : i32, i32, i32
  }
  func.func @transform_1(%arg0: i32, %arg1: i32) -> (i32, i32) {
    %c0_i32 = arith.constant 0 : i32
    %c0_i32_0 = arith.constant 0 : i32
    return %arg0, %c0_i32 : i32, i32
  }
  func.func @transform_2(%arg0: i32, %arg1: i32) -> (i32, i32) {
    %c0_i32 = arith.constant 0 : i32
    %c0_i32_0 = arith.constant 0 : i32
    %c0_i32_1 = arith.constant 0 : i32
    return %c0_i32, %c0_i32_0 : i32, i32
  }
  func.func @transform_3(%arg0: i32, %arg1: i32) -> (i32, i32) {
    %c0_i32 = arith.constant 0 : i32
    %c0_i32_0 = arith.constant 0 : i32
    %c0_i32_1 = arith.constant 0 : i32
    return %c0_i32, %c0_i32_0 : i32, i32
  }
  func.func @transform_4(%arg0: i32, %arg1: i32) -> (i32, i32, i32) {
    %c0_i32 = arith.constant 0 : i32
    %c0_i32_0 = arith.constant 0 : i32
    %c0_i32_1 = arith.constant 0 : i32
    %c0_i32_2 = arith.constant 0 : i32
    return %c0_i32, %c0_i32_0, %c0_i32_1 : i32, i32, i32
  }
  func.func @transform_5(%arg0: i32, %arg1: i32) -> (i32, i32, i32) {
    %c0_i32 = arith.constant 0 : i32
    %c0_i32_0 = arith.constant 0 : i32
    %c0_i32_1 = arith.constant 0 : i32
    %c0_i32_2 = arith.constant 0 : i32
    return %c0_i32, %c0_i32_0, %c0_i32_1 : i32, i32, i32
  }
  func.func @transform_6(%arg0: i32, %arg1: i32) -> (i32, i32, i32) {
    %c0_i32 = arith.constant 0 : i32
    %c0_i32_0 = arith.constant 0 : i32
    %c0_i32_1 = arith.constant 0 : i32
    %c0_i32_2 = arith.constant 0 : i32
    return %c0_i32, %c0_i32_0, %c0_i32_1 : i32, i32, i32
  }
  func.func @transform_7(%arg0: i32, %arg1: i32) -> (i32, i32, i32) {
    %c0_i32 = arith.constant 0 : i32
    %c0_i32_0 = arith.constant 0 : i32
    %c0_i32_1 = arith.constant 0 : i32
    %c0_i32_2 = arith.constant 0 : i32
    return %c0_i32, %c0_i32_0, %c0_i32_1 : i32, i32, i32
  }
  func.func @transform_8(%arg0: i32, %arg1: i32) -> (i32, i32, i32) {
    %c0_i32 = arith.constant 0 : i32
    %c0_i32_0 = arith.constant 0 : i32
    %c0_i32_1 = arith.constant 0 : i32
    return %arg1, %c0_i32, %c0_i32_0 : i32, i32, i32
  }
  func.func @transform_9(%arg0: i32, %arg1: i32) -> (i32, i32, i32) {
    %c0_i32 = arith.constant 0 : i32
    %c0_i32_0 = arith.constant 0 : i32
    %c0_i32_1 = arith.constant 0 : i32
    return %arg1, %c0_i32, %c0_i32_0 : i32, i32, i32
  }
  func.func @transform_10(%arg0: i32, %arg1: i32) -> (i32, i32, i32) {
    %c0_i32 = arith.constant 0 : i32
    %c0_i32_0 = arith.constant 0 : i32
    %c0_i32_1 = arith.constant 0 : i32
    return %arg1, %c0_i32, %c0_i32_0 : i32, i32, i32
  }
  func.func @transform_11(%arg0: i32, %arg1: i32) -> (i32, i32, i32) {
    %c0_i32 = arith.constant 0 : i32
    %c0_i32_0 = arith.constant 0 : i32
    %c0_i32_1 = arith.constant 0 : i32
    return %arg1, %c0_i32, %c0_i32_0 : i32, i32, i32
  }
  func.func @transform_12(%arg0: i32, %arg1: i32) -> (i32, i32, i32) {
    %c0_i32 = arith.constant 0 : i32
    %c0_i32_0 = arith.constant 0 : i32
    %c0_i32_1 = arith.constant 0 : i32
    return %arg1, %c0_i32, %c0_i32_0 : i32, i32, i32
  }
  func.func @transform_13(%arg0: i32, %arg1: i32) -> (i32, i32, i32) {
    %c0_i32 = arith.constant 0 : i32
    %c0_i32_0 = arith.constant 0 : i32
    %c0_i32_1 = arith.constant 0 : i32
    return %arg1, %c0_i32, %c0_i32_0 : i32, i32, i32
  }
  func.func @transform_14(%arg0: i32, %arg1: i32) -> (i32, i32, i32) {
    %c0_i32 = arith.constant 0 : i32
    %c0_i32_0 = arith.constant 0 : i32
    %c0_i32_1 = arith.constant 0 : i32
    return %arg1, %c0_i32, %c0_i32_0 : i32, i32, i32
  }
  func.func @transform_15(%arg0: i32, %arg1: i32) -> (i32, i32, i32) {
    %c0_i32 = arith.constant 0 : i32
    %c0_i32_0 = arith.constant 0 : i32
    %c0_i32_1 = arith.constant 0 : i32
    return %arg1, %c0_i32, %c0_i32_0 : i32, i32, i32
  }
  func.func @transform_16(%arg0: i32, %arg1: i32) -> (i32, i32, i32) {
    %c0_i32 = arith.constant 0 : i32
    %c0_i32_0 = arith.constant 0 : i32
    %c0_i32_1 = arith.constant 0 : i32
    return %arg1, %c0_i32, %c0_i32_0 : i32, i32, i32
  }
  func.func @transform_17(%arg0: i32, %arg1: i32) -> (i32, i32, i32) {
    %c0_i32 = arith.constant 0 : i32
    %c0_i32_0 = arith.constant 0 : i32
    %c0_i32_1 = arith.constant 0 : i32
    return %arg1, %c0_i32, %c0_i32_0 : i32, i32, i32
  }
  func.func @transform_18(%arg0: i32, %arg1: i32) -> (i32, i32) {
    %c0_i32 = arith.constant 0 : i32
    %c0_i32_0 = arith.constant 0 : i32
    return %arg0, %c0_i32 : i32, i32
  }
}

</mosaic_0001>

<bundles_post_ra>
// kernel: tpu_custom_call.1
= control target key start
LH: loop header
LB: loop body
LE: loop exit
PB: predicated region body
PF: predicated region fallthrough
CT: control target
= control target key end

     0   :  { %s7633_s0 = inlined_call_operand.vmem [shape: s32[16,1,128], index: 0, kind: input, shape index: {}]   ;;  %s7634_s1 = inlined_call_operand.hbm [shape: f32[256,128], index: 1, kind: input, shape index: {}]   ;;  %s7635_s2 = inlined_call_operand.vmem [shape: f32[1,128], index: 2, kind: input, shape index: {}]   ;;  %s7636_s3 = inlined_call_operand.vmem [shape: f32[1,128], index: 3, kind: input, shape index: {}]   ;;  %s7637_s4 = inlined_call_operand.vmem [shape: bf16[8,8,16], index: 4, kind: input, shape index: {}]   ;;  %s7638_s5 = inlined_call_operand.vmem [shape: bf16[8,8,16], index: 5, kind: input, shape index: {}]   ;;  %s7639_s6 = inlined_call_operand.vmem [shape: bf16[8,16,8], index: 6, kind: input, shape index: {}]   ;;  %s7640_s7 = inlined_call_operand.vmem [shape: bf16[8,16,8], index: 7, kind: input, shape index: {}]   ;;  %s7641_s8 = inlined_call_operand.vmem [shape: f32[2,8,128], index: 8, kind: input, shape index: {}]   ;;  %s7642_s9 = inlined_call_operand.vmem [shape: f32[2,8,128], index: 9, kind: input, shape index: {}]   ;;  %s7643_s10 = inlined_call_operand.vmem [shape: f32[2,1,128], index: 10, kind: input, shape index: {}]   ;;  %s7644_s11 = inlined_call_operand.vmem [shape: f32[2,1,128], index: 11, kind: input, shape index: {}]   ;;  %s7645_s12 = inlined_call_operand.hbm [shape: bf16[2,128,256], index: 12, kind: input, shape index: {}]   ;;  %s7646_s13 = inlined_call_operand.vmem [shape: f32[2,1,256], index: 13, kind: input, shape index: {}]   ;;  %s7647_s14 = inlined_call_operand.hbm [shape: bf16[2,256,128], index: 14, kind: input, shape index: {}]   ;;  %s7648_s15 = inlined_call_operand.vmem [shape: f32[2,1,128], index: 15, kind: input, shape index: {}]   ;;  %s7649_s16 = inlined_call_operand.vmem [shape: f32[2,1,128], index: 16, kind: input, shape index: {}]   ;;  %s7650_s17 = inlined_call_operand.vmem [shape: f32[2,1,128], index: 17, kind: input, shape index: {}]   ;;  %s7651_s18 = inlined_call_operand.hbm [shape: f32[16,128], index: 18, kind: output, shape index: {}]  }
   0x1   :  { %7683 = sst [smem:[#allocation28_spill]] %s7633_s0 }
   0x2   :  { %7684 = sst [smem:[#allocation29_spill]] %s7634_s1 }
   0x3   :  { %7685 = sst [smem:[#allocation30_spill]] %s7635_s2 }
   0x4   :  { %7686 = sst [smem:[#allocation31_spill]] %s7636_s3 }
   0x5   :  { %7687 = sst [smem:[#allocation32_spill]] %s7637_s4 }
   0x6   :  { %7688 = sst [smem:[#allocation33_spill]] %s7638_s5 }
   0x7   :  { %7689 = sst [smem:[#allocation34_spill]] %s7639_s6 }
   0x8   :  { %7690 = sst [smem:[#allocation35_spill]] %s7640_s7 }
   0x9   :  { %7691 = sst [smem:[#allocation36_spill]] %s7641_s8 }
   0xa   :  { %7692 = sst [smem:[#allocation37_spill]] %s7642_s9 }
   0xb   :  { %7693 = sst [smem:[#allocation38_spill]] %s7643_s10 }
   0xc   :  { %7694 = sst [smem:[#allocation39_spill]] %s7644_s11 }
   0xd   :  { %7695 = sst [smem:[#allocation40_spill]] %s7645_s12 }
   0xe   :  { %7696 = sst [smem:[#allocation41_spill]] %s7646_s13 }
   0xf   :  { %7697 = sst [smem:[#allocation42_spill]] %s7647_s14 }
  0x10   :  { %7698 = sst [smem:[#allocation43_spill]] %s7648_s15 }
  0x11   :  { %7699 = sst [smem:[#allocation44_spill]] %s7649_s16 }
  0x12   :  { %7700 = sst [smem:[#allocation45_spill]] %s7650_s17 }
  0x13   :  { %7701 = sst [smem:[#allocation46_spill]] %s7651_s18 }
  0x14   :  { %23 = vsyncpa [#allocation4], 0 }
  0x15   :  { %25 = vsyncpa [#allocation4 + $0x1], 0 }
  0x16   :  { %26 = vsyncpa [#allocation7], 0 }
  0x17   :  { %28 = vsyncpa [#allocation7 + $0x1], 0 }
  0x18   :  { %29 = vsyncpa [#allocation5], 0 }
  0x19   :  { %31 = vsyncpa [#allocation5 + $0x1], 0  ;;  %s5694_s27 = smov 0   ;;  %s5696_s28 = smov 0  }
  0x1a   :  { %s5698_s29 = smov 0   ;;  %s5700_s30 = smov 0  }
  0x1b   :  { %s5702_s0 = smov 0   ;;  %s5704_s19 = smov 0  }
  0x1c   :  { %s5706_s1 = smov 0   ;;  %s5708_s20 = smov 0  }
  0x1d   :  { %s5710_s21 = smov 0   ;;  %s5712_s22 = smov 0  }
  0x1e   :  { %s5714_s2 = smov 0  }
  0x1f LB: > { %7702 = sst [smem:[#allocation13_spill]] %s5549_s28  ;;  %s5748_s23 = sadd.s32 4294967295, %s5585_s2   ;;  %s5585_s2 = sphi %s5714_s2, %s37_s2   ;;  %s5581_s22 = sphi %s5712_s22, %s7777_s22   ;;  %s5577_s21 = sphi %s5710_s21, %s7776_s21   ;;  %s5573_s20 = sphi %s5708_s20, %s7775_s20   ;;  %s5569_s1 = sphi %s5706_s1, %s7774_s1   ;;  %s5565_s19 = sphi %s5704_s19, %s7773_s19   ;;  %s5561_s0 = sphi %s5702_s0, %s7772_s0   ;;  %s5557_s30 = sphi %s5700_s30, %s7771_s30   ;;  %s5553_s29 = sphi %s5698_s29, %s7770_s29   ;;  %s5549_s28 = sphi %s5696_s28, %s7769_s28   ;;  %s5545_s27 = sphi %s5694_s27, %s7768_s27  }
  0x20   : > { %7703 = sst [smem:[#allocation14_spill]] %s5553_s29  ;;  %s46_s24 = sadd.s32 1, %s5577_s21 }
  0x21   : > { %7704 = sst [smem:[#allocation15_spill]] %s5557_s30  ;;  %p5751_p0 = scmp.ge.s32.totalorder %s46_s24, 2 }
  0x22   : > { %7705 = sst [smem:[#allocation16_spill]] %s5561_s0  ;;  %p7663_p1 = scmp.eq.s32.totalorder %s5585_s2, 0 }
  0x23   : > { %7706 = sst [smem:[#allocation17_spill]] %s5565_s19  ;;  %p7662_p2 = scmp.eq.s32.totalorder %s5748_s23, 0 }
  0x24   : > { %7707 = sst [smem:[#allocation18_spill]] %s5577_s21  ;;  %s338_s26 = sadd.s32 1, %s5553_s29 }
  0x25   : > { %7708 = sst [smem:[#allocation19_spill]] %s5581_s22  ;;  %s7779_s24 = smov (%p5751_p0, %s46_s24), 0 }
  0x26   : > { %7709 = sst [smem:[#allocation20_spill]] %s5585_s2  ;;  %p345_p3 = scmp.ne.s32.totalorder %s5553_s29, %s5549_s28 }
  0x27   : > { %7711 = sst [smem:[#allocation21_spill]] %s7779_s24  ;;  %p351_p4 = scmp.ne.s32.totalorder %s5549_s28, %s5545_s27 }
  0x28   : > { %s335_s18 = ssub.s32 %s5577_s21, %s7779_s24  ;;  %p347_p6 = por %p345_p3, %p7663_p1 }
  0x29   : > { %p336_p5 = scmp.eq.s32.totalorder %s335_s18, 0  ;;  %p5771_p7 = por %p351_p4, %p7662_p2 }
  0x2a   : > { %p7661_p8 = scmp.lt.s32.totalorder %s5585_s2, 4  ;;  %s604_s5 = sand.u32 1, %s5585_s2  }
  0x2b   : > { %s7712_s6 = scalar_select %p5771_p7, 1, 0 }
  0x2c   : > { %s5777_s7 = scalar_select %p336_p5, %s5553_s29, %s338_s26  }
  0x2d   : > { %s606_s4 = sand.u32 1, %s5553_s29   ;;  %s4704_s17 = sshll.u32 %s5577_s21, 11 }
  0x2e   : > { %7713 = sst [smem:[#allocation22_spill]] %s5777_s7  ;;  %s4571_s3 = sshll.u32 %s606_s4, 7 }
  0x2f   : > { %s7714_s12 = sld [smem:[#allocation40_spill]]  ;;  %s608_s18 = scalar_lea.vmem [#allocation6], %s4571_s3 }
  0x30   : > { %s615_s24 = sshll.u32 %s608_s18, 4  ;;  %p5791_p9 = pnand %p7661_p8, %p347_p6  ;;  %s5787_s24 = int_to_ptr.vmem [resolvable:$true] %s615_s24 }
  0x31   : > { %s7716_s14 = sld [smem:[#allocation42_spill]]  ;;  %s636_s16 = scalar_lea.vmem [#allocation8], %s4571_s3 }
  0x32   : > { %s5800_s7 = sshll.u32 %s636_s16, 4  ;;  %s5802_s29 = scalar_lea.sflag [#allocation7], %s604_s5  ;;  %s5834_s7 = int_to_ptr.vmem [resolvable:$true] %s5800_s7 }
  0x33   : > { %p7669_p11 = pneg %p5791_p9 }
  0x35   : > { %s5785_s27 = scalar_lea.hbm %s7714_s12, %s4704_s17  ;;  %s5374_s21 = scalar_lea.hbm %s7714_s12, 4096 }
  0x36   : > { %s5369_s18 = scalar_lea.hbm %s5785_s27, 2048  ;;  %p5375_p3 = scmp.lt.u32.totalorder %s5785_s27, %s7714_s12 }
  0x37   : > { %s5798_s15 = scalar_lea.hbm %s7716_s14, %s4704_s17  ;;  %p5370_p10 = scmp.ne.s32.totalorder %s5785_s27, %s5369_s18 }
  0x38   : > { %p5376_p4 = scmp.lt.u32.totalorder %s5374_s21, %s5369_s18  ;;  %p5378_p6 = scmp.lt.u32.totalorder %s5369_s18, %s5785_s27 }
  0x39   : > { %p5372_p12 = pnand %p7669_p11, %p5370_p10 }
  0x3a   : > { %p5377_p5 = por %p5376_p4, %p5375_p3 }
  0x3b   : > { %p5373_p13 = pneg %p5372_p12 }
  0x3c   : > { %p5379_p8 = por %p5378_p6, %p5377_p5 }
  0x3e   : > { %p5380_p2 = pnand %p5379_p8, %p5373_p13 }
  0x40   : > { %5383 = shalt.err (!%p5380_p2)
}
  0x41   : > { %s5384_s3 = scalar_lea.vmem %s5787_s24, 2048  ;;  %s5587_s5 = smov [#allocation6]  }
  0x42   : > { %p5385_p10 = scmp.ne.s32.totalorder %s5787_s24, %s5384_s3  ;;  %s5389_s11 = sshll.u32 %s5587_s5, 4  ;;  %s5390_s11 = int_to_ptr.vmem [resolvable:$false] %s5389_s11 }
  0x43   : > { %s5391_s13 = scalar_lea.vmem %s5390_s11, 4096  ;;  %p5392_p7 = scmp.lt.s32.totalorder %s5787_s24, %s5390_s11 }
  0x44   : > { %p5387_p12 = pnand %p5385_p10, %p7669_p11  ;;  %p5393_p3 = scmp.lt.s32.totalorder %s5391_s13, %s5384_s3 }
  0x46   : > { %p5388_p1 = pneg %p5387_p12  ;;  %p5394_p4 = por %p5393_p3, %p5392_p7 }
  0x48   : > { %p5395_p5 = pnand %p5394_p4, %p5388_p1 }
  0x4a   : > { %5398 = shalt.err (!%p5395_p5)
}
  0x4b   : > { %s7665_s16 = smov 128   ;;  %s7666_s18 = smov 8  }
  0x4c   : > { %5040 = dma.hbm_to_vmem [thread:$0]  (!%p5791_p9), %s5785_s27, 2048, %s5787_s24, %s5802_s29, %s7665_s16, %s7665_s16, %s7666_s18  }
  0x4d   : > { %p4577_p1 = scmp.ge.s32.totalorder %s5585_s2, 1  ;;  %p669_p2 = scmp.lt.s32.totalorder %s5585_s2, 5 }
  0x4e   : > { %s4565_s4 = sadd.s32 4294967294, %s5585_s2   ;;  %s49_s17 = sadd.s32 1, %s5581_s22 }
  0x4f   : > { %p5838_p7 = pnand %p4577_p1, %p669_p2  ;;  %s7781_s17 = smov (!%p5751_p0, %s49_s17), %s5581_s22 }
  0x50   : > { %s82_s3 = sadd.s32 1, %s5565_s19  ;;  %p89_p8 = scmp.ne.s32.totalorder %s5565_s19, %s5561_s0 }
  0x51   : > { %s7717_s21 = scalar_select %p5838_p7, 1, 0 }
  0x52   : > { %p51_p13 = scmp.ge.s32.totalorder %s7781_s17, 2  ;;  %p95_p6 = scmp.ne.s32.totalorder %s5561_s0, %s5557_s30 }
  0x53   : > { %p7718_p10 = scmp.eq.s32.totalorder %s5585_s2, 0  ;;  %p505_p3 = scmp.eq.s32.totalorder %s5748_s23, 3 }
  0x54   : > { %s7783_s17 = smov (%p51_p13, %s7781_s17), 0  ;;  %p7721_p4 = scmp.eq.s32.totalorder %s5748_s23, 0 }
  0x55   : > { %p5854_p12 = por %p7718_p10, %p89_p8  ;;  %7720 = sst [smem:[#allocation23_spill]] %s7783_s17 }
  0x56   : > { %p5863_p5 = por %p7721_p4, %p95_p6  ;;  %p5867_p0 = por %p505_p3, %p89_p8 }
  0x57   : > { %s79_s5 = ssub.s32 %s5581_s22, %s7783_s17  ;;  %p511_p1 = scmp.eq.s32.totalorder %s4565_s4, 3 }
  0x58   : > { %s7722_s25 = scalar_select %p5863_p5, 1, 0 }
  0x59   : > { %s7723_s27 = scalar_select %p5867_p0, 1, 0 }
  0x5a   : > { %p80_p2 = scmp.eq.s32.totalorder %s79_s5, 0  ;;  %s557_s11 = sand.u32 1, %s5565_s19  }
  0x5b   : > { %7724 = sst [smem:[#allocation24_spill]] %s7723_s27  ;;  %p5874_p10 = por %p511_p1, %p95_p6 }
  0x5c   : > { %s5879_s16 = scalar_select %p80_p2, %s5565_s19, %s82_s3  }
  0x5d   : > { %s7725_s13 = scalar_select %p5874_p10, 1, 0 }
  0x5e   : > { %7727 = sst [smem:[#allocation26_spill]] %s5879_s16  ;;  %s4568_s18 = sshll.u32 %s557_s11, 7 }
  0x5f   : > { %7726 = sst [smem:[#allocation25_spill]] %s7725_s13  ;;  %s4703_s12 = sshll.u32 %s5581_s22, 11 }
  0x60   : > { %s7728_s8 = sld [smem:[#allocation29_spill]]  ;;  %s561_s4 = scalar_lea.vmem [#allocation3], %s4568_s18 }
  0x61   : > { %s568_s5 = sshll.u32 %s561_s4, 4  ;;  %p7729_p8 = scmp.lt.s32.totalorder %s5585_s2, 4  ;;  %s5895_s5 = int_to_ptr.vmem [resolvable:$true] %s568_s5 }
  0x62   : > { %s5897_s3 = scalar_lea.sflag [#allocation4], %s557_s11 }
  0x63   : > { %p5891_p13 = pnand %p7729_p8, %p5854_p12 }
  0x65   : > { %p5401_p3 = pneg %p5891_p13 }
  0x66   : > { %s5885_s10 = scalar_lea.hbm %s7728_s8, %s4703_s12  ;;  %s5404_s18 = scalar_lea.hbm %s7728_s8, 4096 }
  0x67   : > { %s5399_s9 = scalar_lea.hbm %s5885_s10, 2048  ;;  %p5405_p12 = scmp.lt.u32.totalorder %s5885_s10, %s7728_s8 }
  0x68   : > { %p5400_p6 = scmp.ne.s32.totalorder %s5885_s10, %s5399_s9  ;;  %p5406_p2 = scmp.lt.u32.totalorder %s5404_s18, %s5399_s9 }
  0x69   : > { %p5408_p11 = scmp.lt.u32.totalorder %s5399_s9, %s5885_s10 }
  0x6a   : > { %p5402_p4 = pnand %p5401_p3, %p5400_p6  ;;  %p5407_p8 = por %p5406_p2, %p5405_p12 }
  0x6c   : > { %p5403_p1 = pneg %p5402_p4  ;;  %p5409_p10 = por %p5408_p11, %p5407_p8 }
  0x6e   : > { %p5410_p0 = pnand %p5409_p10, %p5403_p1 }
  0x70   : > { %5413 = shalt.err (!%p5410_p0)
}
  0x71   : > { %s5414_s11 = scalar_lea.vmem %s5895_s5, 2048  ;;  %s5590_s12 = smov [#allocation3]  }
  0x72   : > { %p5415_p6 = scmp.ne.s32.totalorder %s5895_s5, %s5414_s11  ;;  %s5419_s30 = sshll.u32 %s5590_s12, 4  ;;  %s5420_s30 = int_to_ptr.vmem [resolvable:$false] %s5419_s30 }
  0x73   : > { %s5421_s24 = scalar_lea.vmem %s5420_s30, 4096  ;;  %p5422_p7 = scmp.lt.s32.totalorder %s5895_s5, %s5420_s30 }
  0x74   : > { %p5417_p4 = pnand %p5415_p6, %p5401_p3  ;;  %p5423_p12 = scmp.lt.s32.totalorder %s5421_s24, %s5414_s11 }
  0x76   : > { %p5418_p5 = pneg %p5417_p4  ;;  %p5424_p2 = por %p5423_p12, %p5422_p7 }
  0x78   : > { %p5425_p11 = pnand %p5424_p2, %p5418_p5 }
  0x7a   : > { %5428 = shalt.err (!%p5425_p11)
}
  0x7b   : > { %s7731_s9 = smov 8   ;;  %s7732_s18 = smov 128  }
  0x7c   : > { %5037 = dma.hbm_to_vmem [thread:$0]  (!%p5891_p13), %s5885_s10, 2048, %s5895_s5, %s5897_s3, %s7732_s18, %s7732_s18, %s7731_s9  }
  0x7d   : > { %s5429_s4 = scalar_lea.hbm %s5798_s15, 2048  ;;  %p7733_p7 = pneg %p5791_p9 }
  0x7e   : > { %p5430_p0 = scmp.ne.s32.totalorder %s5798_s15, %s5429_s4  ;;  %s5434_s12 = scalar_lea.hbm %s7716_s14, 4096 }
  0x7f   : > { %p5435_p3 = scmp.lt.u32.totalorder %s5798_s15, %s7716_s14  ;;  %p5436_p1 = scmp.lt.u32.totalorder %s5434_s12, %s5429_s4 }
  0x80   : > { %p5432_p5 = pnand %p5430_p0, %p7733_p7  ;;  %p5438_p6 = scmp.lt.u32.totalorder %s5429_s4, %s5798_s15 }
  0x81   : > { %p5437_p8 = por %p5436_p1, %p5435_p3 }
  0x82   : > { %p5433_p10 = pneg %p5432_p5 }
  0x83   : > { %p5439_p4 = por %p5438_p6, %p5437_p8 }
  0x85   : > { %p5440_p12 = pnand %p5439_p4, %p5433_p10 }
  0x87   : > { %5443 = shalt.err (!%p5440_p12)
}
  0x88   : > { %s5444_s10 = scalar_lea.vmem %s5834_s7, 2048  ;;  %p7734_p2 = pmov %p7733_p7 }
  0x89   : > { %p5445_p13 = scmp.ne.s32.totalorder %s5834_s7, %s5444_s10  ;;  %s5591_s5 = smov [#allocation8]  }
  0x8a   : > { %s5449_s3 = sshll.u32 %s5591_s5, 4  ;;  %s5450_s3 = int_to_ptr.vmem [resolvable:$false] %s5449_s3 }
  0x8b   : > { %p5447_p11 = pnand %p5445_p13, %p7734_p2  ;;  %s5451_s9 = scalar_lea.vmem %s5450_s3, 4096 }
  0x8c   : > { %p5452_p7 = scmp.lt.s32.totalorder %s5834_s7, %s5450_s3  ;;  %p5453_p5 = scmp.lt.s32.totalorder %s5451_s9, %s5444_s10 }
  0x8d   : > { %p5448_p0 = pneg %p5447_p11 }
  0x8e   : > { %p5454_p3 = por %p5453_p5, %p5452_p7 }
  0x90   : > { %p5455_p1 = pnand %p5454_p3, %p5448_p0 }
  0x92   : > { %5458 = shalt.err (!%p5455_p1)
}
  0x93   : > { %s5592_s18 = smov 64   ;;  %s5593_s4 = smov 4  }
  0x94   : > { %5043 = dma.hbm_to_vmem [thread:$0]  (!%p5791_p9), %s5798_s15, 2048, %s5834_s7, %s5802_s29, %s5592_s18, %s5592_s18, %s5593_s4  }
  0x95   : > { %p7735_p10 = scmp.ne.s32.totalorder %s7717_s21, 0 }
  0x97   : > { %673 = sbr.rel (%p7735_p10) target bundleno = 1854 (0x73e), region = 92 }
  0x9e   : > { %s5955_s11 = sand.u32 1, %s5561_s0   ;;  %p7737_p8 = scmp.ne.s32.totalorder %s7722_s25, 0 }
  0x9f   : > { %7736 = sst [smem:[#allocation27_spill]] %s5955_s11  ;;  %s4578_s17 = sshll.u32 %s5955_s11, 7 }
  0xa0   : > { %s676_s12 = scalar_lea.sflag [#allocation4], %s5955_s11  ;;  %s5959_s30 = scalar_lea.vmem [#allocation3], %s4578_s17 }
  0xa1   : > { %5532 = dma.done.wait (%p7737_p8), %s676_s12, 2048  }
  0xa2   : > { %5534 = vsyncadd (%p7737_p8), %s676_s12, 4294965248  ;;  %s684_s7 = sand.u32 1, %s5748_s23   ;;  %s686_s29 = sand.u32 1, %s5549_s28  }
  0xa3   : > { %s4579_s26 = sshll.u32 %s686_s29, 7  ;;  %s685_s15 = scalar_lea.sflag [#allocation7], %s684_s7 }
  0xa4   : > { %s5967_s21 = scalar_lea.vmem [#allocation6], %s4579_s26  ;;  %p7738_p9 = scmp.ne.s32.totalorder %s7712_s6, 0 }
  0xa6   : > { %5536 = dma.done.wait (%p7738_p9), %s685_s15, 4096  }
  0xa7   : > { %5538 = vsyncadd (%p7738_p9), %s685_s15, 4294963200  ;;  %s4581_s25 = sshll.u32 %s5955_s11, 3  ;;  %s4582_s24 = sshll.u32 %s5573_s20, 3 }
  0xa8   : > { %p792_p6 = scmp.lt.s32.totalorder %s4582_s24, 15  ;;  %p797_p4 = scmp.lt.s32.totalorder %s5569_s1, 1 }
  0xa9   : > { %s7739_s3 = sld [smem:[#allocation28_spill]]  ;;  %s7742_s14 = sld [smem:[#allocation37_spill]] }
  0xaa   : > { %s7785_s24 = smov (!%p792_p6, %s4582_s24), 15  ;;  %s7741_s15 = sld [smem:[#allocation36_spill]] }
  0xab   : > { %s5977_s23 = scalar_select %p797_p4, %s5569_s1, 1 }
  0xac   : > { %s7743_s0 = sld [smem:[#allocation39_spill]]  ;;  %s7744_s2 = sld [smem:[#allocation41_spill]] }
  0xad   : > { %s4583_s9 = sshll.u32 %s5977_s23, 3  ;;  %s7745_s7 = sld [smem:[#allocation43_spill]] }
  0xae   : > { %s7746_s27 = sld [smem:[#allocation44_spill]]  ;;  %s7747_s5 = sld [smem:[#allocation45_spill]] }
  0xaf   : > { %s5982_s6 = scalar_lea.vmem %s7739_s3, %s7785_s24  ;;  %s5997_s22 = scalar_lea.vmem %s7742_s14, %s4583_s9 }
  0xb0   : > { %s5992_s8 = scalar_lea.vmem %s7741_s15, %s4583_s9  ;;  %s4585_s3 = sshll.u32 %s5977_s23, 1 }
  0xb1   : > { %s6021_s19 = scalar_lea.vmem [#allocation8], %s4579_s26  ;;  %p4586_p12 = scmp.ne.s32.totalorder %s5569_s1, 0 }
  0xb2   : > { %s810_s24 = scalar_lea.vmem %s7743_s0, %s5977_s23  ;;  %s6007_s18 = scalar_lea.vmem %s7744_s2, %s4585_s3  ;;  %v6027_v0 = vld [vmem:[%s5959_s30 + $0x10] sm:$0xff] (!%p4586_p12)  ;;  %v6030_v1 = vld [vmem:[%s5959_s30] sm:$0xff] (!%p4586_p12)  ;;  %v6035_v2 = vld [vmem:[%s5959_s30 + $0x18] sm:$0xff] (!%p4586_p12) }
  0xb3   : > { %s817_s29 = scalar_lea.vmem %s7745_s7, %s5977_s23  ;;  %s6023_s0 = scalar_lea.vmem [#allocation9], %s4581_s25  ;;  %851 = vadd.xlane.f32.xlu1 (!%p4586_p12), %v6027_v0  ;;  %847 = vadd.xlane.f32.xlu0 (!%p4586_p12), %v6030_v1  ;;  %v6038_v3 = vld [vmem:[%s5959_s30 + $0x8] sm:$0xff] (!%p4586_p12)  ;;  %v6046_v5 = vld [vmem:[%s5959_s30 + $0x20] sm:$0xff] (!%p4586_p12)  ;;  %v6051_v6 = vld [vmem:[%s5959_s30 + $0x38] sm:$0xff] (!%p4586_p12)  ;;  %v895_v17 = vmul.f32 (!%p4586_p12), %v6030_v1, %v6030_v1  ;;  %v898_v18 = vmul.f32 (!%p4586_p12), %v6035_v2, %v6035_v2  ;;  %v897_v19 = vmul.f32 (!%p4586_p12), %v6027_v0, %v6027_v0 }
  0xb4   : > { %s820_s10 = scalar_lea.vmem %s7746_s27, %s5977_s23  ;;  %s823_s11 = scalar_lea.vmem %s7747_s5, %s5977_s23  ;;  %v6043_v4 = vld [vmem:[%s5959_s30 + $0x28] sm:$0xff] (!%p4586_p12)  ;;  %v6054_v7 = vld [vmem:[%s5959_s30 + $0x30] sm:$0xff] (!%p4586_p12)  ;;  %v6062_v9 = vld [vmem:[%s5959_s30 + $0x40] sm:$0xff] (!%p4586_p12)  ;;  %v896_v16 = vmul.f32 (!%p4586_p12), %v6038_v3, %v6038_v3  ;;  %v899_v21 = vmul.f32 (!%p4586_p12), %v6046_v5, %v6046_v5  ;;  %v902_v22 = vmul.f32 (!%p4586_p12), %v6051_v6, %v6051_v6 }
  0xb5   : > { %828 = sbr.rel (%p4586_p12) target bundleno = 409 (0x199), region = 108  ;;  %v6059_v8 = vld [vmem:[%s5959_s30 + $0x48] sm:$0xff] (!%p4586_p12)  ;;  %v6067_v10 = vld [vmem:[%s5959_s30 + $0x58] sm:$0xff] (!%p4586_p12)  ;;  %v6070_v11 = vld [vmem:[%s5959_s30 + $0x50] sm:$0xff] (!%p4586_p12)  ;;  %v900_v20 = vmul.f32 (!%p4586_p12), %v6043_v4, %v6043_v4  ;;  %v901_v23 = vmul.f32 (!%p4586_p12), %v6054_v7, %v6054_v7  ;;  %v903_v25 = vmul.f32 (!%p4586_p12), %v6062_v9, %v6062_v9  ;;  %s7748_s16 = sld [smem:[#allocation30_spill]] (!%p4586_p12) }
  0xb6   : > { %v6075_v12 = vld [vmem:[%s5959_s30 + $0x68] sm:$0xff] (!%p4586_p12)  ;;  %v6078_v13 = vld [vmem:[%s5959_s30 + $0x60] sm:$0xff] (!%p4586_p12)  ;;  %v6083_v14 = vld [vmem:[%s5959_s30 + $0x78] sm:$0xff] (!%p4586_p12)  ;;  %v904_v24 = vmul.f32 (!%p4586_p12), %v6059_v8, %v6059_v8  ;;  %v906_v26 = vmul.f32 (!%p4586_p12), %v6067_v10, %v6067_v10  ;;  %v905_v27 = vmul.f32 (!%p4586_p12), %v6070_v11, %v6070_v11 }
  0xb7   : > { %853 = vadd.xlane.f32.xlu1 (!%p4586_p12), %v6035_v2  ;;  %849 = vadd.xlane.f32.xlu0 (!%p4586_p12), %v6038_v3  ;;  %v6086_v15 = vld [vmem:[%s5959_s30 + $0x70] sm:$0xff] (!%p4586_p12)  ;;  %v908_v28 = vmul.f32 (!%p4586_p12), %v6075_v12, %v6075_v12  ;;  %v907_v29 = vmul.f32 (!%p4586_p12), %v6078_v13, %v6078_v13  ;;  %v910_v30 = vmul.f32 (!%p4586_p12), %v6083_v14, %v6083_v14  ;;  %s7749_s30 = sld [smem:[#allocation31_spill]] (!%p4586_p12) }
  0xb8   : > { %v909_v31 = vmul.f32 (!%p4586_p12), %v6086_v15, %v6086_v15 }
  0xbb   : > { %857 = vadd.xlane.f32.xlu1 (!%p4586_p12), %v6043_v4  ;;  %855 = vadd.xlane.f32.xlu0 (!%p4586_p12), %v6046_v5 }
  0xbf   : > { %861 = vadd.xlane.f32.xlu1 %v6051_v6  ;;  %859 = vadd.xlane.f32.xlu0 %v6054_v7 }
  0xc3   : > { %865 = vadd.xlane.f32.xlu1 %v6059_v8  ;;  %863 = vadd.xlane.f32.xlu0 %v6062_v9 }
  0xc7   : > { %869 = vadd.xlane.f32.xlu1 %v6067_v10  ;;  %867 = vadd.xlane.f32.xlu0 %v6070_v11 }
  0xcb   : > { %873 = vadd.xlane.f32.xlu1 %v6075_v12  ;;  %871 = vadd.xlane.f32.xlu0 %v6078_v13 }
  0xcf   : > { %877 = vadd.xlane.f32.xlu1 %v6083_v14  ;;  %875 = vadd.xlane.f32.xlu0 %v6086_v15 }
  0xd3   : > { %913 = vadd.xlane.f32.xlu1 %v896_v16  ;;  %911 = vadd.xlane.f32.xlu0 %v895_v17 }
  0xd7   : > { %917 = vadd.xlane.f32.xlu1 %v898_v18  ;;  %915 = vadd.xlane.f32.xlu0 %v897_v19 }
  0xdb   : > { %921 = vadd.xlane.f32.xlu1 %v900_v20  ;;  %919 = vadd.xlane.f32.xlu0 %v899_v21 }
  0xdf   : > { %925 = vadd.xlane.f32.xlu1 %v902_v22  ;;  %923 = vadd.xlane.f32.xlu0 %v901_v23 }
  0xe3   : > { %929 = vadd.xlane.f32.xlu1 %v904_v24  ;;  %927 = vadd.xlane.f32.xlu0 %v903_v25 }
  0xe7   : > { %933 = vadd.xlane.f32.xlu1 %v906_v26  ;;  %931 = vadd.xlane.f32.xlu0 %v905_v27 }
  0xeb   : > { %937 = vadd.xlane.f32.xlu1 %v908_v28  ;;  %935 = vadd.xlane.f32.xlu0 %v907_v29 }
  0xef   : > { %941 = vadd.xlane.f32.xlu1 %v910_v30  ;;  %939 = vadd.xlane.f32.xlu0 %v909_v31 }
 0x140   : > { %v852_v32 = vpop.xlane.xlu1 %851  ;;  %v848_v33 = vpop.xlane.xlu0 %847 }
 0x141   : > { %v6134_v48 = vmul.f32 0.020833334, %v848_v33  ;;  %v6138_v50 = vmul.f32 0.020833334, %v852_v32 }
 0x143   : > { %v959_v54 = vmul.f32 %v6134_v48, %v6134_v48  ;;  %v961_v58 = vmul.f32 %v6138_v50, %v6138_v50  ;;  %v1009_v59 = vsub.f32 %v6027_v0, %v6138_v50  ;;  %v1007_v62 = vsub.f32 %v6030_v1, %v6134_v48 }
 0x144   : > { %v854_v34 = vpop.xlane.xlu1 %853  ;;  %v850_v35 = vpop.xlane.xlu0 %849 }
 0x145   : > { %v6136_v49 = vmul.f32 0.020833334, %v850_v35  ;;  %v6140_v51 = vmul.f32 0.020833334, %v854_v34 }
 0x147   : > { %v960_v55 = vmul.f32 %v6136_v49, %v6136_v49  ;;  %v962_v63 = vmul.f32 %v6140_v51, %v6140_v51  ;;  %v1010_v24 = vsub.f32 %v6035_v2, %v6140_v51  ;;  %v1008_v25 = vsub.f32 %v6038_v3, %v6136_v49 }
 0x148   : > { %v858_v36 = vpop.xlane.xlu1 %857  ;;  %v856_v37 = vpop.xlane.xlu0 %855 }
 0x149   : > { %v6154_v16 = vmul.f32 0.020833334, %v858_v36  ;;  %v6156_v17 = vmul.f32 0.020833334, %v856_v37 }
 0x14b   : > { %v964_v32 = vmul.f32 %v6154_v16, %v6154_v16  ;;  %v1012_v33 = vsub.f32 %v6043_v4, %v6154_v16  ;;  %v963_v34 = vmul.f32 %v6156_v17, %v6156_v17  ;;  %v1011_v35 = vsub.f32 %v6046_v5, %v6156_v17 }
 0x14c   : > { %v862_v38 = vpop.xlane.xlu1 %861  ;;  %v860_v39 = vpop.xlane.xlu0 %859 }
 0x14d   : > { %v6162_v26 = vmul.f32 0.020833334, %v862_v38  ;;  %v6164_v27 = vmul.f32 0.020833334, %v860_v39 }
 0x150   : > { %v866_v40 = vpop.xlane.xlu1 %865  ;;  %v864_v41 = vpop.xlane.xlu0 %863 }
 0x154   : > { %v6122_v42 = vpop.xlane.xlu1 %869  ;;  %v6124_v43 = vpop.xlane.xlu0 %867 }
 0x158   : > { %v6126_v44 = vpop.xlane.xlu1 %873  ;;  %v6128_v45 = vpop.xlane.xlu0 %871 }
 0x15c   : > { %v6130_v46 = vpop.xlane.xlu1 %877  ;;  %v6132_v47 = vpop.xlane.xlu0 %875 }
 0x160   : > { %v914_v52 = vpop.xlane.xlu1 %913  ;;  %v912_v53 = vpop.xlane.xlu0 %911 }
 0x161   : > { %v944_v56 = vmul.f32 0.020833334, %v914_v52  ;;  %v943_v57 = vmul.f32 0.020833334, %v912_v53  ;;  %v966_v53 = vmul.f32 %v6162_v26, %v6162_v26 }
 0x163   : > { %v976_v60 = vsub.f32 %v944_v56, %v960_v55  ;;  %v975_v61 = vsub.f32 %v943_v57, %v959_v54  ;;  %v1014_v54 = vsub.f32 %v6051_v6, %v6162_v26  ;;  %v965_v56 = vmul.f32 %v6164_v27, %v6164_v27 }
 0x164   : > { %v918_v18 = vpop.xlane.xlu1 %917  ;;  %v916_v19 = vpop.xlane.xlu0 %915 }
 0x165   : > { %v992_v20 = vmax.f32 %v976_v60, 0.0  ;;  %v991_v21 = vmax.f32 %v975_v61, 0.0  ;;  %v946_v22 = vmul.f32 0.020833334, %v918_v18  ;;  %v945_v23 = vmul.f32 0.020833334, %v916_v19 }
 0x166   : > { %v1013_v61 = vsub.f32 %v6054_v7, %v6164_v27  ;;  %v6184_v18 = vmul.f32 0.020833334, %v864_v41 }
 0x167   : > { %v1024_v28 = vadd.f32 1e-12, %v992_v20  ;;  %v1023_v29 = vadd.f32 1e-12, %v991_v21  ;;  %v978_v30 = vsub.f32 %v946_v22, %v962_v63  ;;  %v977_v31 = vsub.f32 %v945_v23, %v961_v58 }
 0x168   : > { %v922_v36 = vpop.xlane.xlu1 %921  ;;  %v920_v37 = vpop.xlane.xlu0 %919  ;;  %v6182_v63 = vmul.f32 0.020833334, %v866_v40  ;;  %v6193_v40 = vmul.f32 0.020833334, %v6126_v44  ;;  %v1015_v26 = vsub.f32 %v6062_v9, %v6184_v18 }
 0x169   : > { %5146 = vrsqrt.f32 %v1024_v28  ;;  %v994_v38 = vmax.f32 %v978_v30, 0.0  ;;  %v993_v39 = vmax.f32 %v977_v31, 0.0  ;;  %v948_v52 = vmul.f32 0.020833334, %v922_v36 }
 0x16a   : > { %5148 = vrsqrt.f32 %v1023_v29  ;;  %v947_v55 = vmul.f32 0.020833334, %v920_v37  ;;  %v6187_v29 = vmul.f32 0.020833334, %v6122_v42  ;;  %v6190_v30 = vmul.f32 0.020833334, %v6124_v43 }
 0x16b   : > { %v1026_v57 = vadd.f32 1e-12, %v994_v38  ;;  %v1025_v58 = vadd.f32 1e-12, %v993_v39  ;;  %v980_v60 = vsub.f32 %v948_v52, %v964_v32  ;;  %v968_v36 = vmul.f32 %v6182_v63, %v6182_v63 }
 0x16c   : > { %v979_v19 = vsub.f32 %v947_v55, %v963_v34  ;;  %v926_v20 = vpop.xlane.xlu1 %925  ;;  %v924_v21 = vpop.xlane.xlu0 %923  ;;  %v967_v37 = vmul.f32 %v6184_v18, %v6184_v18  ;;  %v6200_v42 = vmul.f32 0.020833334, %v6128_v45  ;;  %v972_v45 = vmul.f32 %v6193_v40, %v6193_v40 }
 0x16d   : > { %5150 = vrsqrt.f32 %v1026_v57  ;;  %v996_v22 = vmax.f32 %v980_v60, 0.0  ;;  %v950_v23 = vmul.f32 0.020833334, %v926_v20  ;;  %v949_v28 = vmul.f32 0.020833334, %v924_v21 }
 0x16e   : > { %5152 = vrsqrt.f32 %v1025_v58  ;;  %v995_v31 = vmax.f32 %v979_v19, 0.0  ;;  %v6211_v60 = vld [vmem:[%s7748_s16] ss:$0 sm:$0xff] }
 0x16f   : > { %v1028_v41 = vadd.f32 1e-12, %v996_v22  ;;  %v982_v32 = vsub.f32 %v950_v23, %v966_v53  ;;  %v981_v34 = vsub.f32 %v949_v28, %v965_v56  ;;  %v970_v53 = vmul.f32 %v6187_v29, %v6187_v29 }
 0x170   : > { %v1027_v38 = vadd.f32 1e-12, %v995_v31  ;;  %v930_v43 = vpop.xlane.xlu1 %929  ;;  %v928_v39 = vpop.xlane.xlu0 %927  ;;  %v969_v56 = vmul.f32 %v6190_v30, %v6190_v30  ;;  %v971_v23 = vmul.f32 %v6200_v42, %v6200_v42  ;;  %v6216_v28 = vmul.f32 0.020833334, %v6130_v46 }
 0x171   : > { %5154 = vrsqrt.f32 %v1028_v41  ;;  %v998_v52 = vmax.f32 %v982_v32, 0.0  ;;  %v997_v55 = vmax.f32 %v981_v34, 0.0  ;;  %v952_v44 = vmul.f32 0.020833334, %v930_v43 }
 0x172   : > { %5156 = vrsqrt.f32 %v1027_v38  ;;  %v951_v57 = vmul.f32 0.020833334, %v928_v39  ;;  %v6224_v38 = vld [vmem:[%s7749_s30] ss:$0 sm:$0xff]  ;;  %v974_v51 = vmul.f32 %v6216_v28, %v6216_v28 }
 0x173   : > { %v5147_v58 = vpop.eup %5146  ;;  %v1030_v19 = vadd.f32 1e-12, %v998_v52  ;;  %v1029_v20 = vadd.f32 1e-12, %v997_v55  ;;  %v984_v21 = vsub.f32 %v952_v44, %v968_v36 }
 0x174   : > { %v5149_v22 = vpop.eup %5148  ;;  %v1056_v31 = vmul.f32 %v5147_v58, %v1008_v25  ;;  %v983_v41 = vsub.f32 %v951_v57, %v967_v37  ;;  %v934_v32 = vpop.xlane.xlu1 %933  ;;  %v6231_v37 = vmul.f32 0.020833334, %v6132_v47 }
 0x175   : > { %v932_v34 = vpop.xlane.xlu0 %931  ;;  %v1055_v36 = vmul.f32 %v5149_v22, %v1007_v62  ;;  %5158 = vrsqrt.f32 %v1030_v19  ;;  %v1000_v43 = vmax.f32 %v984_v21, 0.0  ;;  %v954_v46 = vmul.f32 0.020833334, %v934_v32 }
 0x176   : > { %v1078_v39 = vmul.f32 %v6211_v60, %v1056_v31  ;;  %5160 = vrsqrt.f32 %v1029_v20  ;;  %v999_v3 = vmax.f32 %v983_v41, 0.0  ;;  %v953_v49 = vmul.f32 0.020833334, %v932_v34 }
 0x177   : > { %v5151_v25 = vpop.eup %5150  ;;  %v1077_v52 = vmul.f32 %v6211_v60, %v1055_v36  ;;  %v1032_v55 = vadd.f32 1e-12, %v1000_v43  ;;  %v986_v44 = vsub.f32 %v954_v46, %v970_v53  ;;  %v973_v16 = vmul.f32 %v6231_v37, %v6231_v37 }
 0x178   : > { %v5153_v57 = vpop.eup %5152  ;;  %v1100_v1 = vadd.f32 %v6224_v38, %v1078_v39  ;;  %v1058_v48 = vmul.f32 %v5151_v25, %v1010_v24  ;;  %v1031_v62 = vadd.f32 1e-12, %v999_v3  ;;  %v985_v58 = vsub.f32 %v953_v49, %v969_v56  ;;  %v938_v19 = vpop.xlane.xlu1 %937 }
 0x179   : > { %v936_v20 = vpop.xlane.xlu0 %935  ;;  %v1099_v21 = vadd.f32 %v6224_v38, %v1077_v52  ;;  %v1057_v47 = vmul.f32 %v5153_v57, %v1009_v59  ;;  %5162 = vrsqrt.f32 %v1032_v55  ;;  %v1002_v22 = vmax.f32 %v986_v44, 0.0 }
 0x17a   : > { %1116 = vst [vmem:[#allocation2 + $0x8] sm:$0xff] %v1100_v1  ;;  %v1080_v53 = vmul.f32 %v6211_v60, %v1058_v48  ;;  %5164 = vrsqrt.f32 %v1031_v62  ;;  %v1001_v31 = vmax.f32 %v985_v58, 0.0  ;;  %v956_v41 = vmul.f32 0.020833334, %v938_v19 }
 0x17b   : > { %v5155_v2 = vpop.eup %5154  ;;  %1115 = vst [vmem:[#allocation2] sm:$0xff] %v1099_v21  ;;  %v1079_v24 = vmul.f32 %v6211_v60, %v1057_v47  ;;  %v1034_v56 = vadd.f32 1e-12, %v1002_v22  ;;  %v955_v32 = vmul.f32 0.020833334, %v936_v20  ;;  %v1016_v19 = vsub.f32 %v6059_v8, %v6182_v63 }
 0x17c   : > { %v5157_v34 = vpop.eup %5156  ;;  %v1102_v0 = vadd.f32 %v6224_v38, %v1080_v53  ;;  %v1060_v50 = vmul.f32 %v5155_v2, %v1012_v33  ;;  %v1033_v59 = vadd.f32 1e-12, %v1001_v31  ;;  %v988_v36 = vsub.f32 %v956_v41, %v972_v45  ;;  %v942_v43 = vpop.xlane.xlu1 %941 }
 0x17d   : > { %v940_v46 = vpop.xlane.xlu0 %939  ;;  %v1101_v39 = vadd.f32 %v6224_v38, %v1079_v24  ;;  %v1059_v3 = vmul.f32 %v5157_v34, %v1011_v35  ;;  %5166 = vrsqrt.f32 %v1034_v56  ;;  %v987_v49 = vsub.f32 %v955_v32, %v971_v23 }
 0x17e   : > { %1118 = vst [vmem:[#allocation2 + $0x18] sm:$0xff] %v1102_v0  ;;  %v1082_v25 = vmul.f32 %v6211_v60, %v1060_v50  ;;  %5168 = vrsqrt.f32 %v1033_v59  ;;  %v1004_v52 = vmax.f32 %v988_v36, 0.0  ;;  %v958_v55 = vmul.f32 0.020833334, %v942_v43 }
 0x17f   : > { %v5159_v4 = vpop.eup %5158  ;;  %1117 = vst [vmem:[#allocation2 + $0x10] sm:$0xff] %v1101_v39  ;;  %v1081_v33 = vmul.f32 %v6211_v60, %v1059_v3  ;;  %v1003_v45 = vmax.f32 %v987_v49, 0.0  ;;  %v957_v44 = vmul.f32 0.020833334, %v940_v46  ;;  %v1018_v31 = vsub.f32 %v6067_v10, %v6187_v29 }
 0x180   : > { %v5161_v57 = vpop.eup %5160  ;;  %v1104_v5 = vadd.f32 %v6224_v38, %v1082_v25  ;;  %v1062_v17 = vmul.f32 %v5159_v4, %v1014_v54  ;;  %v1036_v35 = vadd.f32 1e-12, %v1004_v52  ;;  %v990_v23 = vsub.f32 %v958_v55, %v974_v51 }
 0x181   : > { %v1103_v1 = vadd.f32 %v6224_v38, %v1081_v33  ;;  %v1061_v48 = vmul.f32 %v5161_v57, %v1013_v61  ;;  %v1035_v62 = vadd.f32 1e-12, %v1003_v45  ;;  %v989_v58 = vsub.f32 %v957_v44, %v973_v16 }
 0x182   : > { %1120 = vst [vmem:[#allocation2 + $0x28] sm:$0xff] %v1104_v5  ;;  %v1084_v20 = vmul.f32 %v6211_v60, %v1062_v17  ;;  %5170 = vrsqrt.f32 %v1036_v35  ;;  %v1006_v21 = vmax.f32 %v990_v23, 0.0  ;;  %v1017_v41 = vsub.f32 %v6070_v11, %v6190_v30 }
 0x183   : > { %v5163_v6 = vpop.eup %5162  ;;  %1119 = vst [vmem:[#allocation2 + $0x20] sm:$0xff] %v1103_v1  ;;  %v1083_v54 = vmul.f32 %v6211_v60, %v1061_v48  ;;  %5172 = vrsqrt.f32 %v1035_v62  ;;  %v1005_v7 = vmax.f32 %v989_v58, 0.0  ;;  %v1020_v29 = vsub.f32 %v6075_v12, %v6193_v40 }
 0x184   : > { %v5165_v27 = vpop.eup %5164  ;;  %v1106_v61 = vadd.f32 %v6224_v38, %v1084_v20  ;;  %v1064_v47 = vmul.f32 %v5163_v6, %v1016_v19  ;;  %v1038_v22 = vadd.f32 1e-12, %v1006_v21  ;;  %v1019_v0 = vsub.f32 %v6078_v13, %v6200_v42 }
 0x185   : > { %v1105_v8 = vadd.f32 %v6224_v38, %v1083_v54  ;;  %v1063_v63 = vmul.f32 %v5165_v27, %v1015_v26  ;;  %v1037_v53 = vadd.f32 1e-12, %v1005_v7  ;;  %v1022_v39 = vsub.f32 %v6083_v14, %v6216_v28 }
 0x186   : > { %1122 = vst [vmem:[#allocation2 + $0x38] sm:$0xff] %v1106_v61  ;;  %v1086_v9 = vmul.f32 %v6211_v60, %v1064_v47  ;;  %5174 = vrsqrt.f32 %v1038_v22  ;;  %v1021_v3 = vsub.f32 %v6086_v15, %v6231_v37 }
 0x187   : > { %v5167_v18 = vpop.eup %5166  ;;  %1121 = vst [vmem:[#allocation2 + $0x30] sm:$0xff] %v1105_v8  ;;  %v1085_v2 = vmul.f32 %v6211_v60, %v1063_v63  ;;  %5176 = vrsqrt.f32 %v1037_v53 }
 0x188   : > { %v5169_v51 = vpop.eup %5168  ;;  %v1108_v24 = vadd.f32 %v6224_v38, %v1086_v9  ;;  %v1066_v56 = vmul.f32 %v5167_v18, %v1018_v31 }
 0x189   : > { %v1107_v32 = vadd.f32 %v6224_v38, %v1085_v2  ;;  %v1065_v34 = vmul.f32 %v5169_v51, %v1017_v41 }
 0x18a   : > { %1124 = vst [vmem:[#allocation2 + $0x48] sm:$0xff] %v1108_v24  ;;  %v1088_v10 = vmul.f32 %v6211_v60, %v1066_v56 }
 0x18b   : > { %1123 = vst [vmem:[#allocation2 + $0x40] sm:$0xff] %v1107_v32  ;;  %v1087_v11 = vmul.f32 %v6211_v60, %v1065_v34 }
 0x18c   : > { %v5171_v30 = vpop.eup %5170  ;;  %v1110_v50 = vadd.f32 %v6224_v38, %v1088_v10 }
 0x18d   : > { %v5173_v59 = vpop.eup %5172  ;;  %v1109_v36 = vadd.f32 %v6224_v38, %v1087_v11  ;;  %v1068_v43 = vmul.f32 %v5171_v30, %v1020_v29 }
 0x18e   : > { %1126 = vst [vmem:[#allocation2 + $0x58] sm:$0xff] %v1110_v50  ;;  %v1067_v46 = vmul.f32 %v5173_v59, %v1019_v0 }
 0x18f   : > { %1125 = vst [vmem:[#allocation2 + $0x50] sm:$0xff] %v1109_v36  ;;  %v1090_v12 = vmul.f32 %v6211_v60, %v1068_v43 }
 0x190   : > { %v5175_v40 = vpop.eup %5174  ;;  %v1089_v13 = vmul.f32 %v6211_v60, %v1067_v46 }
 0x191   : > { %v5177_v42 = vpop.eup %5176  ;;  %v1112_v49 = vadd.f32 %v6224_v38, %v1090_v12  ;;  %v1070_v25 = vmul.f32 %v5175_v40, %v1022_v39 }
 0x192   : > { %v1111_v52 = vadd.f32 %v6224_v38, %v1089_v13  ;;  %v1069_v55 = vmul.f32 %v5177_v42, %v1021_v3 }
 0x193   : > { %1128 = vst [vmem:[#allocation2 + $0x68] sm:$0xff] %v1112_v49  ;;  %v1092_v4 = vmul.f32 %v6211_v60, %v1070_v25 }
 0x194   : > { %1127 = vst [vmem:[#allocation2 + $0x60] sm:$0xff] %v1111_v52  ;;  %v1091_v14 = vmul.f32 %v6211_v60, %v1069_v55 }
 0x195   : > { %v1114_v28 = vadd.f32 %v6224_v38, %v1092_v4 }
 0x196   : > { %v1113_v16 = vadd.f32 %v6224_v38, %v1091_v14 }
 0x197   : > { %1130 = vst [vmem:[#allocation2 + $0x78] sm:$0xff] %v1114_v28 }
 0x198   : > { %1129 = vst [vmem:[#allocation2 + $0x70] sm:$0xff] %v1113_v16 }
 0x199 PF: > { %v6302_v15 = vld [vmem:[#allocation2] sm:$0xff]  ;;  %v6304_v37 = vld [vmem:[#allocation2 + $0x8] sm:$0xff]  ;;  %v6306_v33 = vld [vmem:[#allocation2 + $0x10] sm:$0xff]  ;;  %v5594_v45 = vmov 0.0   ;;  %vm5595_vm0 = vmmov 0   ;;  %s7750_s12 = sld [smem:[#allocation32_spill]] }
 0x19a   : > { %4834 = vmatprep.subr.bf16.mxu0 %v5594_v45  ;;  %4840 = vmatprep.subr.bf16.mxu1 %v5594_v45  ;;  %v6312_v60 = vpack.c.bf16 %v6304_v37, %v6302_v15  ;;  %v6314_v44 = vld [vmem:[#allocation2 + $0x18] sm:$0xff]  ;;  %v6322_v57 = vld [vmem:[#allocation2 + $0x20] sm:$0xff]  ;;  %v6324_v5 = vld [vmem:[#allocation2 + $0x28] sm:$0xff]  ;;  %vm1163_vm1 = vcmask 130048   ;;  %s7751_s3 = sld [smem:[#allocation33_spill]]  ;;  %vm1967_vm2 = vcmask 1043456  }
 0x19b   : > { %v1148_v38 = vpack.c.bf16 %v6314_v44, %v6306_v33  ;;  %4836 = vmatprep.mubr.msk.bf16.mxu0 %vm5595_vm0, %v5594_v45  ;;  %4842 = vmatprep.mubr.msk.bf16.mxu1 %vm5595_vm0, %v5594_v45  ;;  %v6326_v17 = vld [vmem:[#allocation2 + $0x30] sm:$0xff]  ;;  %v1149_v23 = vpack.c.bf16 %v6324_v5, %v6322_v57  ;;  %v6334_v1 = vld [vmem:[#allocation2 + $0x38] sm:$0xff]  ;;  %v6347_v58 = vld [vmem:[#allocation2 + $0x40] sm:$0xff]  ;;  %s7752_s25 = sld [smem:[#allocation35_spill]]  ;;  %vm1963_vm3 = vcmask 64512   ;;  %s7753_s4 = sld [smem:[#allocation34_spill]] }
 0x19c   : > { %4835 = vmatpush3.bf16.msra.mxu0 %v6312_v60  ;;  %v1150_v62 = vpack.c.bf16 %v6334_v1, %v6326_v17  ;;  %v1140_v19 = vld [vmem:[#allocation2 + $0x48] sm:$0xff]  ;;  %v1141_v20 = vld [vmem:[#allocation2 + $0x50] sm:$0xff]  ;;  %v1142_v21 = vld [vmem:[#allocation2 + $0x58] sm:$0xff]  ;;  %s7754_s17 = sld [smem:[#allocation38_spill]]  ;;  %p4674_p13 = scmp.ne.s32.totalorder %s5569_s1, 1 }
 0x19d   : > { %4841 = vmatpush3.bf16.msra.mxu1 %v1148_v38  ;;  %4846 = vmatprep.subr.bf16.mxu0 %v5594_v45  ;;  %v1151_v54 = vpack.c.bf16 %v1140_v19, %v6347_v58  ;;  %v1152_v7 = vpack.c.bf16 %v1142_v21, %v1141_v20  ;;  %v1143_v27 = vld [vmem:[#allocation2 + $0x60] sm:$0xff]  ;;  %v1144_v61 = vld [vmem:[#allocation2 + $0x68] sm:$0xff] }
 0x19e   : > { %4852 = vmatprep.subr.bf16.mxu1 %v5594_v45  ;;  %v1146_v22 = vld [vmem:[#allocation2 + $0x78] sm:$0xff]  ;;  %v1153_v53 = vpack.c.bf16 %v1144_v61, %v1143_v27 }
 0x19f   : > { %v1155_v35 = vld [vmem:[%s7750_s12] sm:$0xf]  ;;  %v1156_v48 = vld [vmem:[%s7750_s12 + $0x4] sm:$0xf]  ;;  %v1157_v6 = vld [vmem:[%s7750_s12 + $0x8] sm:$0xf] }
 0x1a0   : > { %4837 = vmatmul.mubr.msk.bf16.vlgmr.msra.gmra.mrb[0].mxu0 %vm1163_vm1, %v1155_v35  ;;  %4843 = vmatmul.mubr.msk.bf16.vlgmr.msra.gmra.mrb[0].mxu1 %vm1163_vm1, %v1156_v48  ;;  %v1158_v26 = vld [vmem:[%s7750_s12 + $0xc] sm:$0xf]  ;;  %v1145_v47 = vld [vmem:[#allocation2 + $0x70] sm:$0xff]  ;;  %v1161_v9 = vld [vmem:[%s7750_s12 + $0x18] sm:$0xf] }
 0x1a1   : > { %4847 = vmatpush3.bf16.msra.mxu0 %v1149_v23  ;;  %4853 = vmatpush3.bf16.msra.mxu1 %v1150_v62  ;;  %v1159_v8 = vld [vmem:[%s7750_s12 + $0x10] sm:$0xf]  ;;  %v1160_v63 = vld [vmem:[%s7750_s12 + $0x14] sm:$0xf]  ;;  %v1154_v31 = vpack.c.bf16 %v1146_v22, %v1145_v47  ;;  %v1162_v18 = vld [vmem:[%s7750_s12 + $0x1c] sm:$0xf] }
 0x1a2   : > { %4848 = vmatprep.mubr.msk.bf16.mxu0 %vm5595_vm0, %v5594_v45  ;;  %4854 = vmatprep.mubr.msk.bf16.mxu1 %vm5595_vm0, %v5594_v45  ;;  %v1508_v41 = vld [vmem:[%s7751_s3] sm:$0xf]  ;;  %v1509_v2 = vld [vmem:[%s7751_s3 + $0x4] sm:$0xf]  ;;  %v1510_v51 = vld [vmem:[%s7751_s3 + $0x8] sm:$0xf]  ;;  %s7755_s7 = scalar_lea.vmem %s7754_s17, %s5977_s23 }
 0x1a3   : > { %4858 = vmatprep.subr.bf16.mxu0 %v5594_v45  ;;  %4864 = vmatprep.subr.bf16.mxu1 %v5594_v45  ;;  %v1511_v24 = vld [vmem:[%s7751_s3 + $0xc] sm:$0xf]  ;;  %v1512_v56 = vld [vmem:[%s7751_s3 + $0x10] sm:$0xf]  ;;  %v1513_v32 = vld [vmem:[%s7751_s3 + $0x14] sm:$0xf] }
 0x1a4   : > { %v1514_v34 = vld [vmem:[%s7751_s3 + $0x18] sm:$0xf]  ;;  %v1515_v10 = vld [vmem:[%s7751_s3 + $0x1c] sm:$0xf] }
 0x1a8   : > { %4849 = vmatmul.mubr.msk.bf16.vlgmr.msra.gmra.mrb[4].mxu0 %vm1163_vm1, %v1157_v6  ;;  %4855 = vmatmul.mubr.msk.bf16.vlgmr.msra.gmra.mrb[4].mxu1 %vm1163_vm1, %v1158_v26  ;;  %v6462_v6 = vld [vmem:[%s5992_s8] sm:$0xff] }
 0x1a9   : > { %4859 = vmatpush3.bf16.msra.mxu0 %v1151_v54  ;;  %4865 = vmatpush3.bf16.msra.mxu1 %v1152_v7  ;;  %v6465_v26 = vld [vmem:[%s5997_s22] sm:$0xff] }
 0x1aa   : > { %4860 = vmatprep.mubr.msk.bf16.mxu0 %vm5595_vm0, %v5594_v45  ;;  %4866 = vmatprep.mubr.msk.bf16.mxu1 %vm5595_vm0, %v5594_v45 }
 0x1ab   : > { %4870 = vmatprep.subr.bf16.mxu0 %v5594_v45  ;;  %4876 = vmatprep.subr.bf16.mxu1 %v5594_v45 }
 0x1b0   : > { %4861 = vmatmul.mubr.msk.bf16.vlgmr.msra.gmra.mrb[8].mxu0 %vm1163_vm1, %v1159_v8  ;;  %4867 = vmatmul.mubr.msk.bf16.vlgmr.msra.gmra.mrb[8].mxu1 %vm1163_vm1, %v1160_v63 }
 0x1b1   : > { %4871 = vmatpush3.bf16.msra.mxu0 %v1153_v53  ;;  %4877 = vmatpush3.bf16.msra.mxu1 %v1154_v31 }
 0x1b2   : > { %4872 = vmatprep.mubr.msk.bf16.mxu0 %vm5595_vm0, %v5594_v45  ;;  %4878 = vmatprep.mubr.msk.bf16.mxu1 %vm5595_vm0, %v5594_v45 }
 0x1b3   : > { %4882 = vmatprep.subr.bf16.mxu0 %v5594_v45  ;;  %4888 = vmatprep.subr.bf16.mxu1 %v5594_v45 }
 0x1b8   : > { %4873 = vmatmul.mubr.msk.bf16.vlgmr.msra.gmra.mrb[12].mxu0 %vm1163_vm1, %v1161_v9  ;;  %4879 = vmatmul.mubr.msk.bf16.vlgmr.msra.gmra.mrb[12].mxu1 %vm1163_vm1, %v1162_v18 }
 0x1b9   : > { %4883 = vmatpush3.bf16.msra.mxu0 %v6312_v60  ;;  %4889 = vmatpush3.bf16.msra.mxu1 %v1148_v38 }
 0x1ba   : > { %4884 = vmatprep.mubr.msk.bf16.mxu0 %vm5595_vm0, %v5594_v45  ;;  %4890 = vmatprep.mubr.msk.bf16.mxu1 %vm5595_vm0, %v5594_v45 }
 0x1bb   : > { %4894 = vmatprep.subr.bf16.mxu0 %v5594_v45  ;;  %4900 = vmatprep.subr.bf16.mxu1 %v5594_v45 }
 0x1c0   : > { %4885 = vmatmul.mubr.msk.bf16.vlgmr.msra.gmra.mrb[16].mxu0 %vm1163_vm1, %v1508_v41  ;;  %4891 = vmatmul.mubr.msk.bf16.vlgmr.msra.gmra.mrb[16].mxu1 %vm1163_vm1, %v1509_v2 }
 0x1c1   : > { %4895 = vmatpush3.bf16.msra.mxu0 %v1149_v23  ;;  %4901 = vmatpush3.bf16.msra.mxu1 %v1150_v62 }
 0x1c2   : > { %4896 = vmatprep.mubr.msk.bf16.mxu0 %vm5595_vm0, %v5594_v45  ;;  %4902 = vmatprep.mubr.msk.bf16.mxu1 %vm5595_vm0, %v5594_v45 }
 0x1c3   : > { %4906 = vmatprep.subr.bf16.mxu0 %v5594_v45  ;;  %4912 = vmatprep.subr.bf16.mxu1 %v5594_v45 }
 0x1c8   : > { %4897 = vmatmul.mubr.msk.bf16.vlgmr.msra.gmra.mrb[20].mxu0 %vm1163_vm1, %v1510_v51  ;;  %4903 = vmatmul.mubr.msk.bf16.vlgmr.msra.gmra.mrb[20].mxu1 %vm1163_vm1, %v1511_v24 }
 0x1c9   : > { %4907 = vmatpush3.bf16.msra.mxu0 %v1151_v54  ;;  %4913 = vmatpush3.bf16.msra.mxu1 %v1152_v7 }
 0x1ca   : > { %4908 = vmatprep.mubr.msk.bf16.mxu0 %vm5595_vm0, %v5594_v45  ;;  %4914 = vmatprep.mubr.msk.bf16.mxu1 %vm5595_vm0, %v5594_v45 }
 0x1cb   : > { %4918 = vmatprep.subr.bf16.mxu0 %v5594_v45  ;;  %4924 = vmatprep.subr.bf16.mxu1 %v5594_v45 }
 0x1d0   : > { %4909 = vmatmul.mubr.msk.bf16.vlgmr.msra.gmra.mrb[24].mxu0 %vm1163_vm1, %v1512_v56  ;;  %4915 = vmatmul.mubr.msk.bf16.vlgmr.msra.gmra.mrb[24].mxu1 %vm1163_vm1, %v1513_v32 }
 0x1d1   : > { %4919 = vmatpush3.bf16.msra.mxu0 %v1153_v53  ;;  %4925 = vmatpush3.bf16.msra.mxu1 %v1154_v31 }
 0x1d2   : > { %4920 = vmatprep.mubr.msk.bf16.mxu0 %vm5595_vm0, %v5594_v45  ;;  %4926 = vmatprep.mubr.msk.bf16.mxu1 %vm5595_vm0, %v5594_v45 }
 0x1d3   : > { %4930 = vmatprep.subr.bf16.mxu0 %v5594_v45  ;;  %4936 = vmatprep.subr.bf16.mxu1 %v5594_v45 }
 0x1d8   : > { %4921 = vmatmul.mubr.msk.bf16.vlgmr.msra.gmra.mrb[28].mxu0 %vm1163_vm1, %v1514_v34  ;;  %4927 = vmatmul.mubr.msk.bf16.vlgmr.msra.gmra.mrb[28].mxu1 %vm1163_vm1, %v1515_v10 }
 0x1d9   : > { %4932 = vmatprep.mubr.msk.bf16.mxu0 %vm5595_vm0, %v5594_v45  ;;  %4938 = vmatprep.mubr.msk.bf16.mxu1 %vm5595_vm0, %v5594_v45 }
 0x273   : > { %v1201_v29 = vpop.f32.mrb[0].mxu0  ;;  %v1244_v30 = vpop.f32.mrb[0].mxu1 }
 0x274   : > { %v4838_v11 = vpop.f32.mrb[1].mxu0  ;;  %v4844_v50 = vpop.f32.mrb[1].mxu1  ;;  %v1862_v7 = vmul.f32 %v6462_v6, %v1201_v29  ;;  %v1894_v27 = vmul.f32 %v6465_v26, %v1201_v29  ;;  %v1863_v63 = vmul.f32 %v6462_v6, %v1244_v30  ;;  %v1895_v53 = vmul.f32 %v6465_v26, %v1244_v30 }
 0x275   : > { %v1204_v0 = vpop.f32.mrb[2].mxu0  ;;  %v1247_v36 = vpop.f32.mrb[2].mxu1 }
 0x276   : > { %v4839_v59 = vpop.f32.mrb[3].mxu0  ;;  %v4845_v43 = vpop.f32.mrb[3].mxu1  ;;  %v5178_v0 = vld [vmem:[%s7752_s25] sm:$0xff]  }
 0x277   : > { %v5179_v43 = vld [vmem:[%s7752_s25 + $0x8] sm:$0xff]  }
 0x27b   : > { %v1287_v46 = vpop.f32.mrb[4].mxu0  ;;  %v6451_v12 = vpop.f32.mrb[4].mxu1 }
 0x27c   : > { %v4850_v39 = vpop.f32.mrb[5].mxu0  ;;  %v4856_v3 = vpop.f32.mrb[5].mxu1  ;;  %v1864_v50 = vmul.f32 %v6462_v6, %v1287_v46 }
 0x27d   : > { %v1290_v40 = vpop.f32.mrb[6].mxu0  ;;  %v1333_v42 = vpop.f32.mrb[6].mxu1  ;;  %v1896_v39 = vmul.f32 %v6465_v26, %v1287_v46 }
 0x27e   : > { %v4851_v13 = vpop.f32.mrb[7].mxu0  ;;  %v4857_v49 = vpop.f32.mrb[7].mxu1 }
 0x27f   : > { %v1865_v49 = vmul.f32 %v6462_v6, %v6451_v12 }
 0x283   : > { %v6453_v25 = vpop.f32.mrb[8].mxu0  ;;  %v6455_v55 = vpop.f32.mrb[8].mxu1 }
 0x284   : > { %v4862_v52 = vpop.f32.mrb[9].mxu0  ;;  %v4868_v14 = vpop.f32.mrb[9].mxu1 }
 0x285   : > { %v1376_v4 = vpop.f32.mrb[10].mxu0  ;;  %v1419_v16 = vpop.f32.mrb[10].mxu1  ;;  %v1897_v52 = vmul.f32 %v6465_v26, %v6451_v12 }
 0x286   : > { %v4863_v28 = vpop.f32.mrb[11].mxu0  ;;  %v4869_v60 = vpop.f32.mrb[11].mxu1 }
 0x28b   : > { %v6457_v38 = vpop.f32.mrb[12].mxu0  ;;  %v6459_v23 = vpop.f32.mrb[12].mxu1 }
 0x28c   : > { %v4874_v35 = vpop.f32.mrb[13].mxu0  ;;  %v4880_v62 = vpop.f32.mrb[13].mxu1 }
 0x28d   : > { %v1462_v48 = vpop.f32.mrb[14].mxu0  ;;  %v1505_v20 = vpop.f32.mrb[14].mxu1 }
 0x28e   : > { %v4875_v19 = vpop.f32.mrb[15].mxu0  ;;  %v4881_v21 = vpop.f32.mrb[15].mxu1 }
 0x293   : > { %v1553_v54 = vpop.f32.mrb[16].mxu0  ;;  %v1596_v22 = vpop.f32.mrb[16].mxu1 }
 0x294   : > { %v1870_v61 = vmul.f32 %v6465_v26, %v1553_v54  ;;  %v1902_v47 = vmul.f32 %v6462_v6, %v1553_v54  ;;  %v4886_v8 = vpop.f32.mrb[17].mxu0  ;;  %v1871_v31 = vmul.f32 %v6465_v26, %v1596_v22  ;;  %v1903_v9 = vmul.f32 %v6462_v6, %v1596_v22  ;;  %v4892_v41 = vpop.f32.mrb[17].mxu1  ;;  %v5181_v22 = vld [vmem:[%s7752_s25 + $0x18] sm:$0xff]  }
 0x295   : > { %v1556_v18 = vpop.f32.mrb[18].mxu0  ;;  %v1599_v56 = vpop.f32.mrb[18].mxu1  ;;  %v1898_v8 = vmul.f32 %v6465_v26, %v6453_v25  ;;  %v1899_v41 = vmul.f32 %v6465_v26, %v6455_v55 }
 0x296   : > { %v6475_v2 = vsub.f32 %v1862_v7, %v1870_v61  ;;  %v1910_v51 = vadd.f32 %v1902_v47, %v1894_v27  ;;  %v4887_v24 = vpop.f32.mrb[19].mxu0  ;;  %v6477_v32 = vsub.f32 %v1863_v63, %v1871_v31  ;;  %v1911_v34 = vadd.f32 %v1903_v9, %v1895_v53  ;;  %v4893_v10 = vpop.f32.mrb[19].mxu1  ;;  %v5180_v7 = vld [vmem:[%s7752_s25 + $0x10] sm:$0xff]  }
 0x297   : > { %v1866_v27 = vmul.f32 %v6462_v6, %v6453_v25  ;;  %v1867_v18 = vmul.f32 %v6462_v6, %v6455_v55 }
 0x298   : > { %v1918_v29 = vpack.c.bf16 %v1910_v51, %v1910_v51  ;;  %v1919_v11 = vpack.c.bf16 %v1911_v34, %v1911_v34 }
 0x29a   : > { %v1969_v30 = vsel %vm1967_vm2, %v1918_v29, 0  ;;  %v2021_v36 = vsel %vm1967_vm2, %v1919_v11, 0 }
 0x29b   : > { %v1639_v59 = vpop.f32.mrb[20].mxu0  ;;  %4931 = vmatpush3.bf16.msra.mxu0 %v1969_v30  ;;  %v1682_v13 = vpop.f32.mrb[20].mxu1  ;;  %4937 = vmatpush3.bf16.msra.mxu1 %v2021_v36 }
 0x29c   : > { %v1872_v40 = vmul.f32 %v6465_v26, %v1639_v59  ;;  %v1904_v3 = vmul.f32 %v6462_v6, %v1639_v59  ;;  %v4898_v42 = vpop.f32.mrb[21].mxu0  ;;  %4942 = vmatprep.subr.bf16.mxu0 %v5594_v45  ;;  %v1873_v4 = vmul.f32 %v6465_v26, %v1682_v13  ;;  %v1905_v14 = vmul.f32 %v6462_v6, %v1682_v13  ;;  %v4904_v28 = vpop.f32.mrb[21].mxu1  ;;  %v5183_v13 = vld [vmem:[%s7752_s25 + $0x28] sm:$0xff]  }
 0x29d   : > { %v1642_v46 = vpop.f32.mrb[22].mxu0  ;;  %4948 = vmatprep.subr.bf16.mxu1 %v5594_v45  ;;  %v1685_v48 = vpop.f32.mrb[22].mxu1  ;;  %v1900_v42 = vmul.f32 %v6465_v26, %v6457_v38  ;;  %v1901_v28 = vmul.f32 %v6465_v26, %v6459_v23 }
 0x29e   : > { %v6499_v16 = vsub.f32 %v1864_v50, %v1872_v40  ;;  %v1912_v60 = vadd.f32 %v1904_v3, %v1896_v39  ;;  %v4899_v35 = vpop.f32.mrb[23].mxu0  ;;  %4933 = vmatmul.mubr.msk.bf16.vlgmr.msra.gmra.mrb[32].mxu0 %vm1963_vm3, %v5178_v0  ;;  %v6502_v62 = vsub.f32 %v1865_v49, %v1873_v4  ;;  %v1913_v19 = vadd.f32 %v1905_v14, %v1897_v52  ;;  %v4905_v12 = vpop.f32.mrb[23].mxu1 }
 0x29f   : > { %4939 = vmatmul.mubr.msk.bf16.vlgmr.msra.gmra.mrb[32].mxu1 %vm1963_vm3, %v5179_v43  ;;  %4944 = vmatprep.mubr.msk.bf16.mxu0 %vm5595_vm0, %v5594_v45  ;;  %v5182_v43 = vld [vmem:[%s7752_s25 + $0x20] sm:$0xff]   ;;  %v1868_v39 = vmul.f32 %v6462_v6, %v6457_v38  ;;  %v1869_v46 = vmul.f32 %v6462_v6, %v6459_v23 }
 0x2a0   : > { %v1920_v20 = vpack.c.bf16 %v1912_v60, %v1912_v60  ;;  %4950 = vmatprep.mubr.msk.bf16.mxu1 %vm5595_vm0, %v5594_v45  ;;  %v1921_v21 = vpack.c.bf16 %v1913_v19, %v1913_v19 }
 0x2a2   : > { %v2073_v54 = vsel %vm1967_vm2, %v1920_v20, 0  ;;  %v2125_v47 = vsel %vm1967_vm2, %v1921_v21, 0 }
 0x2a3   : > { %v1725_v61 = vpop.f32.mrb[24].mxu0  ;;  %4943 = vmatpush3.bf16.msra.mxu0 %v2073_v54  ;;  %v1768_v31 = vpop.f32.mrb[24].mxu1  ;;  %4949 = vmatpush3.bf16.msra.mxu1 %v2125_v47  ;;  %v5184_v47 = vld [vmem:[%s7752_s25 + $0x30] sm:$0xff]  }
 0x2a4   : > { %v1874_v63 = vmul.f32 %v6465_v26, %v1725_v61  ;;  %v1906_v53 = vmul.f32 %v6462_v6, %v1725_v61  ;;  %v4910_v9 = vpop.f32.mrb[25].mxu0  ;;  %4954 = vmatprep.subr.bf16.mxu0 %v5594_v45  ;;  %v1875_v51 = vmul.f32 %v6465_v26, %v1768_v31  ;;  %v1907_v24 = vmul.f32 %v6462_v6, %v1768_v31  ;;  %v4916_v56 = vpop.f32.mrb[25].mxu1  ;;  %v5186_v31 = vld [vmem:[%s7753_s4] sm:$0xff]  }
 0x2a5   : > { %v1728_v25 = vpop.f32.mrb[26].mxu0  ;;  %4960 = vmatprep.subr.bf16.mxu1 %v5594_v45  ;;  %v1771_v11 = vpop.f32.mrb[26].mxu1  ;;  %v1889_v9 = vpack.c.bf16 %v6502_v62, %v6502_v62 }
 0x2a6   : > { %v6531_v34 = vsub.f32 %v1866_v27, %v1874_v63  ;;  %v1914_v10 = vadd.f32 %v1906_v53, %v1898_v8  ;;  %v4911_v29 = vpop.f32.mrb[27].mxu0  ;;  %4945 = vmatmul.mubr.msk.bf16.vlgmr.msra.gmra.mrb[36].mxu0 %vm1963_vm3, %v5180_v7  ;;  %v6534_v30 = vsub.f32 %v1867_v18, %v1875_v51  ;;  %v1915_v0 = vadd.f32 %v1907_v24, %v1899_v41  ;;  %v4917_v55 = vpop.f32.mrb[27].mxu1  ;;  %v5185_v63 = vld [vmem:[%s7752_s25 + $0x38] sm:$0xff]   ;;  %v5187_v18 = vld [vmem:[%s7753_s4 + $0x8] sm:$0xff]   ;;  %v5188_v51 = vld [vmem:[%s7753_s4 + $0x10] sm:$0xff]  }
 0x2a7   : > { %4951 = vmatmul.mubr.msk.bf16.vlgmr.msra.gmra.mrb[36].mxu1 %vm1963_vm3, %v5181_v22  ;;  %4956 = vmatprep.mubr.msk.bf16.mxu0 %vm5595_vm0, %v5594_v45  ;;  %v1886_v27 = vpack.c.bf16 %v6475_v2, %v6475_v2  ;;  %v1887_v22 = vpack.c.bf16 %v6477_v32, %v6477_v32  ;;  %v1888_v53 = vpack.c.bf16 %v6499_v16, %v6499_v16  ;;  %v2541_v16 = vsel %vm1967_vm2, %v1889_v9, 0  ;;  %v5189_v25 = vld [vmem:[%s7753_s4 + $0x18] sm:$0xff]   ;;  %v5190_v29 = vld [vmem:[%s7753_s4 + $0x20] sm:$0xff]  }
 0x2a8   : > { %v1922_v50 = vpack.c.bf16 %v1914_v10, %v1914_v10  ;;  %4962 = vmatprep.mubr.msk.bf16.mxu1 %vm5595_vm0, %v5594_v45  ;;  %v1923_v59 = vpack.c.bf16 %v1915_v0, %v1915_v0  ;;  %v1890_v62 = vpack.c.bf16 %v6531_v34, %v6531_v34  ;;  %v1891_v24 = vpack.c.bf16 %v6534_v30, %v6534_v30  ;;  %v5191_v30 = vld [vmem:[%s7753_s4 + $0x28] sm:$0xff]  }
 0x2a9   : > { %v2385_v2 = vsel %vm1967_vm2, %v1886_v27, 0  ;;  %v2437_v32 = vsel %vm1967_vm2, %v1887_v22, 0  ;;  %v2489_v41 = vsel %vm1967_vm2, %v1888_v53, 0 }
 0x2aa   : > { %v2177_v36 = vsel %vm1967_vm2, %v1922_v50, 0  ;;  %v2229_v3 = vsel %vm1967_vm2, %v1923_v59, 0  ;;  %v2593_v56 = vsel %vm1967_vm2, %v1890_v62, 0  ;;  %v2645_v34 = vsel %vm1967_vm2, %v1891_v24, 0  ;;  %v5192_v50 = vld [vmem:[%s7753_s4 + $0x30] sm:$0xff]   ;;  %v5193_v59 = vld [vmem:[%s7753_s4 + $0x38] sm:$0xff]  }
 0x2ab   : > { %v1811_v40 = vpop.f32.mrb[28].mxu0  ;;  %4955 = vmatpush3.bf16.msra.mxu0 %v2177_v36  ;;  %v1854_v4 = vpop.f32.mrb[28].mxu1  ;;  %4961 = vmatpush3.bf16.msra.mxu1 %v2229_v3 }
 0x2ac   : > { %v1876_v49 = vmul.f32 %v6465_v26, %v1811_v40  ;;  %v1908_v52 = vmul.f32 %v6462_v6, %v1811_v40  ;;  %v4922_v14 = vpop.f32.mrb[29].mxu0  ;;  %4966 = vmatprep.subr.bf16.mxu0 %v5594_v45  ;;  %v1877_v60 = vmul.f32 %v6465_v26, %v1854_v4  ;;  %v1909_v35 = vmul.f32 %v6462_v6, %v1854_v4  ;;  %v4928_v48 = vpop.f32.mrb[29].mxu1 }
 0x2ad   : > { %v1814_v38 = vpop.f32.mrb[30].mxu0  ;;  %4972 = vmatprep.subr.bf16.mxu1 %v5594_v45  ;;  %v1857_v21 = vpop.f32.mrb[30].mxu1 }
 0x2ae   : > { %v6563_v19 = vsub.f32 %v1868_v39, %v1876_v49  ;;  %v1916_v12 = vadd.f32 %v1908_v52, %v1900_v42  ;;  %v4923_v20 = vpop.f32.mrb[31].mxu0  ;;  %4957 = vmatmul.mubr.msk.bf16.vlgmr.msra.gmra.mrb[40].mxu0 %vm1963_vm3, %v5182_v43  ;;  %v6566_v54 = vsub.f32 %v1869_v46, %v1877_v60  ;;  %v1917_v7 = vadd.f32 %v1909_v35, %v1901_v28  ;;  %v4929_v23 = vpop.f32.mrb[31].mxu1 }
 0x2af   : > { %4963 = vmatmul.mubr.msk.bf16.vlgmr.msra.gmra.mrb[40].mxu1 %vm1963_vm3, %v5183_v13  ;;  %4968 = vmatprep.mubr.msk.bf16.mxu0 %vm5595_vm0, %v5594_v45 }
 0x2b0   : > { %v1924_v6 = vpack.c.bf16 %v1916_v12, %v1916_v12  ;;  %4974 = vmatprep.mubr.msk.bf16.mxu1 %vm5595_vm0, %v5594_v45  ;;  %v1925_v26 = vpack.c.bf16 %v1917_v7, %v1917_v7  ;;  %v1892_v10 = vpack.c.bf16 %v6563_v19, %v6563_v19  ;;  %v1893_v11 = vpack.c.bf16 %v6566_v54, %v6566_v54 }
 0x2b2   : > { %v2281_v61 = vsel %vm1967_vm2, %v1924_v6, 0  ;;  %v2333_v8 = vsel %vm1967_vm2, %v1925_v26, 0  ;;  %v2697_v0 = vsel %vm1967_vm2, %v1892_v10, 0  ;;  %v2749_v55 = vsel %vm1967_vm2, %v1893_v11, 0 }
 0x2b3   : > { %4967 = vmatpush3.bf16.msra.mxu0 %v2281_v61  ;;  %4973 = vmatpush3.bf16.msra.mxu1 %v2333_v8 }
 0x2b4   : > { %4978 = vmatprep.subr.bf16.mxu0 %v5594_v45  ;;  %4984 = vmatprep.subr.bf16.mxu1 %v5594_v45 }
 0x2b6   : > { %4969 = vmatmul.mubr.msk.bf16.vlgmr.msra.gmra.mrb[44].mxu0 %vm1963_vm3, %v5184_v47 }
 0x2b7   : > { %4975 = vmatmul.mubr.msk.bf16.vlgmr.msra.gmra.mrb[44].mxu1 %vm1963_vm3, %v5185_v63  ;;  %4979 = vmatpush3.bf16.msra.mxu0 %v2385_v2 }
 0x2b8   : > { %4985 = vmatpush3.bf16.msra.mxu1 %v2437_v32  ;;  %4980 = vmatprep.mubr.msk.bf16.mxu0 %vm5595_vm0, %v5594_v45 }
 0x2b9   : > { %4986 = vmatprep.mubr.msk.bf16.mxu1 %vm5595_vm0, %v5594_v45  ;;  %4990 = vmatprep.subr.bf16.mxu0 %v5594_v45 }
 0x2ba   : > { %4996 = vmatprep.subr.bf16.mxu1 %v5594_v45 }
 0x2be   : > { %4981 = vmatmul.mubr.msk.bf16.vlgmr.msra.gmra.mrb[48].mxu0 %vm1963_vm3, %v5186_v31 }
 0x2bf   : > { %4987 = vmatmul.mubr.msk.bf16.vlgmr.msra.gmra.mrb[48].mxu1 %vm1963_vm3, %v5187_v18  ;;  %4991 = vmatpush3.bf16.msra.mxu0 %v2489_v41 }
 0x2c0   : > { %4997 = vmatpush3.bf16.msra.mxu1 %v2541_v16  ;;  %4992 = vmatprep.mubr.msk.bf16.mxu0 %vm5595_vm0, %v5594_v45 }
 0x2c1   : > { %4998 = vmatprep.mubr.msk.bf16.mxu1 %vm5595_vm0, %v5594_v45  ;;  %5002 = vmatprep.subr.bf16.mxu0 %v5594_v45 }
 0x2c2   : > { %5008 = vmatprep.subr.bf16.mxu1 %v5594_v45 }
 0x2c6   : > { %4993 = vmatmul.mubr.msk.bf16.vlgmr.msra.gmra.mrb[52].mxu0 %vm1963_vm3, %v5188_v51 }
 0x2c7   : > { %4999 = vmatmul.mubr.msk.bf16.vlgmr.msra.gmra.mrb[52].mxu1 %vm1963_vm3, %v5189_v25  ;;  %5003 = vmatpush3.bf16.msra.mxu0 %v2593_v56 }
 0x2c8   : > { %5009 = vmatpush3.bf16.msra.mxu1 %v2645_v34  ;;  %5004 = vmatprep.mubr.msk.bf16.mxu0 %vm5595_vm0, %v5594_v45 }
 0x2c9   : > { %5010 = vmatprep.mubr.msk.bf16.mxu1 %vm5595_vm0, %v5594_v45  ;;  %5014 = vmatprep.subr.bf16.mxu0 %v5594_v45 }
 0x2ca   : > { %5020 = vmatprep.subr.bf16.mxu1 %v5594_v45 }
 0x2ce   : > { %5005 = vmatmul.mubr.msk.bf16.vlgmr.msra.gmra.mrb[56].mxu0 %vm1963_vm3, %v5190_v29 }
 0x2cf   : > { %5011 = vmatmul.mubr.msk.bf16.vlgmr.msra.gmra.mrb[56].mxu1 %vm1963_vm3, %v5191_v30  ;;  %5015 = vmatpush3.bf16.msra.mxu0 %v2697_v0 }
 0x2d0   : > { %5021 = vmatpush3.bf16.msra.mxu1 %v2749_v55  ;;  %5016 = vmatprep.mubr.msk.bf16.mxu0 %vm5595_vm0, %v5594_v45 }
 0x2d1   : > { %5022 = vmatprep.mubr.msk.bf16.mxu1 %vm5595_vm0, %v5594_v45 }
 0x2d6   : > { %5017 = vmatmul.mubr.msk.bf16.vlgmr.msra.gmra.mrb[60].mxu0 %vm1963_vm3, %v5192_v50 }
 0x2d7   : > { %5023 = vmatmul.mubr.msk.bf16.vlgmr.msra.gmra.mrb[60].mxu1 %vm1963_vm3, %v5193_v59 }
 0x371   : > { %v2005_v36 = vpop.f32.mrb[32].mxu0 }
 0x372   : > { %v4934_v43 = vpop.f32.mrb[33].mxu0  ;;  %v2057_v39 = vpop.f32.mrb[32].mxu1 }
 0x373   : > { %v2008_v40 = vpop.f32.mrb[34].mxu0  ;;  %v4940_v3 = vpop.f32.mrb[33].mxu1 }
 0x374   : > { %v4935_v13 = vpop.f32.mrb[35].mxu0  ;;  %v2060_v42 = vpop.f32.mrb[34].mxu1 }
 0x375   : > { %v4941_v45 = vpop.f32.mrb[35].mxu1 }
 0x379   : > { %v2109_v49 = vpop.f32.mrb[36].mxu0 }
 0x37a   : > { %v4946_v52 = vpop.f32.mrb[37].mxu0  ;;  %v2161_v4 = vpop.f32.mrb[36].mxu1 }
 0x37b   : > { %v2112_v14 = vpop.f32.mrb[38].mxu0  ;;  %v4952_v46 = vpop.f32.mrb[37].mxu1 }
 0x37c   : > { %v4947_v28 = vpop.f32.mrb[39].mxu0  ;;  %v2164_v60 = vpop.f32.mrb[38].mxu1 }
 0x37d   : > { %v4953_v35 = vpop.f32.mrb[39].mxu1 }
 0x381   : > { %v2213_v38 = vpop.f32.mrb[40].mxu0 }
 0x382   : > { %v4958_v48 = vpop.f32.mrb[41].mxu0  ;;  %v2265_v19 = vpop.f32.mrb[40].mxu1 }
 0x383   : > { %v2216_v12 = vpop.f32.mrb[42].mxu0  ;;  %v4964_v20 = vpop.f32.mrb[41].mxu1 }
 0x384   : > { %v4959_v21 = vpop.f32.mrb[43].mxu0  ;;  %v2268_v54 = vpop.f32.mrb[42].mxu1  ;;  %v5196_v20 = vld [vmem:[%s5967_s21 + $0x4] ss:$8 sps:$4 sm:$0xff]  }
 0x385   : > { %v4965_v7 = vpop.f32.mrb[43].mxu1  ;;  %3194 = vmatprep.subr.bf16.mxu0 %v5196_v20 }
 0x386   : > { %v5199_v7 = vld [vmem:[%s5967_s21 + $0x14] ss:$8 sps:$4 sm:$0xff]  }
 0x389   : > { %v6663_v23 = vpop.f32.mrb[44].mxu0 }
 0x38a   : > { %v4970_v6 = vpop.f32.mrb[45].mxu0  ;;  %v6665_v26 = vpop.f32.mrb[44].mxu1 }
 0x38b   : > { %v6667_v27 = vpop.f32.mrb[46].mxu0  ;;  %v4976_v61 = vpop.f32.mrb[45].mxu1 }
 0x38c   : > { %v4971_v47 = vpop.f32.mrb[47].mxu0  ;;  %v6669_v22 = vpop.f32.mrb[46].mxu1 }
 0x38d   : > { %v4977_v8 = vpop.f32.mrb[47].mxu1  ;;  %v5197_v47 = vld [vmem:[%s5967_s21 + $0x10] ss:$8 sps:$4 sm:$0xff]  }
 0x391   : > { %v2421_v63 = vpop.f32.mrb[48].mxu0 }
 0x392   : > { %v2422_v2 = vadd.f32 %v2421_v63, %v2005_v36  ;;  %v2473_v32 = vpop.f32.mrb[48].mxu1  ;;  %v4982_v53 = vpop.f32.mrb[49].mxu0 }
 0x393   : > { %v2474_v31 = vadd.f32 %v2473_v32, %v2057_v39  ;;  %v4988_v9 = vpop.f32.mrb[49].mxu1  ;;  %v2424_v18 = vpop.f32.mrb[50].mxu0 }
 0x394   : > { %v6672_v41 = vadd.f32 %v2422_v2, %v6302_v15  ;;  %v2425_v16 = vadd.f32 %v2424_v18, %v2008_v40  ;;  %v2476_v62 = vpop.f32.mrb[50].mxu1  ;;  %v4983_v51 = vpop.f32.mrb[51].mxu0 }
 0x395   : > { %v2477_v24 = vadd.f32 %v2476_v62, %v2060_v42  ;;  %v4989_v25 = vpop.f32.mrb[51].mxu1  ;;  %v5205_v62 = vld [vmem:[%s5967_s21 + $0x34] ss:$8 sps:$4 sm:$0xff]   ;;  %v5203_v51 = vld [vmem:[%s5967_s21 + $0x30] ss:$8 sps:$4 sm:$0xff]  }
 0x396   : > { %v6675_v56 = vadd.f32 %v2425_v16, %v6304_v37  ;;  %2810 = vadd.xlane.f32.xlu0 %v6672_v41  ;;  %v2858_v34 = vmul.f32 %v6672_v41, %v6672_v41  ;;  %v6684_v37 = vadd.f32 %v2474_v31, %v6306_v33  ;;  %v5362_v25 = vld [vmem:[#allocation2 + $0x48] sm:$0xff] }
 0x397   : > { %v6687_v3 = vadd.f32 %v2477_v24, %v6314_v44  ;;  %v5208_v24 = vld [vmem:[%s5967_s21 + $0x44] ss:$8 sps:$4 sm:$0xff]  }
 0x398   : > { %2874 = vadd.xlane.f32.xlu1 %v2858_v34  ;;  %v2859_v30 = vmul.f32 %v6675_v56, %v6675_v56  ;;  %v2860_v13 = vmul.f32 %v6684_v37, %v6684_v37 }
 0x399   : > { %v2525_v10 = vpop.f32.mrb[52].mxu0  ;;  %v2861_v52 = vmul.f32 %v6687_v3, %v6687_v3 }
 0x39a   : > { %v2526_v29 = vadd.f32 %v2525_v10, %v2109_v49  ;;  %v2577_v11 = vpop.f32.mrb[52].mxu1  ;;  %2812 = vadd.xlane.f32.xlu0 %v6675_v56  ;;  %v4994_v15 = vpop.f32.mrb[53].mxu0  ;;  %v5206_v10 = vld [vmem:[%s5967_s21 + $0x40] ss:$8 sps:$4 sm:$0xff]  }
 0x39b   : > { %v2578_v0 = vadd.f32 %v2577_v11, %v2161_v4  ;;  %v5000_v55 = vpop.f32.mrb[53].mxu1  ;;  %v2528_v50 = vpop.f32.mrb[54].mxu0  ;;  %v5209_v15 = vld [vmem:[%s5967_s21 + $0x50] ss:$8 sps:$4 sm:$0xff]  }
 0x39c   : > { %v2529_v59 = vadd.f32 %v2528_v50, %v2112_v14  ;;  %v2580_v36 = vpop.f32.mrb[54].mxu1  ;;  %2876 = vadd.xlane.f32.xlu1 %v2859_v30  ;;  %v4995_v43 = vpop.f32.mrb[55].mxu0  ;;  %v6698_v46 = vadd.f32 %v2526_v29, %v6322_v57  ;;  %v5363_v30 = vld [vmem:[#allocation2 + $0x50] sm:$0xff]  ;;  %v5214_v55 = vld [vmem:[%s5967_s21 + $0x64] ss:$8 sps:$4 sm:$0xff]   ;;  %v5364_v50 = vld [vmem:[#allocation2 + $0x58] sm:$0xff] }
 0x39d   : > { %v2581_v39 = vadd.f32 %v2580_v36, %v2164_v60  ;;  %v5001_v40 = vpop.f32.mrb[55].mxu1  ;;  %v6722_v32 = vadd.f32 %v2578_v0, %v6326_v17  ;;  %v5200_v17 = vld [vmem:[%s5967_s21 + $0x20] ss:$8 sps:$4 sm:$0xff]  }
 0x39e   : > { %2814 = vadd.xlane.f32.xlu0 %v6684_v37  ;;  %v6704_v21 = vadd.f32 %v2529_v59, %v6324_v5  ;;  %v2862_v57 = vmul.f32 %v6698_v46, %v6698_v46  ;;  %v5212_v36 = vld [vmem:[%s5967_s21 + $0x60] ss:$8 sps:$4 sm:$0xff]  }
 0x39f   : > { %v6730_v16 = vadd.f32 %v2581_v39, %v6334_v1  ;;  %v5217_v39 = vld [vmem:[%s5967_s21 + $0x74] ss:$8 sps:$4 sm:$0xff]  }
 0x3a0   : > { %2816 = vadd.xlane.f32.xlu1 %v6687_v3  ;;  %v2863_v61 = vmul.f32 %v6704_v21, %v6704_v21 }
 0x3a1   : > { %v2629_v42 = vpop.f32.mrb[56].mxu0 }
 0x3a2   : > { %v2630_v33 = vadd.f32 %v2629_v42, %v2213_v38  ;;  %v2681_v45 = vpop.f32.mrb[56].mxu1  ;;  %2878 = vadd.xlane.f32.xlu0 %v2860_v13  ;;  %v5006_v49 = vpop.f32.mrb[57].mxu0  ;;  %v5215_v13 = vld [vmem:[%s5967_s21 + $0x70] ss:$8 sps:$4 sm:$0xff]   ;;  %v5365_v42 = vld [vmem:[#allocation2 + $0x60] sm:$0xff] }
 0x3a3   : > { %v6695_v4 = vadd.f32 %v2681_v45, %v2265_v19  ;;  %v5012_v44 = vpop.f32.mrb[57].mxu1  ;;  %v2632_v14 = vpop.f32.mrb[58].mxu0  ;;  %v5194_v19 = vld [vmem:[%s5967_s21] ss:$8 sps:$4 sm:$0xff]  }
 0x3a4   : > { %v2633_v28 = vadd.f32 %v2632_v14, %v2216_v12  ;;  %v2684_v60 = vpop.f32.mrb[58].mxu1  ;;  %2880 = vadd.xlane.f32.xlu1 %v2861_v52  ;;  %v5007_v35 = vpop.f32.mrb[59].mxu0  ;;  %3195 = vmatpush1.bf16.msra.mxu0 %v5194_v19  ;;  %v6742_v1 = vadd.f32 %v2630_v33, %v6347_v58  ;;  %v5211_v58 = vld [vmem:[%s5967_s21 + $0x54] ss:$8 sps:$4 sm:$0xff]   ;;  %v5366_v45 = vld [vmem:[#allocation2 + $0x68] sm:$0xff]  ;;  %v5596_v52 = vmov 0  }
 0x3a5   : > { %v6700_v38 = vadd.f32 %v2684_v60, %v2268_v54  ;;  %v5013_v48 = vpop.f32.mrb[59].mxu1  ;;  %3196 = vmatprep.subr.bf16.mxu0 %v5199_v7  ;;  %v6757_v0 = vadd.f32 %v5363_v30, %v6695_v4  ;;  %3226 = vmatprep.mubr.bf16.mxu0 %v5596_v52  ;;  %v5367_v14 = vld [vmem:[#allocation2 + $0x70] sm:$0xff]  ;;  %v5368_v60 = vld [vmem:[#allocation2 + $0x78] sm:$0xff] }
 0x3a6   : > { %2818 = vadd.xlane.f32.xlu0 %v6698_v46  ;;  %v6745_v34 = vadd.f32 %v5362_v25, %v2633_v28  ;;  %v2866_v29 = vmul.f32 %v6742_v1, %v6742_v1 }
 0x3a7   : > { %v6761_v59 = vadd.f32 %v5364_v50, %v6700_v38  ;;  %v2868_v43 = vmul.f32 %v6757_v0, %v6757_v0 }
 0x3a8   : > { %2820 = vadd.xlane.f32.xlu1 %v6704_v21  ;;  %3197 = vmatpush1.bf16.msra.mxu0 %v5197_v47  ;;  %v2867_v11 = vmul.f32 %v6745_v34, %v6745_v34 }
 0x3a9   : > { %v2733_v12 = vpop.f32.mrb[60].mxu0  ;;  %v2869_v40 = vmul.f32 %v6761_v59, %v6761_v59 }
 0x3aa   : > { %v6713_v54 = vadd.f32 %v2733_v12, %v6663_v23  ;;  %v2785_v6 = vpop.f32.mrb[60].mxu1  ;;  %2882 = vadd.xlane.f32.xlu0 %v2862_v57  ;;  %v5018_v5 = vpop.f32.mrb[61].mxu0 }
 0x3ab   : > { %v6719_v8 = vadd.f32 %v2785_v6, %v6665_v26  ;;  %v5024_v63 = vpop.f32.mrb[61].mxu1  ;;  %v2736_v2 = vpop.f32.mrb[62].mxu0  ;;  %v5202_v26 = vld [vmem:[%s5967_s21 + $0x24] ss:$8 sps:$4 sm:$0xff]  }
 0x3ac   : > { %v2737_v23 = vadd.f32 %v2736_v2, %v6667_v27  ;;  %v2788_v53 = vpop.f32.mrb[62].mxu1  ;;  %2884 = vadd.xlane.f32.xlu1 %v2863_v61  ;;  %v5019_v31 = vpop.f32.mrb[63].mxu0  ;;  %3198 = vmatprep.subr.bf16.mxu0 %v5202_v26  ;;  %v2864_v27 = vmul.f32 %v6722_v32, %v6722_v32  ;;  %v6773_v33 = vadd.f32 %v5365_v42, %v6713_v54 }
 0x3ad   : > { %v6726_v9 = vadd.f32 %v2788_v53, %v6669_v22  ;;  %v5025_v18 = vpop.f32.mrb[63].mxu1  ;;  %3199 = vmatpush1.bf16.msra.mxu0 %v5200_v17  ;;  %v2865_v22 = vmul.f32 %v6730_v16, %v6730_v16  ;;  %v6785_v28 = vadd.f32 %v5367_v14, %v6719_v8 }
 0x3ae   : > { %2822 = vadd.xlane.f32.xlu0 %v6722_v32  ;;  %3200 = vmatprep.subr.bf16.mxu0 %v5205_v62  ;;  %v6775_v49 = vadd.f32 %v5366_v45, %v2737_v23  ;;  %v2870_v4 = vmul.f32 %v6773_v33, %v6773_v33 }
 0x3af   : > { %v6788_v35 = vadd.f32 %v5368_v60, %v6726_v9  ;;  %v2872_v38 = vmul.f32 %v6785_v28, %v6785_v28 }
 0x3b0   : > { %2824 = vadd.xlane.f32.xlu1 %v6730_v16  ;;  %v2871_v44 = vmul.f32 %v6775_v49, %v6775_v49 }
 0x3b1   : > { %3201 = vmatpush1.bf16.msra.mxu0 %v5203_v51  ;;  %v2873_v48 = vmul.f32 %v6788_v35, %v6788_v35 }
 0x3b2   : > { %2886 = vadd.xlane.f32.xlu0 %v2864_v27  ;;  %3202 = vmatprep.subr.bf16.mxu0 %v5208_v24 }
 0x3b4   : > { %2888 = vadd.xlane.f32.xlu1 %v2865_v22 }
 0x3b5   : > { %3203 = vmatpush1.bf16.msra.mxu0 %v5206_v10 }
 0x3b6   : > { %2826 = vadd.xlane.f32.xlu0 %v6742_v1  ;;  %3204 = vmatprep.subr.bf16.mxu0 %v5211_v58 }
 0x3b8   : > { %2828 = vadd.xlane.f32.xlu1 %v6745_v34 }
 0x3b9   : > { %3205 = vmatpush1.bf16.msra.mxu0 %v5209_v15 }
 0x3ba   : > { %2890 = vadd.xlane.f32.xlu0 %v2866_v29  ;;  %3206 = vmatprep.subr.bf16.mxu0 %v5214_v55 }
 0x3bc   : > { %2892 = vadd.xlane.f32.xlu1 %v2867_v11 }
 0x3bd   : > { %3207 = vmatpush1.bf16.msra.mxu0 %v5212_v36 }
 0x3be   : > { %2830 = vadd.xlane.f32.xlu0 %v6757_v0  ;;  %3208 = vmatprep.subr.bf16.mxu0 %v5217_v39 }
 0x3c0   : > { %2832 = vadd.xlane.f32.xlu1 %v6761_v59 }
 0x3c1   : > { %3209 = vmatpush1.bf16.msra.mxu0 %v5215_v13 }
 0x3c2   : > { %2894 = vadd.xlane.f32.xlu0 %v2868_v43 }
 0x3c4   : > { %2896 = vadd.xlane.f32.xlu1 %v2869_v40 }
 0x3c6   : > { %2834 = vadd.xlane.f32.xlu0 %v6773_v33 }
 0x3c8   : > { %2836 = vadd.xlane.f32.xlu1 %v6775_v49 }
 0x3ca   : > { %2898 = vadd.xlane.f32.xlu0 %v2870_v4 }
 0x3cc   : > { %2900 = vadd.xlane.f32.xlu1 %v2871_v44 }
 0x3ce   : > { %2838 = vadd.xlane.f32.xlu0 %v6785_v28 }
 0x3d0   : > { %2840 = vadd.xlane.f32.xlu1 %v6788_v35 }
 0x3d2   : > { %2902 = vadd.xlane.f32.xlu0 %v2872_v38 }
 0x3d4   : > { %2904 = vadd.xlane.f32.xlu1 %v2873_v48 }
 0x423   : > { %v2811_v20 = vpop.xlane.xlu0 %2810 }
 0x424   : > { %v2842_v19 = vmul.f32 0.020833334, %v2811_v20 }
 0x425   : > { %v2875_v57 = vpop.xlane.xlu1 %2874 }
 0x426   : > { %v2922_v12 = vmul.f32 %v2842_v19, %v2842_v19  ;;  %v2906_v7 = vmul.f32 0.020833334, %v2875_v57  ;;  %v2970_v36 = vsub.f32 %v6672_v41, %v2842_v19  ;;  %v6818_v41 = vld [vmem:[%s7755_s7] ss:$0 sm:$0xff] }
 0x427   : > { %v2813_v54 = vpop.xlane.xlu0 %2812 }
 0x428   : > { %v2938_v6 = vsub.f32 %v2906_v7, %v2922_v12  ;;  %v2843_v5 = vmul.f32 0.020833334, %v2813_v54 }
 0x429   : > { %v2877_v61 = vpop.xlane.xlu1 %2876 }
 0x42a   : > { %v2954_v47 = vmax.f32 %v2938_v6, 0.0  ;;  %v2923_v8 = vmul.f32 %v2843_v5, %v2843_v5  ;;  %v2907_v63 = vmul.f32 0.020833334, %v2877_v61  ;;  %v2971_v48 = vsub.f32 %v6675_v56, %v2843_v5 }
 0x42b   : > { %v2815_v2 = vpop.xlane.xlu0 %2814 }
 0x42c   : > { %v2986_v23 = vadd.f32 1e-12, %v2954_v47  ;;  %v2939_v53 = vsub.f32 %v2907_v63, %v2923_v8  ;;  %v6796_v31 = vmul.f32 0.020833334, %v2815_v2  ;;  %v6829_v63 = vld [vmem:[%s810_s24] ss:$0 sm:$0xff] }
 0x42d   : > { %v2817_v9 = vpop.xlane.xlu1 %2816 }
 0x42e   : > { %5234 = vrsqrt.f32 %v2986_v23  ;;  %v2955_v18 = vmax.f32 %v2939_v53, 0.0  ;;  %v6798_v26 = vmul.f32 0.020833334, %v2817_v9  ;;  %v2924_v62 = vmul.f32 %v6796_v31, %v6796_v31 }
 0x42f   : > { %v2879_v17 = vpop.xlane.xlu0 %2878 }
 0x430   : > { %v2987_v27 = vadd.f32 1e-12, %v2955_v18  ;;  %v2908_v22 = vmul.f32 0.020833334, %v2879_v17  ;;  %v2925_v24 = vmul.f32 %v6798_v26, %v6798_v26  ;;  %v2972_v18 = vsub.f32 %v6684_v37, %v6796_v31 }
 0x431   : > { %v2881_v51 = vpop.xlane.xlu1 %2880 }
 0x432   : > { %5236 = vrsqrt.f32 %v2987_v27  ;;  %v2940_v25 = vsub.f32 %v2908_v22, %v2924_v62  ;;  %v2909_v10 = vmul.f32 0.020833334, %v2881_v51 }
 0x433   : > { %v2819_v29 = vpop.xlane.xlu0 %2818 }
 0x434   : > { %v2956_v58 = vmax.f32 %v2940_v25, 0.0  ;;  %v2941_v11 = vsub.f32 %v2909_v10, %v2925_v24  ;;  %v6804_v15 = vmul.f32 0.020833334, %v2819_v29  ;;  %v2973_v10 = vsub.f32 %v6687_v3, %v6798_v26 }
 0x435   : > { %v2821_v30 = vpop.xlane.xlu1 %2820 }
 0x436   : > { %v2988_v55 = vadd.f32 1e-12, %v2956_v58  ;;  %v2957_v50 = vmax.f32 %v2941_v11, 0.0  ;;  %v6807_v43 = vmul.f32 0.020833334, %v2821_v30  ;;  %v2926_v42 = vmul.f32 %v6804_v15, %v6804_v15 }
 0x437   : > { %v2883_v39 = vpop.xlane.xlu0 %2882 }
 0x438   : > { %v5235_v40 = vpop.eup %5234  ;;  %5238 = vrsqrt.f32 %v2988_v55  ;;  %v2989_v13 = vadd.f32 1e-12, %v2957_v50  ;;  %v2910_v45 = vmul.f32 0.020833334, %v2883_v39  ;;  %v2927_v14 = vmul.f32 %v6807_v43, %v6807_v43 }
 0x439   : > { %v2885_v4 = vpop.xlane.xlu1 %2884  ;;  %v3018_v44 = vmul.f32 %v5235_v40, %v2970_v36 }
 0x43a   : > { %5240 = vrsqrt.f32 %v2989_v13  ;;  %v2942_v60 = vsub.f32 %v2910_v45, %v2926_v42  ;;  %v2911_v38 = vmul.f32 0.020833334, %v2885_v4 }
 0x43b   : > { %v2823_v20 = vpop.xlane.xlu0 %2822  ;;  %v3040_v61 = vmul.f32 %v6818_v41, %v3018_v44 }
 0x43c   : > { %v5237_v19 = vpop.eup %5236  ;;  %v2958_v57 = vmax.f32 %v2942_v60, 0.0  ;;  %v2943_v12 = vsub.f32 %v2911_v38, %v2927_v14  ;;  %v6821_v7 = vmul.f32 0.020833334, %v2823_v20  ;;  %v2974_v14 = vsub.f32 %v6698_v46, %v6804_v15 }
 0x43d   : > { %v2825_v54 = vpop.xlane.xlu1 %2824  ;;  %v3019_v6 = vmul.f32 %v5237_v19, %v2971_v48  ;;  %v6839_v27 = vadd.f32 %v6829_v63, %v3040_v61 }
 0x43e   : > { %v2990_v47 = vadd.f32 1e-12, %v2958_v57  ;;  %v2959_v8 = vmax.f32 %v2943_v12, 0.0  ;;  %v6831_v2 = vmul.f32 0.020833334, %v2825_v54  ;;  %v2928_v53 = vmul.f32 %v6821_v7, %v6821_v7 }
 0x43f   : > { %v2887_v56 = vpop.xlane.xlu0 %2886  ;;  %v3041_v5 = vmul.f32 %v6818_v41, %v3019_v6  ;;  %v2975_v54 = vsub.f32 %v6704_v21, %v6807_v43 }
 0x440   : > { %5242 = vrsqrt.f32 %v2990_v47  ;;  %v2991_v23 = vadd.f32 1e-12, %v2959_v8  ;;  %v2912_v9 = vmul.f32 0.020833334, %v2887_v56  ;;  %v2929_v51 = vmul.f32 %v6831_v2, %v6831_v2 }
 0x441   : > { %v2889_v17 = vpop.xlane.xlu1 %2888  ;;  %v6842_v62 = vadd.f32 %v6829_v63, %v3041_v5 }
 0x442   : > { %v5239_v22 = vpop.eup %5238  ;;  %5244 = vrsqrt.f32 %v2991_v23  ;;  %v2944_v24 = vsub.f32 %v2912_v9, %v2928_v53  ;;  %v2913_v25 = vmul.f32 0.020833334, %v2889_v17 }
 0x443   : > { %v2827_v29 = vpop.xlane.xlu0 %2826  ;;  %v3078_v37 = vpack.c.bf16 %v6842_v62, %v6839_v27  ;;  %v3020_v31 = vmul.f32 %v5239_v22, %v2972_v18 }
 0x444   : > { %v5241_v58 = vpop.eup %5240  ;;  %v2960_v11 = vmax.f32 %v2944_v24, 0.0  ;;  %v2945_v30 = vsub.f32 %v2913_v25, %v2929_v51  ;;  %v6850_v55 = vmul.f32 0.020833334, %v2827_v29  ;;  %v2976_v25 = vsub.f32 %v6722_v32, %v6821_v7 }
 0x445   : > { %3227 = vmatmul.mubr.bf16.vlgmr.msra.gmra.mrb[64].mxu0 %v3078_v37  ;;  %v2829_v50 = vpop.xlane.xlu1 %2828  ;;  %v3021_v36 = vmul.f32 %v5241_v58, %v2973_v10  ;;  %v3042_v39 = vmul.f32 %v6818_v41, %v3020_v31 }
 0x446   : > { %v2992_v40 = vadd.f32 1e-12, %v2960_v11  ;;  %v2961_v13 = vmax.f32 %v2945_v30, 0.0  ;;  %3236 = vmatprep.mubr.bf16.mxu0 %v5596_v52  ;;  %v6854_v3 = vmul.f32 0.020833334, %v2829_v50  ;;  %v2930_v4 = vmul.f32 %v6850_v55, %v6850_v55 }
 0x447   : > { %v2891_v26 = vpop.xlane.xlu0 %2890  ;;  %v3043_v42 = vmul.f32 %v6818_v41, %v3021_v36  ;;  %v6862_v38 = vadd.f32 %v6829_v63, %v3042_v39  ;;  %v2977_v50 = vsub.f32 %v6730_v16, %v6831_v2 }
 0x448   : > { %5246 = vrsqrt.f32 %v2992_v40  ;;  %v2993_v45 = vadd.f32 1e-12, %v2961_v13  ;;  %v2914_v44 = vmul.f32 0.020833334, %v2891_v26  ;;  %v2931_v19 = vmul.f32 %v6854_v3, %v6854_v3 }
 0x449   : > { %v2893_v60 = vpop.xlane.xlu1 %2892  ;;  %v6865_v48 = vadd.f32 %v6829_v63, %v3043_v42 }
 0x44a   : > { %v5243_v20 = vpop.eup %5242  ;;  %5248 = vrsqrt.f32 %v2993_v45  ;;  %v2946_v57 = vsub.f32 %v2914_v44, %v2930_v4  ;;  %v2915_v12 = vmul.f32 0.020833334, %v2893_v60 }
 0x44b   : > { %v2831_v6 = vpop.xlane.xlu0 %2830  ;;  %v3079_v46 = vpack.c.bf16 %v6865_v48, %v6862_v38  ;;  %v3022_v15 = vmul.f32 %v5243_v20, %v2974_v14 }
 0x44c   : > { %v5245_v61 = vpop.eup %5244  ;;  %v2962_v47 = vmax.f32 %v2946_v57, 0.0  ;;  %v2947_v8 = vsub.f32 %v2915_v12, %v2931_v19  ;;  %v6873_v56 = vmul.f32 0.020833334, %v2831_v6  ;;  %v2978_v12 = vsub.f32 %v6742_v1, %v6850_v55 }
 0x44d   : > { %3237 = vmatmul.mubr.bf16.gmra.mrb[68].mxu0 %v3079_v46  ;;  %v2833_v5 = vpop.xlane.xlu1 %2832  ;;  %v3023_v23 = vmul.f32 %v5245_v61, %v2975_v54  ;;  %v3044_v53 = vmul.f32 %v6818_v41, %v3022_v15 }
 0x44e   : > { %v2994_v9 = vadd.f32 1e-12, %v2962_v47  ;;  %v2963_v18 = vmax.f32 %v2947_v8, 0.0  ;;  %3246 = vmatprep.mubr.bf16.mxu0 %v5596_v52  ;;  %v6877_v21 = vmul.f32 0.020833334, %v2833_v5  ;;  %v2932_v51 = vmul.f32 %v6873_v56, %v6873_v56 }
 0x44f   : > { %v2895_v43 = vpop.xlane.xlu0 %2894  ;;  %v3045_v17 = vmul.f32 %v6818_v41, %v3023_v23  ;;  %v6885_v29 = vadd.f32 %v6829_v63, %v3044_v53  ;;  %v2979_v5 = vsub.f32 %v6745_v34, %v6854_v3 }
 0x450   : > { %5250 = vrsqrt.f32 %v2994_v9  ;;  %v2995_v22 = vadd.f32 1e-12, %v2963_v18  ;;  %v2916_v24 = vmul.f32 0.020833334, %v2895_v43  ;;  %v2933_v58 = vmul.f32 %v6877_v21, %v6877_v21 }
 0x451   : > { %v2897_v10 = vpop.xlane.xlu1 %2896  ;;  %v6888_v37 = vadd.f32 %v6829_v63, %v3045_v17 }
 0x452   : > { %v5247_v31 = vpop.eup %5246  ;;  %5252 = vrsqrt.f32 %v2995_v22  ;;  %v2948_v11 = vsub.f32 %v2916_v24, %v2932_v51  ;;  %v2917_v30 = vmul.f32 0.020833334, %v2897_v10 }
 0x453   : > { %v2835_v36 = vpop.xlane.xlu0 %2834  ;;  %v3080_v32 = vpack.c.bf16 %v6888_v37, %v6885_v29  ;;  %v3024_v7 = vmul.f32 %v5247_v31, %v2976_v25 }
 0x454   : > { %v5249_v39 = vpop.eup %5248  ;;  %v2964_v40 = vmax.f32 %v2948_v11, 0.0  ;;  %v2949_v13 = vsub.f32 %v2917_v30, %v2933_v58  ;;  %v6896_v26 = vmul.f32 0.020833334, %v2835_v36  ;;  %v2980_v30 = vsub.f32 %v6757_v0, %v6873_v56 }
 0x455   : > { %3247 = vmatmul.mubr.bf16.gmra.mrb[72].mxu0 %v3080_v32  ;;  %v2837_v42 = vpop.xlane.xlu1 %2836  ;;  %v3025_v45 = vmul.f32 %v5249_v39, %v2977_v50  ;;  %v3046_v4 = vmul.f32 %v6818_v41, %v3024_v7 }
 0x456   : > { %v2996_v44 = vadd.f32 1e-12, %v2964_v40  ;;  %v2965_v14 = vmax.f32 %v2949_v13, 0.0  ;;  %3256 = vmatprep.mubr.bf16.mxu0 %v5596_v52  ;;  %v6900_v16 = vmul.f32 0.020833334, %v2837_v42  ;;  %v2934_v19 = vmul.f32 %v6896_v26, %v6896_v26 }
 0x457   : > { %v2899_v2 = vpop.xlane.xlu0 %2898  ;;  %v3047_v60 = vmul.f32 %v6818_v41, %v3025_v45  ;;  %v6908_v6 = vadd.f32 %v6829_v63, %v3046_v4  ;;  %v2981_v42 = vsub.f32 %v6761_v59, %v6877_v21  ;;  %v2982_v59 = vsub.f32 %v6773_v33, %v6896_v26 }
 0x458   : > { %5254 = vrsqrt.f32 %v2996_v44  ;;  %v2997_v20 = vadd.f32 1e-12, %v2965_v14  ;;  %v2918_v57 = vmul.f32 0.020833334, %v2899_v2  ;;  %v2935_v61 = vmul.f32 %v6900_v16, %v6900_v16 }
 0x459   : > { %v2901_v54 = vpop.xlane.xlu1 %2900  ;;  %v6911_v46 = vadd.f32 %v6829_v63, %v3047_v60 }
 0x45a   : > { %v5251_v15 = vpop.eup %5250  ;;  %5256 = vrsqrt.f32 %v2997_v20  ;;  %v2950_v47 = vsub.f32 %v2918_v57, %v2934_v19  ;;  %v2919_v8 = vmul.f32 0.020833334, %v2901_v54 }
 0x45b   : > { %v2839_v23 = vpop.xlane.xlu0 %2838  ;;  %v3081_v1 = vpack.c.bf16 %v6911_v46, %v6908_v6  ;;  %v3026_v55 = vmul.f32 %v5251_v15, %v2978_v12  ;;  %v2983_v15 = vsub.f32 %v6775_v49, %v6900_v16 }
 0x45c   : > { %v5253_v53 = vpop.eup %5252  ;;  %v2966_v9 = vmax.f32 %v2950_v47, 0.0  ;;  %v2951_v18 = vsub.f32 %v2919_v8, %v2935_v61  ;;  %v2856_v43 = vmul.f32 0.020833334, %v2839_v23 }
 0x45d   : > { %3257 = vmatmul.mubr.bf16.gmra.mrb[76].mxu0 %v3081_v1  ;;  %v2841_v17 = vpop.xlane.xlu1 %2840  ;;  %v3027_v22 = vmul.f32 %v5253_v53, %v2979_v5  ;;  %v3048_v51 = vmul.f32 %v6818_v41, %v3026_v55 }
 0x45e   : > { %v2998_v24 = vadd.f32 1e-12, %v2966_v9  ;;  %v2967_v25 = vmax.f32 %v2951_v18, 0.0  ;;  %3266 = vmatprep.mubr.bf16.mxu0 %v5596_v52  ;;  %v2857_v10 = vmul.f32 0.020833334, %v2841_v17  ;;  %v2936_v58 = vmul.f32 %v2856_v43, %v2856_v43 }
 0x45f   : > { %v2903_v34 = vpop.xlane.xlu0 %2902  ;;  %v3049_v3 = vmul.f32 %v6818_v41, %v3027_v22  ;;  %v6925_v36 = vadd.f32 %v6829_v63, %v3048_v51  ;;  %v2984_v23 = vsub.f32 %v6785_v28, %v2856_v43 }
 0x460   : > { %5258 = vrsqrt.f32 %v2998_v24  ;;  %v2999_v31 = vadd.f32 1e-12, %v2967_v25  ;;  %v2920_v11 = vmul.f32 0.020833334, %v2903_v34  ;;  %v2937_v39 = vmul.f32 %v2857_v10, %v2857_v10  ;;  %v5218_v24 = vld [vmem:[%s6021_s19 + $0x40] sm:$0xff]   ;;  %v5224_v34 = vld [vmem:[%s6021_s19 + $0x58] sm:$0xff]  }
 0x461   : > { %v2905_v50 = vpop.xlane.xlu1 %2904  ;;  %v6928_v32 = vadd.f32 %v6829_v63, %v3049_v3  ;;  %v2985_v55 = vsub.f32 %v6788_v35, %v2857_v10  ;;  %v5219_v25 = vld [vmem:[%s6021_s19] sm:$0xff]   ;;  %4770 = vmatprep.subr.bf16.mxu1 %v5218_v24  ;;  %v5222_v10 = vld [vmem:[%s6021_s19 + $0x50] sm:$0xff]   ;;  %v5225_v3 = vld [vmem:[%s6021_s19 + $0x18] sm:$0xff]  }
 0x462   : > { %v5255_v7 = vpop.eup %5254  ;;  %5260 = vrsqrt.f32 %v2999_v31  ;;  %v2952_v40 = vsub.f32 %v2920_v11, %v2936_v58  ;;  %v2921_v13 = vmul.f32 0.020833334, %v2905_v50  ;;  %4771 = vmatpush3.bf16.msra.mxu1 %v5219_v25  ;;  %v5226_v31 = vld [vmem:[%s6021_s19 + $0x60] sm:$0xff]   ;;  %v5228_v11 = vld [vmem:[%s6021_s19 + $0x68] sm:$0xff]   ;;  %v5230_v50 = vld [vmem:[%s6021_s19 + $0x70] sm:$0xff]  }
 0x463   : > { %v3082_v45 = vpack.c.bf16 %v6928_v32, %v6925_v36  ;;  %v3028_v4 = vmul.f32 %v5255_v7, %v2980_v30  ;;  %v5227_v58 = vld [vmem:[%s6021_s19 + $0x20] sm:$0xff]   ;;  %v5229_v30 = vld [vmem:[%s6021_s19 + $0x28] sm:$0xff]   ;;  %v5231_v7 = vld [vmem:[%s6021_s19 + $0x30] sm:$0xff]  }
 0x464   : > { %v5257_v0 = vpop.eup %5256  ;;  %v2968_v56 = vmax.f32 %v2952_v40, 0.0  ;;  %v2953_v44 = vsub.f32 %v2921_v13, %v2937_v39  ;;  %v5232_v39 = vld [vmem:[%s6021_s19 + $0x78] sm:$0xff]   ;;  %v3104_v13 = vlaneseq }
 0x465   : > { %3267 = vmatmul.mubr.bf16.gmra.mrb[80].mxu0 %v3082_v45  ;;  %v3029_v14 = vmul.f32 %v5257_v0, %v2981_v42  ;;  %v3050_v2 = vmul.f32 %v6818_v41, %v3028_v4  ;;  %v5233_v40 = vld [vmem:[%s6021_s19 + $0x38] sm:$0xff]   ;;  %v3102_v4 = vld [vmem:[%s6007_s18] sm:$0x3] }
 0x466   : > { %v3000_v60 = vadd.f32 1e-12, %v2968_v56  ;;  %v2969_v20 = vmax.f32 %v2953_v44, 0.0  ;;  %3276 = vmatprep.mubr.bf16.mxu0 %v5596_v52  ;;  %v6989_v42 = vshrl.u32 %v3104_v13, 7 }
 0x467   : > { %v3051_v19 = vmul.f32 %v6818_v41, %v3029_v14  ;;  %v6940_v21 = vadd.f32 %v6829_v63, %v3050_v2 }
 0x468   : > { %5262 = vrsqrt.f32 %v3000_v60  ;;  %v3001_v57 = vadd.f32 1e-12, %v2969_v20  ;;  %v3106_v45 = vsub.s32 0, %v6989_v42  ;;  %v3110_v0 = vsub.s32 1, %v6989_v42 }
 0x469   : > { %v6943_v12 = vadd.f32 %v6829_v63, %v3051_v19 }
 0x46a   : > { %v5259_v54 = vpop.eup %5258  ;;  %5264 = vrsqrt.f32 %v3001_v57  ;;  %v6994_v56 = vrot.slane %v3102_v4, %v3106_v45  ;;  %v6996_v44 = vrot.slane %v3102_v4, %v3110_v0 }
 0x46b   : > { %v3083_v61 = vpack.c.bf16 %v6943_v12, %v6940_v21  ;;  %v3030_v47 = vmul.f32 %v5259_v54, %v2982_v59 }
 0x46c   : > { %v5261_v8 = vpop.eup %5260 }
 0x46d   : > { %3277 = vmatmul.mubr.bf16.gmra.mrb[84].mxu0 %v3083_v61  ;;  %v3031_v5 = vmul.f32 %v5261_v8, %v2983_v15  ;;  %v3052_v33 = vmul.f32 %v6818_v41, %v3030_v47 }
 0x46e   : > { %3286 = vmatprep.mubr.bf16.mxu0 %v5596_v52 }
 0x46f   : > { %v3053_v26 = vmul.f32 %v6818_v41, %v3031_v5  ;;  %v6954_v1 = vadd.f32 %v6829_v63, %v3052_v33 }
 0x471   : > { %v6957_v49 = vadd.f32 %v6829_v63, %v3053_v26 }
 0x472   : > { %v5263_v16 = vpop.eup %5262 }
 0x473   : > { %v3084_v53 = vpack.c.bf16 %v6957_v49, %v6954_v1  ;;  %v3032_v9 = vmul.f32 %v5263_v16, %v2984_v23 }
 0x474   : > { %v5265_v18 = vpop.eup %5264 }
 0x475   : > { %3287 = vmatmul.mubr.bf16.gmra.mrb[88].mxu0 %v3084_v53  ;;  %v3033_v28 = vmul.f32 %v5265_v18, %v2985_v55  ;;  %v3054_v43 = vmul.f32 %v6818_v41, %v3032_v9 }
 0x476   : > { %3296 = vmatprep.mubr.bf16.mxu0 %v5596_v52  ;;  %v5220_v52 = vld [vmem:[%s6021_s19 + $0x48] sm:$0xff]  }
 0x477   : > { %v3055_v17 = vmul.f32 %v6818_v41, %v3033_v28  ;;  %v6966_v22 = vadd.f32 %v6829_v63, %v3054_v43  ;;  %v5221_v41 = vld [vmem:[%s6021_s19 + $0x8] sm:$0xff]   ;;  %4772 = vmatprep.subr.bf16.mxu1 %v5220_v52 }
 0x478   : > { %4773 = vmatpush3.bf16.msra.mxu1 %v5221_v41 }
 0x479   : > { %v6969_v35 = vadd.f32 %v6829_v63, %v3055_v17  ;;  %v5223_v63 = vld [vmem:[%s6021_s19 + $0x10] sm:$0xff]   ;;  %4774 = vmatprep.subr.bf16.mxu1 %v5222_v10 }
 0x47b   : > { %v3085_v51 = vpack.c.bf16 %v6969_v35, %v6966_v22 }
 0x47c   : > { %4775 = vmatpush3.bf16.msra.mxu1 %v5223_v63 }
 0x47d   : > { %3297 = vmatmul.mubr.bf16.gmra.mrb[92].mxu0 %v3085_v51  ;;  %4776 = vmatprep.subr.bf16.mxu1 %v5224_v34 }
 0x480   : > { %4777 = vmatpush3.bf16.msra.mxu1 %v5225_v3 }
 0x481   : > { %4778 = vmatprep.subr.bf16.mxu1 %v5226_v31 }
 0x484   : > { %4779 = vmatpush3.bf16.msra.mxu1 %v5227_v58 }
 0x485   : > { %4780 = vmatprep.subr.bf16.mxu1 %v5228_v11 }
 0x488   : > { %4781 = vmatpush3.bf16.msra.mxu1 %v5229_v30 }
 0x489   : > { %4782 = vmatprep.subr.bf16.mxu1 %v5230_v50 }
 0x48c   : > { %4783 = vmatpush3.bf16.msra.mxu1 %v5231_v7 }
 0x48d   : > { %4784 = vmatprep.subr.bf16.mxu1 %v5232_v39 }
 0x490   : > { %4785 = vmatpush3.bf16.msra.mxu1 %v5233_v40 }
 0x518   : > { %v3228_v14 = vpop.f32.mrb[64].mxu0 }
 0x519   : > { %v3229_v2 = vadd.f32 %v3228_v14, %v6994_v56  ;;  %v3230_v60 = vpop.f32.mrb[65].mxu0 }
 0x51a   : > { %v7000_v20 = vadd.f32 %v3230_v60, %v6996_v44  ;;  %v3232_v19 = vpop.f32.mrb[66].mxu0 }
 0x51b   : > { %v3339_v57 = vmul.f32 0.044715, %v3229_v2  ;;  %v7003_v59 = vadd.f32 %v3232_v19, %v6994_v56  ;;  %v3234_v54 = vpop.f32.mrb[67].mxu0 }
 0x51c   : > { %v3340_v15 = vmul.f32 0.044715, %v7000_v20  ;;  %v7007_v61 = vadd.f32 %v3234_v54, %v6996_v44 }
 0x51d   : > { %v3371_v47 = vmul.f32 %v3339_v57, %v3229_v2  ;;  %v3341_v8 = vmul.f32 0.044715, %v7003_v59 }
 0x51e   : > { %v3372_v5 = vmul.f32 %v3340_v15, %v7000_v20  ;;  %v3342_v33 = vmul.f32 0.044715, %v7007_v61 }
 0x51f   : > { %v3403_v26 = vmul.f32 %v3371_v47, %v3229_v2  ;;  %v3373_v23 = vmul.f32 %v3341_v8, %v7003_v59 }
 0x520   : > { %v3404_v16 = vmul.f32 %v3372_v5, %v7000_v20  ;;  %v3374_v55 = vmul.f32 %v3342_v33, %v7007_v61  ;;  %v3238_v53 = vpop.f32.mrb[68].mxu0 }
 0x521   : > { %v3435_v9 = vadd.f32 %v3403_v26, %v3229_v2  ;;  %v3405_v18 = vmul.f32 %v3373_v23, %v7003_v59  ;;  %v7017_v28 = vadd.f32 %v3238_v53, %v6994_v56  ;;  %v3240_v43 = vpop.f32.mrb[69].mxu0  ;;  %v3307_v23 = vmul.f32 0.5, %v3229_v2 }
 0x522   : > { %v3406_v17 = vmul.f32 %v3374_v55, %v7007_v61  ;;  %v3241_v51 = vadd.f32 %v3240_v43, %v6996_v44  ;;  %v3242_v24 = vpop.f32.mrb[70].mxu0  ;;  %v3436_v25 = vadd.f32 %v3404_v16, %v7000_v20 }
 0x523   : > { %v3467_v52 = vmul.f32 0.7978846, %v3435_v9  ;;  %v3437_v41 = vadd.f32 %v3405_v18, %v7003_v59  ;;  %v3343_v10 = vmul.f32 0.044715, %v7017_v28  ;;  %v7025_v63 = vadd.f32 %v3242_v24, %v6994_v56  ;;  %v3244_v34 = vpop.f32.mrb[71].mxu0 }
 0x524   : > { %v3344_v3 = vmul.f32 0.044715, %v3241_v51  ;;  %v3245_v31 = vadd.f32 %v3244_v34, %v6996_v44  ;;  %v3438_v58 = vadd.f32 %v3406_v17, %v7007_v61  ;;  %v3468_v11 = vmul.f32 0.7978846, %v3436_v25 }
 0x525   : > { %5266 = vtanh.f32 %v3467_v52  ;;  %v3469_v30 = vmul.f32 0.7978846, %v3437_v41  ;;  %v3375_v50 = vmul.f32 %v3343_v10, %v7017_v28  ;;  %v3345_v7 = vmul.f32 0.044715, %v7025_v63 }
 0x526   : > { %v3376_v39 = vmul.f32 %v3344_v3, %v3241_v51  ;;  %v3346_v40 = vmul.f32 0.044715, %v3245_v31  ;;  %v3470_v13 = vmul.f32 0.7978846, %v3438_v58  ;;  %5268 = vtanh.f32 %v3468_v11 }
 0x527   : > { %5270 = vtanh.f32 %v3469_v30  ;;  %v3407_v45 = vmul.f32 %v3375_v50, %v7017_v28  ;;  %v3377_v4 = vmul.f32 %v3345_v7, %v7025_v63  ;;  %v3308_v17 = vmul.f32 0.5, %v7000_v20 }
 0x528   : > { %v3408_v0 = vmul.f32 %v3376_v39, %v3241_v51  ;;  %v3378_v14 = vmul.f32 %v3346_v40, %v3245_v31  ;;  %v3248_v60 = vpop.f32.mrb[72].mxu0  ;;  %5272 = vtanh.f32 %v3470_v13  ;;  %v3310_v3 = vmul.f32 0.5, %v7007_v61 }
 0x529   : > { %v3409_v19 = vmul.f32 %v3377_v4, %v7025_v63  ;;  %v3250_v57 = vpop.f32.mrb[73].mxu0  ;;  %v3439_v5 = vadd.f32 %v3407_v45, %v7017_v28  ;;  %v7039_v33 = vadd.f32 %v3248_v60, %v6994_v56  ;;  %v3309_v58 = vmul.f32 0.5, %v7003_v59 }
 0x52a   : > { %v3410_v54 = vmul.f32 %v3378_v14, %v3245_v31  ;;  %v7035_v15 = vadd.f32 %v3250_v57, %v6996_v44  ;;  %v3252_v47 = vpop.f32.mrb[74].mxu0  ;;  %v3440_v8 = vadd.f32 %v3408_v0, %v3241_v51  ;;  %v7056_v7 = vmul.f32 0.5, %v3241_v51 }
 0x52b   : > { %v3254_v26 = vpop.f32.mrb[75].mxu0  ;;  %v3441_v16 = vadd.f32 %v3409_v19, %v7025_v63  ;;  %v7047_v43 = vadd.f32 %v3252_v47, %v6994_v56  ;;  %v3471_v24 = vmul.f32 0.7978846, %v3439_v5  ;;  %v3347_v34 = vmul.f32 0.044715, %v7039_v33 }
 0x52c   : > { %v3348_v55 = vmul.f32 0.044715, %v7035_v15  ;;  %v7044_v53 = vadd.f32 %v3254_v26, %v6996_v44  ;;  %v3442_v9 = vadd.f32 %v3410_v54, %v3245_v31  ;;  %v3472_v18 = vmul.f32 0.7978846, %v3440_v8 }
 0x52d   : > { %v3473_v25 = vmul.f32 0.7978846, %v3441_v16  ;;  %v3314_v4 = vmul.f32 0.5, %v3245_v31  ;;  %v3349_v61 = vmul.f32 0.044715, %v7047_v43  ;;  %v3379_v51 = vmul.f32 %v3347_v34, %v7039_v33 }
 0x52e   : > { %v3380_v52 = vmul.f32 %v3348_v55, %v7035_v15  ;;  %v3350_v2 = vmul.f32 0.044715, %v7044_v53  ;;  %v3474_v41 = vmul.f32 0.7978846, %v3442_v9  ;;  %5274 = vtanh.f32 %v3472_v18 }
 0x52f   : > { %v5267_v10 = vpop.eup %5266  ;;  %5276 = vtanh.f32 %v3471_v24  ;;  %v3311_v31 = vmul.f32 0.5, %v7017_v28  ;;  %v3313_v18 = vmul.f32 0.5, %v7025_v63  ;;  %v7078_v28 = vmul.f32 0.5, %v7039_v33 }
 0x530   : > { %v5269_v11 = vpop.eup %5268  ;;  %v3382_v30 = vmul.f32 %v3350_v2, %v7044_v53  ;;  %v3258_v20 = vpop.f32.mrb[76].mxu0  ;;  %v3531_v50 = vadd.f32 1.0, %v5267_v10  ;;  %5278 = vtanh.f32 %v3474_v41  ;;  %v3412_v40 = vmul.f32 %v3380_v52, %v7035_v15 }
 0x531   : > { %v5271_v39 = vpop.eup %5270  ;;  %v3260_v13 = vpop.f32.mrb[77].mxu0  ;;  %v3532_v45 = vadd.f32 1.0, %v5269_v11  ;;  %5280 = vtanh.f32 %v3473_v25  ;;  %v7066_v57 = vadd.f32 %v3258_v20, %v6994_v56  ;;  %v3381_v25 = vmul.f32 %v3349_v61, %v7047_v43 }
 0x532   : > { %v5273_v0 = vpop.eup %5272  ;;  %v3414_v59 = vmul.f32 %v3382_v30, %v7044_v53  ;;  %v7062_v14 = vadd.f32 %v3260_v13, %v6996_v44  ;;  %v3262_v60 = vpop.f32.mrb[78].mxu0  ;;  %v3533_v19 = vadd.f32 1.0, %v5271_v39  ;;  %v3563_v26 = vmul.f32 %v3531_v50, %v3307_v23 }
 0x533   : > { %v3264_v54 = vpop.f32.mrb[79].mxu0  ;;  %v3534_v47 = vadd.f32 1.0, %v5273_v0  ;;  %v3564_v55 = vmul.f32 %v3532_v45, %v3308_v17  ;;  %v3444_v24 = vadd.f32 %v3412_v40, %v7035_v15  ;;  %v3351_v41 = vmul.f32 0.044715, %v7066_v57 }
 0x534   : > { %v3352_v8 = vmul.f32 0.044715, %v7062_v14  ;;  %v7071_v5 = vadd.f32 %v3264_v54, %v6996_v44  ;;  %v3565_v16 = vmul.f32 %v3533_v19, %v3309_v58  ;;  %v3446_v2 = vadd.f32 %v3414_v59, %v7044_v53 }
 0x535   : > { %v3566_v9 = vmul.f32 %v3534_v47, %v3310_v3  ;;  %v3476_v34 = vmul.f32 0.7978846, %v3444_v24  ;;  %v3411_v3 = vmul.f32 %v3379_v51, %v7039_v33  ;;  %v7085_v58 = vadd.f32 %v3262_v60, %v6994_v56 }
 0x536   : > { %v3595_v52 = vpack.c.bf16 %v3565_v16, %v3563_v26  ;;  %v3354_v10 = vmul.f32 0.044715, %v7071_v5  ;;  %v3384_v63 = vmul.f32 %v3352_v8, %v7062_v14  ;;  %v3478_v30 = vmul.f32 0.7978846, %v3446_v2 }
 0x537   : > { %v3596_v23 = vpack.c.bf16 %v3566_v9, %v3564_v55  ;;  %v7091_v13 = vmul.f32 0.5, %v7035_v15  ;;  %5282 = vtanh.f32 %v3476_v34  ;;  %v3413_v0 = vmul.f32 %v3381_v25, %v7047_v43 }
 0x538   : > { %v5275_v17 = vpop.eup %5274  ;;  %v3268_v11 = vpop.f32.mrb[80].mxu0  ;;  %5284 = vtanh.f32 %v3478_v30  ;;  %v3383_v51 = vmul.f32 %v3351_v41, %v7066_v57  ;;  %v3386_v54 = vmul.f32 %v3354_v10, %v7071_v5  ;;  %v3416_v26 = vmul.f32 %v3384_v63, %v7062_v14 }
 0x539   : > { %v5277_v20 = vpop.eup %5276  ;;  %v7088_v50 = vadd.f32 %v3268_v11, %v6994_v56  ;;  %v3270_v39 = vpop.f32.mrb[81].mxu0  ;;  %3778 = vmatprep.mubr.bf16.mxu1 %v3596_v23  ;;  %v3536_v40 = vadd.f32 1.0, %v5275_v17  ;;  %v3353_v16 = vmul.f32 0.044715, %v7085_v58  ;;  %v3443_v2 = vadd.f32 %v3411_v3, %v7039_v33 }
 0x53a   : > { %v5279_v45 = vpop.eup %5278  ;;  %v7095_v61 = vadd.f32 %v3270_v39, %v6996_v44  ;;  %v3272_v59 = vpop.f32.mrb[82].mxu0  ;;  %3779 = vmatmul.mubr.bf16.vlgmr.msra.gmra.mrb[64].mxu1 %v3595_v52  ;;  %v3535_v60 = vadd.f32 1.0, %v5277_v20  ;;  %v3445_v34 = vadd.f32 %v3413_v0, %v7047_v43  ;;  %v3418_v17 = vmul.f32 %v3386_v54, %v7071_v5 }
 0x53b   : > { %v5281_v19 = vpop.eup %5280  ;;  %v7100_v47 = vadd.f32 %v3272_v59, %v6994_v56  ;;  %v3274_v15 = vpop.f32.mrb[83].mxu0  ;;  %v3538_v8 = vadd.f32 1.0, %v5279_v45  ;;  %v3355_v55 = vmul.f32 0.044715, %v7088_v50  ;;  %v3568_v25 = vmul.f32 %v3536_v40, %v7056_v7 }
 0x53c   : > { %v3537_v9 = vadd.f32 1.0, %v5281_v19  ;;  %v3356_v24 = vmul.f32 0.044715, %v7095_v61  ;;  %v7109_v41 = vadd.f32 %v3274_v15, %v6996_v44  ;;  %v3567_v10 = vmul.f32 %v3535_v60, %v3311_v31 }
 0x53d   : > { %v3570_v52 = vmul.f32 %v3538_v8, %v3314_v4  ;;  %v3357_v63 = vmul.f32 0.044715, %v7100_v47  ;;  %v3475_v30 = vmul.f32 0.7978846, %v3443_v2  ;;  %v3385_v20 = vmul.f32 %v3353_v16, %v7085_v58 }
 0x53e   : > { %v3569_v23 = vmul.f32 %v3537_v9, %v3313_v18  ;;  %v3318_v4 = vmul.f32 0.5, %v7044_v53  ;;  %v3477_v33 = vmul.f32 0.7978846, %v3445_v34  ;;  %v3415_v3 = vmul.f32 %v3383_v51, %v7066_v57 }
 0x53f   : > { %v3598_v11 = vpack.c.bf16 %v3570_v52, %v3568_v25  ;;  %v3387_v31 = vmul.f32 %v3355_v55, %v7088_v50  ;;  %5286 = vtanh.f32 %v3475_v30  ;;  %v3388_v45 = vmul.f32 %v3356_v24, %v7095_v61 }
 0x540   : > { %v3278_v39 = vpop.f32.mrb[84].mxu0  ;;  %v3597_v7 = vpack.c.bf16 %v3569_v23, %v3567_v10  ;;  %v3358_v0 = vmul.f32 0.044715, %v7109_v41  ;;  %5288 = vtanh.f32 %v3477_v33  ;;  %v3389_v19 = vmul.f32 %v3357_v63, %v7100_v47 }
 0x541   : > { %v7119_v18 = vadd.f32 %v3278_v39, %v6994_v56  ;;  %v3280_v40 = vpop.f32.mrb[85].mxu0  ;;  %3786 = vmatprep.mubr.bf16.mxu1 %v3598_v11  ;;  %v5283_v53 = vpop.eup %5282  ;;  %v3317_v54 = vmul.f32 0.5, %v7047_v43  ;;  %v3448_v15 = vadd.f32 %v3416_v26, %v7062_v14  ;;  %v3450_v8 = vadd.f32 %v3418_v17, %v7071_v5 }
 0x542   : > { %v7124_v59 = vadd.f32 %v3280_v40, %v6996_v44  ;;  %v3282_v60 = vpop.f32.mrb[86].mxu0  ;;  %3787 = vmatmul.mubr.bf16.gmra.mrb[68].mxu1 %v3597_v7  ;;  %v5285_v16 = vpop.eup %5284  ;;  %v3417_v55 = vmul.f32 %v3385_v20, %v7085_v58  ;;  %v3540_v25 = vadd.f32 1.0, %v5283_v53  ;;  %v7138_v52 = vmul.f32 %v3387_v31, %v7088_v50 }
 0x543   : > { %v3284_v51 = vpop.f32.mrb[87].mxu0  ;;  %v7132_v9 = vadd.f32 %v3282_v60, %v6994_v56  ;;  %v3359_v2 = vmul.f32 0.044715, %v7119_v18  ;;  %v3542_v43 = vadd.f32 1.0, %v5285_v16  ;;  %v3480_v10 = vmul.f32 0.7978846, %v3448_v15 }
 0x544   : > { %v7135_v24 = vadd.f32 %v3284_v51, %v6996_v44  ;;  %v3420_v26 = vmul.f32 %v3388_v45, %v7095_v61  ;;  %v3390_v23 = vmul.f32 %v3358_v0, %v7109_v41  ;;  %v3360_v34 = vmul.f32 0.044715, %v7124_v59 }
 0x545   : > { %v3482_v17 = vmul.f32 0.7978846, %v3450_v8  ;;  %v7145_v63 = vmul.f32 %v3389_v19, %v7100_v47  ;;  %v3572_v11 = vmul.f32 %v3540_v25, %v7091_v13  ;;  %v3574_v30 = vmul.f32 %v3542_v43, %v3318_v4 }
 0x546   : > { %5290 = vtanh.f32 %v3480_v10  ;;  %v3361_v20 = vmul.f32 0.044715, %v7132_v9  ;;  %v3362_v39 = vmul.f32 0.044715, %v7135_v24  ;;  %v7151_v33 = vmul.f32 0.5, %v7062_v14 }
 0x547   : > { %5292 = vtanh.f32 %v3482_v17  ;;  %v3391_v31 = vmul.f32 %v3359_v2, %v7119_v18  ;;  %v3600_v0 = vpack.c.bf16 %v3574_v30, %v3572_v11  ;;  %v3447_v13 = vadd.f32 %v3415_v3, %v7066_v57 }
 0x548   : > { %v3288_v7 = vpop.f32.mrb[88].mxu0  ;;  %v3422_v4 = vmul.f32 %v3390_v23, %v7109_v41  ;;  %v3392_v60 = vmul.f32 %v3360_v34, %v7124_v59  ;;  %v3322_v19 = vmul.f32 0.5, %v7071_v5  ;;  %v3449_v14 = vadd.f32 %v3417_v55, %v7085_v58 }
 0x549   : > { %v7155_v40 = vadd.f32 %v3288_v7, %v6994_v56  ;;  %v3290_v45 = vpop.f32.mrb[89].mxu0  ;;  %v5287_v51 = vpop.eup %5286  ;;  %3794 = vmatprep.mubr.bf16.mxu1 %v3600_v0  ;;  %v7169_v3 = vmul.f32 0.5, %v7066_v57  ;;  %v3479_v25 = vmul.f32 0.7978846, %v3447_v13  ;;  %v3393_v43 = vmul.f32 %v3361_v20, %v7132_v9 }
 0x54a   : > { %v3292_v53 = vpop.f32.mrb[90].mxu0  ;;  %v7163_v15 = vadd.f32 %v3290_v45, %v6996_v44  ;;  %v5289_v2 = vpop.eup %5288  ;;  %v3394_v5 = vmul.f32 %v3362_v39, %v7135_v24  ;;  %v3539_v10 = vadd.f32 1.0, %v5287_v51  ;;  %v3481_v55 = vmul.f32 0.7978846, %v3449_v14 }
 0x54b   : > { %v7166_v8 = vadd.f32 %v3292_v53, %v6994_v56  ;;  %v3294_v16 = vpop.f32.mrb[91].mxu0  ;;  %v7174_v23 = vmul.f32 %v3391_v31, %v7119_v18  ;;  %v3541_v34 = vadd.f32 1.0, %v5289_v2  ;;  %5294 = vtanh.f32 %v3479_v25 }
 0x54c   : > { %v7177_v17 = vadd.f32 %v3294_v16, %v6996_v44  ;;  %v3424_v11 = vmul.f32 %v3392_v60, %v7124_v59  ;;  %v3363_v57 = vmul.f32 0.044715, %v7155_v40  ;;  %v3321_v30 = vmul.f32 0.5, %v7085_v58 }
 0x54d   : > { %5296 = vtanh.f32 %v3481_v55  ;;  %v3364_v20 = vmul.f32 0.044715, %v7163_v15  ;;  %v3571_v39 = vmul.f32 %v3539_v10, %v7078_v28  ;;  %v3573_v7 = vmul.f32 %v3541_v34, %v3317_v54 }
 0x54e   : > { %v3452_v31 = vadd.f32 %v3420_v26, %v7095_v61  ;;  %v3425_v45 = vmul.f32 %v3393_v43, %v7132_v9  ;;  %v3426_v0 = vmul.f32 %v3394_v5, %v7135_v24  ;;  %v3365_v13 = vmul.f32 0.044715, %v7166_v8 }
 0x54f   : > { %v3454_v60 = vadd.f32 %v3422_v4, %v7109_v41  ;;  %v3599_v51 = vpack.c.bf16 %v3573_v7, %v3571_v39  ;;  %v3366_v58 = vmul.f32 0.044715, %v7177_v17  ;;  %v3395_v26 = vmul.f32 %v3363_v57, %v7155_v40 }
 0x550   : > { %v3298_v53 = vpop.f32.mrb[92].mxu0  ;;  %v5291_v14 = vpop.eup %5290  ;;  %v3484_v54 = vmul.f32 0.7978846, %v3452_v31  ;;  %v3396_v4 = vmul.f32 %v3364_v20, %v7163_v15  ;;  %v3397_v7 = vmul.f32 %v3365_v13, %v7166_v8  ;;  %v3324_v57 = vmul.f32 0.5, %v7095_v61 }
 0x551   : > { %v7191_v16 = vadd.f32 %v3298_v53, %v6994_v56  ;;  %v3300_v28 = vpop.f32.mrb[93].mxu0  ;;  %v5293_v25 = vpop.eup %5292  ;;  %v3544_v43 = vadd.f32 1.0, %v5291_v14  ;;  %v3486_v10 = vmul.f32 0.7978846, %v3454_v60  ;;  %3795 = vmatmul.mubr.bf16.gmra.mrb[72].mxu1 %v3599_v51  ;;  %v3398_v53 = vmul.f32 %v3366_v58, %v7177_v17 }
 0x552   : > { %v7195_v2 = vadd.f32 %v3300_v28, %v6996_v44  ;;  %v3302_v5 = vpop.f32.mrb[94].mxu0  ;;  %v3546_v55 = vadd.f32 1.0, %v5293_v25  ;;  %5298 = vtanh.f32 %v3484_v54  ;;  %v3451_v13 = vadd.f32 %v7138_v52, %v7088_v50 }
 0x553   : > { %v7199_v34 = vadd.f32 %v3302_v5, %v6994_v56  ;;  %v3304_v39 = vpop.f32.mrb[95].mxu0  ;;  %5300 = vtanh.f32 %v3486_v10  ;;  %v3576_v20 = vmul.f32 %v3544_v43, %v7151_v33  ;;  %v3367_v56 = vmul.f32 0.044715, %v7191_v16 }
 0x554   : > { %v7203_v31 = vadd.f32 %v3304_v39, %v6996_v44  ;;  %v3368_v60 = vmul.f32 0.044715, %v7195_v2  ;;  %v3578_v14 = vmul.f32 %v3546_v55, %v3322_v19  ;;  %v3453_v44 = vadd.f32 %v7145_v63, %v7100_v47 }
 0x555   : > { %v5295_v28 = vpop.eup %5294  ;;  %v3427_v61 = vmul.f32 %v3395_v26, %v7155_v40  ;;  %v3428_v58 = vmul.f32 %v3396_v4, %v7163_v15  ;;  %v3326_v25 = vmul.f32 0.5, %v7109_v41  ;;  %v3429_v19 = vmul.f32 %v3397_v7, %v7166_v8 }
 0x556   : > { %v3370_v51 = vmul.f32 0.044715, %v7203_v31  ;;  %v3602_v54 = vpack.c.bf16 %v3578_v14, %v3576_v20  ;;  %v3369_v43 = vmul.f32 0.044715, %v7199_v34  ;;  %v3543_v5 = vadd.f32 1.0, %v5295_v28 }
 0x557   : > { %v5297_v33 = vpop.eup %5296  ;;  %v3483_v10 = vmul.f32 0.7978846, %v3451_v13  ;;  %v3400_v52 = vmul.f32 %v3368_v60, %v7195_v2  ;;  %v3485_v39 = vmul.f32 0.7978846, %v3453_v44  ;;  %v3430_v26 = vmul.f32 %v3398_v53, %v7177_v17 }
 0x558   : > { %3802 = vmatprep.mubr.bf16.mxu1 %v3602_v54  ;;  %v3545_v55 = vadd.f32 1.0, %v5297_v33  ;;  %v3402_v63 = vmul.f32 %v3370_v51, %v7203_v31  ;;  %v3399_v4 = vmul.f32 %v3367_v56, %v7191_v16  ;;  %v3456_v41 = vadd.f32 %v3424_v11, %v7124_v59 }
 0x559   : > { %5302 = vtanh.f32 %v3483_v10  ;;  %v3575_v7 = vmul.f32 %v3543_v5, %v7169_v3  ;;  %v3458_v14 = vadd.f32 %v3426_v0, %v7135_v24  ;;  %v3401_v60 = vmul.f32 %v3369_v43, %v7199_v34 }
 0x55a   : > { %v3577_v20 = vmul.f32 %v3545_v55, %v3321_v30  ;;  %5304 = vtanh.f32 %v3485_v39  ;;  %v3488_v13 = vmul.f32 0.7978846, %v3456_v41  ;;  %v3455_v51 = vadd.f32 %v7174_v23, %v7119_v18 }
 0x55b   : > { %v3457_v44 = vadd.f32 %v3425_v45, %v7132_v9  ;;  %v3432_v56 = vmul.f32 %v3400_v52, %v7195_v2  ;;  %v3434_v11 = vmul.f32 %v3402_v63, %v7203_v31  ;;  %v3490_v54 = vmul.f32 0.7978846, %v3458_v14 }
 0x55c   : > { %v5299_v53 = vpop.eup %5298  ;;  %v3601_v28 = vpack.c.bf16 %v3577_v20, %v3575_v7  ;;  %5306 = vtanh.f32 %v3488_v13  ;;  %v3487_v33 = vmul.f32 0.7978846, %v3455_v51  ;;  %v3460_v5 = vadd.f32 %v3428_v58, %v7163_v15 }
 0x55d   : > { %v5301_v3 = vpop.eup %5300  ;;  %v3548_v30 = vadd.f32 1.0, %v5299_v53  ;;  %v3489_v0 = vmul.f32 0.7978846, %v3457_v44  ;;  %5308 = vtanh.f32 %v3490_v54  ;;  %v3462_v23 = vadd.f32 %v3430_v26, %v7177_v17 }
 0x55e   : > { %3803 = vmatmul.mubr.bf16.gmra.mrb[76].mxu1 %v3601_v28  ;;  %v3550_v43 = vadd.f32 1.0, %v5301_v3  ;;  %5310 = vtanh.f32 %v3487_v33  ;;  %v3492_v52 = vmul.f32 0.7978846, %v3460_v5  ;;  %v3431_v63 = vmul.f32 %v3399_v4, %v7191_v16 }
 0x55f   : > { %v3580_v45 = vmul.f32 %v3548_v30, %v3324_v57  ;;  %5312 = vtanh.f32 %v3489_v0  ;;  %v3494_v55 = vmul.f32 0.7978846, %v3462_v23  ;;  %v3433_v39 = vmul.f32 %v3401_v60, %v7199_v34 }
 0x560   : > { %v3582_v10 = vmul.f32 %v3550_v43, %v3326_v25  ;;  %v3459_v41 = vadd.f32 %v3427_v61, %v7155_v40  ;;  %v3461_v7 = vadd.f32 %v3429_v19, %v7166_v8  ;;  %5314 = vtanh.f32 %v3492_v52 }
 0x561   : > { %v3464_v58 = vadd.f32 %v3432_v56, %v7195_v2  ;;  %v3466_v26 = vadd.f32 %v3434_v11, %v7203_v31  ;;  %v3323_v25 = vmul.f32 0.5, %v7088_v50  ;;  %5316 = vtanh.f32 %v3494_v55 }
 0x562   : > { %v3604_v20 = vpack.c.bf16 %v3582_v10, %v3580_v45  ;;  %v3491_v14 = vmul.f32 0.7978846, %v3459_v41  ;;  %v3493_v13 = vmul.f32 0.7978846, %v3461_v7  ;;  %v3325_v4 = vmul.f32 0.5, %v7100_v47 }
 0x563   : > { %v5303_v57 = vpop.eup %5302  ;;  %v3496_v61 = vmul.f32 0.7978846, %v3464_v58  ;;  %v3498_v44 = vmul.f32 0.7978846, %v3466_v26  ;;  %v3463_v53 = vadd.f32 %v3431_v63, %v7191_v16  ;;  %v3465_v56 = vadd.f32 %v3433_v39, %v7199_v34 }
 0x564   : > { %v5305_v51 = vpop.eup %5304  ;;  %3810 = vmatprep.mubr.bf16.mxu1 %v3604_v20  ;;  %v3547_v60 = vadd.f32 1.0, %v5303_v57  ;;  %5318 = vtanh.f32 %v3491_v14  ;;  %v3328_v33 = vmul.f32 0.5, %v7124_v59  ;;  %v3330_v5 = vmul.f32 0.5, %v7135_v24 }
 0x565   : > { %v3549_v19 = vadd.f32 1.0, %v5305_v51  ;;  %5320 = vtanh.f32 %v3493_v13  ;;  %v3495_v54 = vmul.f32 0.7978846, %v3463_v53  ;;  %v3497_v3 = vmul.f32 0.7978846, %v3465_v56 }
 0x566   : > { %v3579_v28 = vmul.f32 %v3547_v60, %v3323_v25  ;;  %v5307_v11 = vpop.eup %5306  ;;  %5322 = vtanh.f32 %v3496_v61  ;;  %v3327_v10 = vmul.f32 0.5, %v7119_v18  ;;  %v3329_v39 = vmul.f32 0.5, %v7132_v9 }
 0x567   : > { %v3581_v50 = vmul.f32 %v3549_v19, %v3325_v4  ;;  %v5309_v30 = vpop.eup %5308  ;;  %v3552_v47 = vadd.f32 1.0, %v5307_v11  ;;  %5324 = vtanh.f32 %v3498_v44  ;;  %v3332_v24 = vmul.f32 0.5, %v7163_v15 }
 0x568   : > { %v5311_v0 = vpop.eup %5310  ;;  %v3554_v23 = vadd.f32 1.0, %v5309_v30  ;;  %5326 = vtanh.f32 %v3495_v54  ;;  %v3334_v25 = vmul.f32 0.5, %v7177_v17  ;;  %v3331_v44 = vmul.f32 0.5, %v7155_v40 }
 0x569   : > { %v3603_v43 = vpack.c.bf16 %v3581_v50, %v3579_v28  ;;  %v5313_v45 = vpop.eup %5312  ;;  %v3551_v52 = vadd.f32 1.0, %v5311_v0  ;;  %5328 = vtanh.f32 %v3497_v3  ;;  %v3584_v55 = vmul.f32 %v3552_v47, %v3328_v33 }
 0x56a   : > { %v3586_v63 = vmul.f32 %v3554_v23, %v3330_v5  ;;  %v3553_v41 = vadd.f32 1.0, %v5313_v45  ;;  %v5315_v59 = vpop.eup %5314  ;;  %v3333_v19 = vmul.f32 0.5, %v7166_v8  ;;  %v3336_v15 = vmul.f32 0.5, %v7195_v2 }
 0x56b   : > { %3811 = vmatmul.mubr.bf16.gmra.mrb[80].mxu1 %v3603_v43  ;;  %v5317_v7 = vpop.eup %5316  ;;  %v3583_v58 = vmul.f32 %v3551_v52, %v3327_v10  ;;  %v3556_v57 = vadd.f32 1.0, %v5315_v59  ;;  %v3338_v3 = vmul.f32 0.5, %v7203_v31  ;;  %v3335_v40 = vmul.f32 0.5, %v7191_v16  ;;  %v7262_v16 = vld [vmem:[%s817_s29] ss:$0 sm:$0xff] }
 0x56c   : > { %v3606_v20 = vpack.c.bf16 %v3586_v63, %v3584_v55  ;;  %v3585_v26 = vmul.f32 %v3553_v41, %v3329_v39  ;;  %v3558_v14 = vadd.f32 1.0, %v5317_v7  ;;  %v3337_v8 = vmul.f32 0.5, %v7199_v34 }
 0x56d   : > { %v3588_v4 = vmul.f32 %v3556_v57, %v3332_v24 }
 0x56e   : > { %v5319_v18 = vpop.eup %5318  ;;  %3818 = vmatprep.mubr.bf16.mxu1 %v3606_v20  ;;  %v3605_v13 = vpack.c.bf16 %v3585_v26, %v3583_v58  ;;  %v3590_v60 = vmul.f32 %v3558_v14, %v3334_v25 }
 0x56f   : > { %v5321_v51 = vpop.eup %5320  ;;  %v3555_v61 = vadd.f32 1.0, %v5319_v18 }
 0x570   : > { %v5323_v9 = vpop.eup %5322  ;;  %v3557_v53 = vadd.f32 1.0, %v5321_v51  ;;  %v3608_v28 = vpack.c.bf16 %v3590_v60, %v3588_v4 }
 0x571   : > { %v5325_v56 = vpop.eup %5324  ;;  %v3560_v11 = vadd.f32 1.0, %v5323_v9  ;;  %v3587_v50 = vmul.f32 %v3555_v61, %v3331_v44 }
 0x572   : > { %v5327_v17 = vpop.eup %5326  ;;  %v3589_v54 = vmul.f32 %v3557_v53, %v3333_v19  ;;  %v3562_v30 = vadd.f32 1.0, %v5325_v56 }
 0x573   : > { %3819 = vmatmul.mubr.bf16.gmra.mrb[84].mxu1 %v3605_v13  ;;  %v5329_v33 = vpop.eup %5328  ;;  %v3559_v47 = vadd.f32 1.0, %v5327_v17  ;;  %v3592_v43 = vmul.f32 %v3560_v11, %v3336_v15 }
 0x574   : > { %3826 = vmatprep.mubr.bf16.mxu1 %v3608_v28  ;;  %v3607_v0 = vpack.c.bf16 %v3589_v54, %v3587_v50  ;;  %v3594_v5 = vmul.f32 %v3562_v30, %v3338_v3  ;;  %v3561_v2 = vadd.f32 1.0, %v5329_v33 }
 0x575   : > { %v3591_v45 = vmul.f32 %v3559_v47, %v3335_v40 }
 0x576   : > { %v3610_v23 = vpack.c.bf16 %v3594_v5, %v3592_v43  ;;  %v3593_v10 = vmul.f32 %v3561_v2, %v3337_v8 }
 0x578   : > { %v3609_v52 = vpack.c.bf16 %v3593_v10, %v3591_v45 }
 0x57b   : > { %3827 = vmatmul.mubr.bf16.gmra.mrb[88].mxu1 %v3607_v0 }
 0x57c   : > { %3834 = vmatprep.mubr.bf16.mxu1 %v3610_v23 }
 0x583   : > { %3835 = vmatmul.mubr.bf16.gmra.mrb[92].mxu1 %v3609_v52 }
 0x60d   : > { %v4786_v31 = vpop.f32.mrb[64].mxu1 }
 0x60e   : > { %v4787_v34 = vpop.f32.mrb[65].mxu1 }
 0x60f   : > { %v4788_v55 = vadd.f32 %v4787_v34, %v4786_v31  ;;  %v4789_v63 = vpop.f32.mrb[66].mxu1 }
 0x610   : > { %v4790_v39 = vpop.f32.mrb[67].mxu1 }
 0x611   : > { %v3781_v41 = vadd.f32 %v4788_v55, %v7262_v16  ;;  %v4791_v59 = vadd.f32 %v4790_v39, %v4789_v63 }
 0x613   : > { %v3784_v7 = vadd.f32 %v4791_v59, %v7262_v16  ;;  %v7267_v20 = vadd.f32 %v3781_v41, %v6839_v27 }
 0x615   : > { %v4792_v58 = vpop.f32.mrb[68].mxu1  ;;  %3861 = vadd.xlane.f32.xlu0 %v7267_v20  ;;  %v7271_v26 = vadd.f32 %v3784_v7, %v6842_v62  ;;  %v3909_v14 = vmul.f32 %v7267_v20, %v7267_v20 }
 0x616   : > { %v4793_v57 = vpop.f32.mrb[69].mxu1 }
 0x617   : > { %v4794_v24 = vadd.f32 %v4793_v57, %v4792_v58  ;;  %v4795_v25 = vpop.f32.mrb[70].mxu1  ;;  %3863 = vadd.xlane.f32.xlu1 %v7271_v26  ;;  %v3910_v27 = vmul.f32 %v7271_v26, %v7271_v26 }
 0x618   : > { %v4796_v18 = vpop.f32.mrb[71].mxu1 }
 0x619   : > { %v3789_v13 = vadd.f32 %v4794_v24, %v7262_v16  ;;  %v4797_v51 = vadd.f32 %v4796_v18, %v4795_v25  ;;  %3925 = vadd.xlane.f32.xlu0 %v3909_v14 }
 0x61b   : > { %v3792_v4 = vadd.f32 %v4797_v51, %v7262_v16  ;;  %3927 = vadd.xlane.f32.xlu1 %v3910_v27  ;;  %v7281_v62 = vadd.f32 %v3789_v13, %v6862_v38 }
 0x61d   : > { %3865 = vadd.xlane.f32.xlu0 %v7281_v62  ;;  %v7285_v60 = vadd.f32 %v3792_v4, %v6865_v48  ;;  %v3911_v61 = vmul.f32 %v7281_v62, %v7281_v62 }
 0x61f   : > { %3867 = vadd.xlane.f32.xlu1 %v7285_v60  ;;  %v3912_v9 = vmul.f32 %v7285_v60, %v7285_v60 }
 0x621   : > { %3929 = vadd.xlane.f32.xlu0 %v3911_v61 }
 0x623   : > { %3931 = vadd.xlane.f32.xlu1 %v3912_v9 }
 0x624   : > { %v4798_v44 = vpop.f32.mrb[72].mxu1 }
 0x625   : > { %v4799_v19 = vpop.f32.mrb[73].mxu1 }
 0x626   : > { %v4800_v53 = vadd.f32 %v4799_v19, %v4798_v44  ;;  %v4801_v38 = vpop.f32.mrb[74].mxu1 }
 0x627   : > { %v4802_v56 = vpop.f32.mrb[75].mxu1 }
 0x628   : > { %v3797_v28 = vadd.f32 %v4800_v53, %v7262_v16  ;;  %v4803_v15 = vadd.f32 %v4802_v56, %v4801_v38 }
 0x62a   : > { %v3800_v48 = vadd.f32 %v4803_v15, %v7262_v16  ;;  %v7295_v11 = vadd.f32 %v3797_v28, %v6885_v29 }
 0x62c   : > { %3869 = vadd.xlane.f32.xlu0 %v7295_v11  ;;  %v7299_v17 = vadd.f32 %v3800_v48, %v6888_v37  ;;  %v3913_v50 = vmul.f32 %v7295_v11, %v7295_v11 }
 0x62e   : > { %3871 = vadd.xlane.f32.xlu1 %v7299_v17  ;;  %v3914_v3 = vmul.f32 %v7299_v17, %v7299_v17 }
 0x630   : > { %3933 = vadd.xlane.f32.xlu0 %v3913_v50 }
 0x631   : > { %v4804_v54 = vpop.f32.mrb[76].mxu1 }
 0x632   : > { %v4805_v30 = vpop.f32.mrb[77].mxu1  ;;  %3935 = vadd.xlane.f32.xlu1 %v3914_v3 }
 0x633   : > { %v4806_v33 = vadd.f32 %v4805_v30, %v4804_v54  ;;  %v4807_v40 = vpop.f32.mrb[78].mxu1 }
 0x634   : > { %v4808_v29 = vpop.f32.mrb[79].mxu1 }
 0x635   : > { %v3805_v8 = vadd.f32 %v4806_v33, %v7262_v16  ;;  %v4809_v47 = vadd.f32 %v4808_v29, %v4807_v40 }
 0x637   : > { %v3808_v37 = vadd.f32 %v4809_v47, %v7262_v16  ;;  %v7309_v0 = vadd.f32 %v3805_v8, %v6908_v6 }
 0x639   : > { %3873 = vadd.xlane.f32.xlu0 %v7309_v0  ;;  %v7313_v43 = vadd.f32 %v3808_v37, %v6911_v46  ;;  %v3915_v5 = vmul.f32 %v7309_v0, %v7309_v0 }
 0x63b   : > { %3875 = vadd.xlane.f32.xlu1 %v7313_v43  ;;  %v3916_v2 = vmul.f32 %v7313_v43, %v7313_v43 }
 0x63d   : > { %3937 = vadd.xlane.f32.xlu0 %v3915_v5 }
 0x63e   : > { %v4810_v23 = vpop.f32.mrb[80].mxu1 }
 0x63f   : > { %v4811_v45 = vpop.f32.mrb[81].mxu1  ;;  %3939 = vadd.xlane.f32.xlu1 %v3916_v2 }
 0x640   : > { %v4812_v10 = vadd.f32 %v4811_v45, %v4810_v23  ;;  %v4813_v6 = vpop.f32.mrb[82].mxu1 }
 0x641   : > { %v4814_v52 = vpop.f32.mrb[83].mxu1 }
 0x642   : > { %v3813_v31 = vadd.f32 %v4812_v10, %v7262_v16  ;;  %v4815_v34 = vadd.f32 %v4814_v52, %v4813_v6 }
 0x644   : > { %v3816_v46 = vadd.f32 %v4815_v34, %v7262_v16  ;;  %v7323_v55 = vadd.f32 %v3813_v31, %v6925_v36 }
 0x646   : > { %v4816_v63 = vpop.f32.mrb[84].mxu1  ;;  %3877 = vadd.xlane.f32.xlu0 %v7323_v55  ;;  %v7327_v39 = vadd.f32 %v3816_v46, %v6928_v32  ;;  %v3917_v58 = vmul.f32 %v7323_v55, %v7323_v55 }
 0x647   : > { %v4817_v41 = vpop.f32.mrb[85].mxu1 }
 0x648   : > { %v4818_v59 = vadd.f32 %v4817_v41, %v4816_v63  ;;  %v4819_v7 = vpop.f32.mrb[86].mxu1  ;;  %3879 = vadd.xlane.f32.xlu1 %v7327_v39  ;;  %v3918_v36 = vmul.f32 %v7327_v39, %v7327_v39 }
 0x649   : > { %v4820_v57 = vpop.f32.mrb[87].mxu1 }
 0x64a   : > { %v3821_v24 = vadd.f32 %v4818_v59, %v7262_v16  ;;  %v4821_v25 = vadd.f32 %v4820_v57, %v4819_v7  ;;  %3941 = vadd.xlane.f32.xlu0 %v3917_v58 }
 0x64c   : > { %v3824_v14 = vadd.f32 %v4821_v25, %v7262_v16  ;;  %3943 = vadd.xlane.f32.xlu1 %v3918_v36  ;;  %v7337_v32 = vadd.f32 %v3821_v24, %v6940_v21 }
 0x64e   : > { %v4822_v18 = vpop.f32.mrb[88].mxu1  ;;  %3881 = vadd.xlane.f32.xlu0 %v7337_v32  ;;  %v7341_v13 = vadd.f32 %v3824_v14, %v6943_v12  ;;  %v3919_v61 = vmul.f32 %v7337_v32, %v7337_v32 }
 0x64f   : > { %v4823_v51 = vpop.f32.mrb[89].mxu1 }
 0x650   : > { %v4824_v27 = vadd.f32 %v4823_v51, %v4822_v18  ;;  %v4825_v4 = vpop.f32.mrb[90].mxu1  ;;  %3883 = vadd.xlane.f32.xlu1 %v7341_v13  ;;  %v3920_v21 = vmul.f32 %v7341_v13, %v7341_v13 }
 0x651   : > { %v4826_v9 = vpop.f32.mrb[91].mxu1 }
 0x652   : > { %v3829_v44 = vadd.f32 %v4824_v27, %v7262_v16  ;;  %v4827_v19 = vadd.f32 %v4826_v9, %v4825_v4  ;;  %3945 = vadd.xlane.f32.xlu0 %v3919_v61 }
 0x654   : > { %v3832_v53 = vadd.f32 %v4827_v19, %v7262_v16  ;;  %3947 = vadd.xlane.f32.xlu1 %v3920_v21  ;;  %v7351_v12 = vadd.f32 %v3829_v44, %v6954_v1 }
 0x656   : > { %v4828_v38 = vpop.f32.mrb[92].mxu1  ;;  %3885 = vadd.xlane.f32.xlu0 %v7351_v12  ;;  %v7355_v56 = vadd.f32 %v3832_v53, %v6957_v49  ;;  %v3921_v50 = vmul.f32 %v7351_v12, %v7351_v12  ;;  %v7382_v53 = vld [vmem:[%s820_s10] ss:$0 sm:$0xff] }
 0x657   : > { %v4829_v28 = vpop.f32.mrb[93].mxu1 }
 0x658   : > { %v4830_v15 = vadd.f32 %v4829_v28, %v4828_v38  ;;  %v4831_v48 = vpop.f32.mrb[94].mxu1  ;;  %3887 = vadd.xlane.f32.xlu1 %v7355_v56  ;;  %v3922_v1 = vmul.f32 %v7355_v56, %v7355_v56 }
 0x659   : > { %v4832_v54 = vpop.f32.mrb[95].mxu1 }
 0x65a   : > { %v3837_v3 = vadd.f32 %v4830_v15, %v7262_v16  ;;  %v4833_v30 = vadd.f32 %v4832_v54, %v4831_v48  ;;  %3949 = vadd.xlane.f32.xlu0 %v3921_v50  ;;  %v7390_v48 = vld [vmem:[%s823_s11] ss:$0 sm:$0xff] }
 0x65c   : > { %v3840_v33 = vadd.f32 %v4833_v30, %v7262_v16  ;;  %3951 = vadd.xlane.f32.xlu1 %v3922_v1  ;;  %v7365_v49 = vadd.f32 %v3837_v3, %v6966_v22 }
 0x65e   : > { %3889 = vadd.xlane.f32.xlu0 %v7365_v49  ;;  %v7369_v40 = vadd.f32 %v3840_v33, %v6969_v35  ;;  %v3923_v29 = vmul.f32 %v7365_v49, %v7365_v49 }
 0x660   : > { %3891 = vadd.xlane.f32.xlu1 %v7369_v40  ;;  %v3924_v8 = vmul.f32 %v7369_v40, %v7369_v40 }
 0x662   : > { %3953 = vadd.xlane.f32.xlu0 %v3923_v29 }
 0x664   : > { %3955 = vadd.xlane.f32.xlu1 %v3924_v8 }
 0x6a2   : > { %v3862_v16 = vpop.xlane.xlu0 %3861 }
 0x6a3   : > { %v3893_v47 = vmul.f32 0.020833334, %v3862_v16 }
 0x6a4   : > { %v3864_v37 = vpop.xlane.xlu1 %3863 }
 0x6a5   : > { %v3894_v22 = vmul.f32 0.020833334, %v3864_v37  ;;  %v3973_v2 = vmul.f32 %v3893_v47, %v3893_v47  ;;  %v4021_v19 = vsub.f32 %v7267_v20, %v3893_v47 }
 0x6a6   : > { %v3926_v5 = vpop.xlane.xlu0 %3925 }
 0x6a7   : > { %v3957_v23 = vmul.f32 0.020833334, %v3926_v5  ;;  %v3974_v35 = vmul.f32 %v3894_v22, %v3894_v22  ;;  %v4022_v38 = vsub.f32 %v7271_v26, %v3894_v22 }
 0x6a8   : > { %v3928_v45 = vpop.xlane.xlu1 %3927 }
 0x6a9   : > { %v3989_v10 = vsub.f32 %v3957_v23, %v3973_v2  ;;  %v3958_v6 = vmul.f32 0.020833334, %v3928_v45 }
 0x6aa   : > { %v3866_v52 = vpop.xlane.xlu0 %3865 }
 0x6ab   : > { %v4005_v31 = vmax.f32 %v3989_v10, 0.0  ;;  %v3990_v34 = vsub.f32 %v3958_v6, %v3974_v35  ;;  %v3895_v46 = vmul.f32 0.020833334, %v3866_v52 }
 0x6ac   : > { %v3868_v63 = vpop.xlane.xlu1 %3867 }
 0x6ad   : > { %v4037_v41 = vadd.f32 1e-12, %v4005_v31  ;;  %v4006_v59 = vmax.f32 %v3990_v34, 0.0  ;;  %v3896_v7 = vmul.f32 0.020833334, %v3868_v63  ;;  %v3975_v24 = vmul.f32 %v3895_v46, %v3895_v46 }
 0x6ae   : > { %v3930_v58 = vpop.xlane.xlu0 %3929  ;;  %v4023_v16 = vsub.f32 %v7281_v62, %v3895_v46 }
 0x6af   : > { %5330 = vrsqrt.f32 %v4037_v41  ;;  %v4038_v57 = vadd.f32 1e-12, %v4006_v59  ;;  %v3959_v25 = vmul.f32 0.020833334, %v3930_v58  ;;  %v3976_v14 = vmul.f32 %v3896_v7, %v3896_v7 }
 0x6b0   : > { %v3932_v36 = vpop.xlane.xlu1 %3931  ;;  %v4024_v5 = vsub.f32 %v7285_v60, %v3896_v7 }
 0x6b1   : > { %5332 = vrsqrt.f32 %v4038_v57  ;;  %v3991_v18 = vsub.f32 %v3959_v25, %v3975_v24  ;;  %v3960_v51 = vmul.f32 0.020833334, %v3932_v36 }
 0x6b3   : > { %v4007_v27 = vmax.f32 %v3991_v18, 0.0  ;;  %v3992_v4 = vsub.f32 %v3960_v51, %v3976_v14 }
 0x6b5   : > { %v4039_v61 = vadd.f32 1e-12, %v4007_v27  ;;  %v4008_v9 = vmax.f32 %v3992_v4, 0.0 }
 0x6b7   : > { %5334 = vrsqrt.f32 %v4039_v61  ;;  %v4040_v44 = vadd.f32 1e-12, %v4008_v9 }
 0x6b9   : > { %v5331_v21 = vpop.eup %5330  ;;  %5336 = vrsqrt.f32 %v4040_v44  ;;  %v3870_v50 = vpop.xlane.xlu0 %3869 }
 0x6ba   : > { %v4069_v28 = vmul.f32 %v5331_v21, %v4021_v19  ;;  %v3897_v3 = vmul.f32 0.020833334, %v3870_v50 }
 0x6bb   : > { %v5333_v15 = vpop.eup %5332  ;;  %v3872_v30 = vpop.xlane.xlu1 %3871 }
 0x6bc   : > { %v4091_v20 = vmul.f32 %v7382_v53, %v4069_v28  ;;  %v4070_v54 = vmul.f32 %v5333_v15, %v4022_v38  ;;  %v3898_v26 = vmul.f32 0.020833334, %v3872_v30  ;;  %v3977_v47 = vmul.f32 %v3897_v3, %v3897_v3 }
 0x6bd   : > { %v3934_v29 = vpop.xlane.xlu0 %3933  ;;  %v4025_v19 = vsub.f32 %v7295_v11, %v3897_v3 }
 0x6be   : > { %v7394_v1 = vadd.f32 %v7390_v48, %v4091_v20  ;;  %v4092_v33 = vmul.f32 %v7382_v53, %v4070_v54  ;;  %v3961_v37 = vmul.f32 0.020833334, %v3934_v29  ;;  %v3978_v45 = vmul.f32 %v3898_v26, %v3898_v26 }
 0x6bf   : > { %v3936_v2 = vpop.xlane.xlu1 %3935  ;;  %v4026_v15 = vsub.f32 %v7299_v17, %v3898_v26 }
 0x6c0   : > { %4129 = vst [vmem:[#allocation2] sm:$0xff] %v7394_v1  ;;  %v7399_v8 = vadd.f32 %v7390_v48, %v4092_v33  ;;  %v3993_v35 = vsub.f32 %v3961_v37, %v3977_v47  ;;  %v3962_v10 = vmul.f32 0.020833334, %v3936_v2 }
 0x6c1   : > { %v5335_v22 = vpop.eup %5334 }
 0x6c2   : > { %4130 = vst [vmem:[#allocation2 + $0x8] sm:$0xff] %v7399_v8  ;;  %v4071_v23 = vmul.f32 %v5335_v22, %v4023_v16  ;;  %v4009_v34 = vmax.f32 %v3993_v35, 0.0  ;;  %v3994_v63 = vsub.f32 %v3962_v10, %v3978_v45 }
 0x6c3   : > { %v5337_v6 = vpop.eup %5336 }
 0x6c4   : > { %v4093_v52 = vmul.f32 %v7382_v53, %v4071_v23  ;;  %v4072_v31 = vmul.f32 %v5337_v6, %v4024_v5  ;;  %v4041_v41 = vadd.f32 1e-12, %v4009_v34  ;;  %v4010_v60 = vmax.f32 %v3994_v63, 0.0 }
 0x6c6   : > { %v7406_v62 = vadd.f32 %v7390_v48, %v4093_v52  ;;  %v4094_v46 = vmul.f32 %v7382_v53, %v4072_v31  ;;  %v3874_v59 = vpop.xlane.xlu0 %3873  ;;  %5338 = vrsqrt.f32 %v4041_v41  ;;  %v4042_v58 = vadd.f32 1e-12, %v4010_v60 }
 0x6c7   : > { %v3899_v57 = vmul.f32 0.020833334, %v3874_v59 }
 0x6c8   : > { %4131 = vst [vmem:[#allocation2 + $0x10] sm:$0xff] %v7406_v62  ;;  %v7411_v7 = vadd.f32 %v7390_v48, %v4094_v46  ;;  %v3876_v24 = vpop.xlane.xlu1 %3875  ;;  %5340 = vrsqrt.f32 %v4042_v58 }
 0x6c9   : > { %v3900_v25 = vmul.f32 0.020833334, %v3876_v24  ;;  %v3979_v14 = vmul.f32 %v3899_v57, %v3899_v57  ;;  %v4027_v6 = vsub.f32 %v7309_v0, %v3899_v57 }
 0x6ca   : > { %4132 = vst [vmem:[#allocation2 + $0x18] sm:$0xff] %v7411_v7  ;;  %v3938_v36 = vpop.xlane.xlu0 %3937 }
 0x6cb   : > { %v3963_v18 = vmul.f32 0.020833334, %v3938_v36  ;;  %v3980_v27 = vmul.f32 %v3900_v25, %v3900_v25  ;;  %v4028_v41 = vsub.f32 %v7313_v43, %v3900_v25 }
 0x6cc   : > { %v3940_v51 = vpop.xlane.xlu1 %3939 }
 0x6cd   : > { %v3995_v4 = vsub.f32 %v3963_v18, %v3979_v14  ;;  %v3964_v61 = vmul.f32 0.020833334, %v3940_v51 }
 0x6cf   : > { %v4011_v9 = vmax.f32 %v3995_v4, 0.0  ;;  %v3996_v44 = vsub.f32 %v3964_v61, %v3980_v27 }
 0x6d0   : > { %v5339_v21 = vpop.eup %5338 }
 0x6d1   : > { %v4043_v38 = vadd.f32 1e-12, %v4011_v9  ;;  %v4012_v28 = vmax.f32 %v3996_v44, 0.0  ;;  %v4073_v50 = vmul.f32 %v5339_v21, %v4025_v19 }
 0x6d2   : > { %v5341_v20 = vpop.eup %5340 }
 0x6d3   : > { %5342 = vrsqrt.f32 %v4043_v38  ;;  %v4044_v54 = vadd.f32 1e-12, %v4012_v28  ;;  %v3878_v30 = vpop.xlane.xlu0 %3877  ;;  %v4095_v33 = vmul.f32 %v7382_v53, %v4073_v50  ;;  %v4074_v29 = vmul.f32 %v5341_v20, %v4026_v15 }
 0x6d4   : > { %v7417_v16 = vmul.f32 0.020833334, %v3878_v30 }
 0x6d5   : > { %5344 = vrsqrt.f32 %v4044_v54  ;;  %v3880_v47 = vpop.xlane.xlu1 %3879  ;;  %v7420_v37 = vadd.f32 %v7390_v48, %v4095_v33  ;;  %v4096_v11 = vmul.f32 %v7382_v53, %v4074_v29 }
 0x6d6   : > { %v7423_v3 = vmul.f32 0.020833334, %v3880_v47  ;;  %v3981_v22 = vmul.f32 %v7417_v16, %v7417_v16 }
 0x6d7   : > { %v3942_v17 = vpop.xlane.xlu0 %3941  ;;  %4133 = vst [vmem:[#allocation2 + $0x20] sm:$0xff] %v7420_v37  ;;  %v7427_v26 = vadd.f32 %v7390_v48, %v4096_v11 }
 0x6d8   : > { %v3965_v5 = vmul.f32 0.020833334, %v3942_v17  ;;  %v3982_v23 = vmul.f32 %v7423_v3, %v7423_v3  ;;  %v4029_v17 = vsub.f32 %v7323_v55, %v7417_v16 }
 0x6d9   : > { %v3944_v2 = vpop.xlane.xlu1 %3943  ;;  %4134 = vst [vmem:[#allocation2 + $0x28] sm:$0xff] %v7427_v26 }
 0x6da   : > { %v3997_v45 = vsub.f32 %v3965_v5, %v3981_v22  ;;  %v3966_v35 = vmul.f32 0.020833334, %v3944_v2 }
 0x6db   : > { %v3882_v10 = vpop.xlane.xlu0 %3881 }
 0x6dc   : > { %v4013_v52 = vmax.f32 %v3997_v45, 0.0  ;;  %v3998_v31 = vsub.f32 %v3966_v35, %v3982_v23  ;;  %v7435_v63 = vmul.f32 0.020833334, %v3882_v10  ;;  %v4030_v35 = vsub.f32 %v7327_v39, %v7423_v3 }
 0x6dd   : > { %v5343_v34 = vpop.eup %5342  ;;  %v3884_v46 = vpop.xlane.xlu1 %3883 }
 0x6de   : > { %v4075_v60 = vmul.f32 %v5343_v34, %v4027_v6  ;;  %v4045_v59 = vadd.f32 1e-12, %v4013_v52  ;;  %v4014_v58 = vmax.f32 %v3998_v31, 0.0  ;;  %v7438_v36 = vmul.f32 0.020833334, %v3884_v46 }
 0x6df   : > { %v5345_v24 = vpop.eup %5344  ;;  %v3946_v14 = vpop.xlane.xlu0 %3945  ;;  %v3983_v57 = vmul.f32 %v7435_v63, %v7435_v63 }
 0x6e0   : > { %v4097_v18 = vmul.f32 %v7382_v53, %v4075_v60  ;;  %v4076_v51 = vmul.f32 %v5345_v24, %v4028_v41  ;;  %5346 = vrsqrt.f32 %v4045_v59  ;;  %v4046_v0 = vadd.f32 1e-12, %v4014_v58 }
 0x6e1   : > { %v3984_v27 = vmul.f32 %v7438_v36, %v7438_v36  ;;  %v3967_v4 = vmul.f32 0.020833334, %v3946_v14  ;;  %v3948_v43 = vpop.xlane.xlu1 %3947 }
 0x6e2   : > { %v7446_v25 = vadd.f32 %v7390_v48, %v4097_v18  ;;  %v4098_v61 = vmul.f32 %v7382_v53, %v4076_v51  ;;  %5348 = vrsqrt.f32 %v4046_v0  ;;  %v3968_v9 = vmul.f32 0.020833334, %v3948_v43 }
 0x6e3   : > { %v3999_v44 = vsub.f32 %v3967_v4, %v3983_v57  ;;  %v3886_v19 = vpop.xlane.xlu0 %3885  ;;  %v4031_v57 = vsub.f32 %v7337_v32, %v7435_v63 }
 0x6e4   : > { %4135 = vst [vmem:[#allocation2 + $0x30] sm:$0xff] %v7446_v25  ;;  %v7451_v21 = vadd.f32 %v7390_v48, %v4098_v61  ;;  %v4000_v38 = vsub.f32 %v3968_v9, %v3984_v27  ;;  %v7453_v28 = vmul.f32 0.020833334, %v3886_v19 }
 0x6e5   : > { %v4015_v15 = vmax.f32 %v3999_v44, 0.0  ;;  %v3888_v50 = vpop.xlane.xlu1 %3887  ;;  %v4032_v44 = vsub.f32 %v7341_v13, %v7438_v36 }
 0x6e6   : > { %4136 = vst [vmem:[#allocation2 + $0x38] sm:$0xff] %v7451_v21  ;;  %v4016_v20 = vmax.f32 %v4000_v38, 0.0  ;;  %v7456_v54 = vmul.f32 0.020833334, %v3888_v50  ;;  %v3985_v47 = vmul.f32 %v7453_v28, %v7453_v28  ;;  %v4033_v13 = vsub.f32 %v7351_v12, %v7453_v28 }
 0x6e7   : > { %v4047_v30 = vadd.f32 1e-12, %v4015_v15  ;;  %v3950_v33 = vpop.xlane.xlu0 %3949 }
 0x6e8   : > { %v4048_v29 = vadd.f32 1e-12, %v4016_v20  ;;  %v3969_v11 = vmul.f32 0.020833334, %v3950_v33  ;;  %v3986_v2 = vmul.f32 %v7456_v54, %v7456_v54 }
 0x6e9   : > { %5350 = vrsqrt.f32 %v4047_v30  ;;  %v3952_v22 = vpop.xlane.xlu1 %3951 }
 0x6ea   : > { %v5347_v5 = vpop.eup %5346  ;;  %5352 = vrsqrt.f32 %v4048_v29  ;;  %v4001_v23 = vsub.f32 %v3969_v11, %v3985_v47  ;;  %v3970_v45 = vmul.f32 0.020833334, %v3952_v22 }
 0x6eb   : > { %v4077_v10 = vmul.f32 %v5347_v5, %v4029_v17  ;;  %v3890_v6 = vpop.xlane.xlu0 %3889  ;;  %v4034_v17 = vsub.f32 %v7355_v56, %v7456_v54 }
 0x6ec   : > { %v5349_v52 = vpop.eup %5348  ;;  %v4017_v31 = vmax.f32 %v4001_v23, 0.0  ;;  %v4002_v34 = vsub.f32 %v3970_v45, %v3986_v2  ;;  %v3907_v46 = vmul.f32 0.020833334, %v3890_v6 }
 0x6ed   : > { %v4099_v55 = vmul.f32 %v7382_v53, %v4077_v10  ;;  %v4078_v16 = vmul.f32 %v5349_v52, %v4030_v35  ;;  %v3892_v41 = vpop.xlane.xlu1 %3891 }
 0x6ee   : > { %v4049_v60 = vadd.f32 1e-12, %v4017_v31  ;;  %v4018_v59 = vmax.f32 %v4002_v34, 0.0  ;;  %v3908_v14 = vmul.f32 0.020833334, %v3892_v41  ;;  %v3987_v3 = vmul.f32 %v3907_v46, %v3907_v46 }
 0x6ef   : > { %v7468_v58 = vadd.f32 %v7390_v48, %v4099_v55  ;;  %v4100_v24 = vmul.f32 %v7382_v53, %v4078_v16  ;;  %v3954_v18 = vpop.xlane.xlu0 %3953  ;;  %v4035_v28 = vsub.f32 %v7365_v49, %v3907_v46  ;;  %v4151_v49 = vadd.s32 (!%p4674_p13), 8, %v6989_v42  ;;  %v4677_v46 = vld [vmem:[%s5982_s6 + $0x2] ss:$0 sm:$0xff] (!%p4674_p13)  ;;  %v4678_v41 = vld [vmem:[%s5982_s6 + $0x3] ss:$0 sm:$0xff] (!%p4674_p13) }
 0x6f0   : > { %5354 = vrsqrt.f32 %v4049_v60  ;;  %v4050_v39 = vadd.f32 1e-12, %v4018_v59  ;;  %v3971_v51 = vmul.f32 0.020833334, %v3954_v18  ;;  %v3988_v4 = vmul.f32 %v3908_v14, %v3908_v14  ;;  %v4679_v60 = vld [vmem:[%s5982_s6 + $0x4] ss:$0 sm:$0xff] (!%p4674_p13) }
 0x6f1   : > { %4137 = vst [vmem:[#allocation2 + $0x40] sm:$0xff] %v7468_v58  ;;  %v7473_v0 = vadd.f32 %v7390_v48, %v4100_v24  ;;  %v3956_v27 = vpop.xlane.xlu1 %3955  ;;  %v4036_v56 = vsub.f32 %v7369_v40, %v3908_v14  ;;  %v4675_v40 = vld [vmem:[%s5982_s6] ss:$0 sm:$0xff] (!%p4674_p13)  ;;  %v4681_v59 = vld [vmem:[%s5982_s6 + $0x6] ss:$0 sm:$0xff] (!%p4674_p13)  ;;  %vm4196_vm8 = vcmp.eq.s32.totalorder (!%p4674_p13), %v6989_v42, %v4677_v46  ;;  %vm4197_vm9 = vcmp.eq.s32.totalorder (!%p4674_p13), %v4151_v49, %v4677_v46 }
 0x6f2   : > { %5356 = vrsqrt.f32 %v4050_v39  ;;  %v4003_v43 = vsub.f32 %v3971_v51, %v3987_v3  ;;  %v3972_v61 = vmul.f32 0.020833334, %v3956_v27  ;;  %vm4192_vm4 = vcmp.eq.s32.totalorder (!%p4674_p13), %v6989_v42, %v4675_v40  ;;  %v4682_v24 = vld [vmem:[%s5982_s6 + $0x7] ss:$0 sm:$0xff] (!%p4674_p13) }
 0x6f3   : > { %v5351_v9 = vpop.eup %5350  ;;  %4138 = vst [vmem:[#allocation2 + $0x48] sm:$0xff] %v7473_v0  ;;  %vm4193_vm6 = vcmp.eq.s32.totalorder (!%p4674_p13), %v4151_v49, %v4675_v40  ;;  %vm4198_vm10 = vcmp.eq.s32.totalorder (!%p4674_p13), %v6989_v42, %v4678_v41  ;;  %vm4199_vm11 = vcmp.eq.s32.totalorder (!%p4674_p13), %v4151_v49, %v4678_v41  ;;  %vm4200_vm12 = vcmp.eq.s32.totalorder (!%p4674_p13), %v6989_v42, %v4679_v60 }
 0x6f4   : > { %v5353_v19 = vpop.eup %5352  ;;  %v4079_v38 = vmul.f32 %v5351_v9, %v4031_v57  ;;  %v4019_v15 = vmax.f32 %v4003_v43, 0.0  ;;  %v4004_v50 = vsub.f32 %v3972_v61, %v3988_v4  ;;  %vm4201_vm13 = vcmp.eq.s32.totalorder (!%p4674_p13), %v4151_v49, %v4679_v60 }
 0x6f5   : > { %v4080_v20 = vmul.f32 %v5353_v19, %v4032_v44  ;;  %vm4204_vm0 = vcmp.eq.s32.totalorder (!%p4674_p13), %v6989_v42, %v4681_v59  ;;  %vm4205_vm1 = vcmp.eq.s32.totalorder (!%p4674_p13), %v4151_v49, %v4681_v59  ;;  %vm4206_vm2 = vcmp.eq.s32.totalorder (!%p4674_p13), %v6989_v42, %v4682_v24 }
 0x6f6   : > { %v4101_v30 = vmul.f32 %v7382_v53, %v4079_v38  ;;  %v4051_v33 = vadd.f32 1e-12, %v4019_v15  ;;  %v4020_v32 = vmax.f32 %v4004_v50, 0.0  ;;  %vm4207_vm3 = vcmp.eq.s32.totalorder (!%p4674_p13), %v4151_v49, %v4682_v24 }
 0x6f7   : > { %v4102_v63 = vmul.f32 %v7382_v53, %v4080_v20  ;;  %v5597_v14 = vmov (!%p4674_p13), 0.0  }
 0x6f8   : > { %v7483_v29 = vadd.f32 %v7390_v48, %v4101_v30  ;;  %5358 = vrsqrt.f32 %v4051_v33  ;;  %v4052_v47 = vadd.f32 1e-12, %v4020_v32  ;;  %v4683_v18 = vsel (!%p4674_p13), %vm4192_vm4, 1.0, %v5597_v14 }
 0x6f9   : > { %v7486_v11 = vadd.f32 %v7390_v48, %v4102_v63  ;;  %v4684_v39 = vsel (!%p4674_p13), %vm4193_vm6, 1.0, %v5597_v14  ;;  %v4687_v57 = vsel (!%p4674_p13), %vm4196_vm8, 1.0, %v5597_v14  ;;  %v4688_v27 = vsel (!%p4674_p13), %vm4197_vm9, 1.0, %v5597_v14 }
 0x6fa   : > { %v5355_v36 = vpop.eup %5354  ;;  %4139 = vst [vmem:[#allocation2 + $0x50] sm:$0xff] %v7483_v29  ;;  %5360 = vrsqrt.f32 %v4052_v47  ;;  %v4689_v4 = vsel (!%p4674_p13), %vm4198_vm10, 1.0, %v5597_v14  ;;  %v4690_v43 = vsel (!%p4674_p13), %vm4199_vm11, 1.0, %v5597_v14  ;;  %v4691_v61 = vsel (!%p4674_p13), %vm4200_vm12, 1.0, %v5597_v14 }
 0x6fb   : > { %4140 = vst [vmem:[#allocation2 + $0x58] sm:$0xff] %v7486_v11  ;;  %v4081_v22 = vmul.f32 %v5355_v36, %v4033_v13  ;;  %v4692_v9 = vsel (!%p4674_p13), %vm4201_vm13, 1.0, %v5597_v14  ;;  %v4695_v38 = vsel (!%p4674_p13), %vm4204_vm0, 1.0, %v5597_v14  ;;  %v4696_v15 = vsel (!%p4674_p13), %vm4205_vm1, 1.0, %v5597_v14 }
 0x6fc   : > { %v5357_v5 = vpop.eup %5356  ;;  %v4697_v50 = vsel (!%p4674_p13), %vm4206_vm2, 1.0, %v5597_v14  ;;  %v4698_v20 = vsel (!%p4674_p13), %vm4207_vm3, 1.0, %v5597_v14  ;;  %v4240_v30 = vmul.f32 (!%p4674_p13), %v4683_v18, %v7394_v1  ;;  %v4241_v33 = vmul.f32 (!%p4674_p13), %v4684_v39, %v7399_v8 }
 0x6fd   : > { %v4103_v2 = vmul.f32 %v7382_v53, %v4081_v22  ;;  %v4082_v23 = vmul.f32 %v5357_v5, %v4034_v17  ;;  %v4244_v47 = vmul.f32 (!%p4674_p13), %v4687_v57, %v7420_v37  ;;  %v4245_v13 = vmul.f32 (!%p4674_p13), %v4688_v27, %v7427_v26 }
 0x6fe   : > { %v4246_v36 = vmul.f32 (!%p4674_p13), %v4689_v4, %v7446_v25  ;;  %v4247_v17 = vmul.f32 (!%p4674_p13), %v4690_v43, %v7451_v21  ;;  %v4249_v22 = vmul.f32 (!%p4674_p13), %v4692_v9, %v7473_v0  ;;  %v4256_v26 = vadd.f32 (!%p4674_p13), %v4241_v33, %v4240_v30 }
 0x6ff   : > { %v7496_v45 = vadd.f32 %v7390_v48, %v4103_v2  ;;  %v4104_v35 = vmul.f32 %v7382_v53, %v4082_v23  ;;  %v4270_v25 = vadd.f32 (!%p4674_p13), %v4245_v13, %v4244_v47  ;;  %vm4320_vm4 = vcmask (!%p4674_p13), 1041409  }
 0x700   : > { %v4277_v23 = vadd.f32 (!%p4674_p13), %v4247_v17, %v4246_v36  ;;  %vm4324_vm6 = vcmask (!%p4674_p13), 1043459   ;;  %vm4328_vm8 = vcmask (!%p4674_p13), 1045509   ;;  %vm4330_vm9 = vcmask (!%p4674_p13), 1046534  }
 0x701   : > { %4141 = vst [vmem:[#allocation2 + $0x60] sm:$0xff] %v7496_v45  ;;  %v7501_v12 = vadd.f32 %v7390_v48, %v4104_v35  ;;  %vm4332_vm10 = vcmask (!%p4674_p13), 1047559  }
 0x702   : > { %v5359_v10 = vpop.eup %5358 }
 0x703   : > { %4142 = vst [vmem:[#allocation2 + $0x68] sm:$0xff] %v7501_v12  ;;  %v4083_v54 = vmul.f32 %v5359_v10, %v4035_v28 }
 0x704   : > { %v5361_v6 = vpop.eup %5360 }
 0x705   : > { %v4105_v52 = vmul.f32 %v7382_v53, %v4083_v54  ;;  %v4084_v31 = vmul.f32 %v5361_v6, %v4036_v56  ;;  %4148 = sbr.rel (%p4674_p13) target bundleno = 1827 (0x723), region = 112  ;;  %v4278_v56 = vrot.slane (!%p4674_p13), %v4277_v23, 4 }
 0x707   : > { %v7508_v34 = vadd.f32 %v7390_v48, %v4105_v52  ;;  %v4106_v55 = vmul.f32 %v7382_v53, %v4084_v31  ;;  %v4676_v53 = vld [vmem:[%s5982_s6 + $0x1] ss:$0 sm:$0xff] (!%p4674_p13) }
 0x708   : > { %vm4194_vm5 = vcmp.eq.s32.totalorder (!%p4674_p13), %v6989_v42, %v4676_v53  ;;  %vm4195_vm7 = vcmp.eq.s32.totalorder (!%p4674_p13), %v4151_v49, %v4676_v53 }
 0x709   : > { %4143 = vst [vmem:[#allocation2 + $0x70] sm:$0xff] %v7508_v34  ;;  %v4128_v16 = vadd.f32 %v7390_v48, %v4106_v55  ;;  %v4680_v48 = vld [vmem:[%s5982_s6 + $0x5] ss:$0 sm:$0xff] (!%p4674_p13)  ;;  %v4685_v3 = vsel (!%p4674_p13), %vm4194_vm5, 1.0, %v5597_v14  ;;  %v4686_v51 = vsel (!%p4674_p13), %vm4195_vm7, 1.0, %v5597_v14  ;;  %v4254_v37 = vmul.f32 (!%p4674_p13), %v4697_v50, %v7508_v34 }
 0x70a   : > { %vm4202_vm14 = vcmp.eq.s32.totalorder (!%p4674_p13), %v6989_v42, %v4680_v48  ;;  %vm4203_vm15 = vcmp.eq.s32.totalorder (!%p4674_p13), %v4151_v49, %v4680_v48  ;;  %v4242_v32 = vmul.f32 (!%p4674_p13), %v4685_v3, %v7406_v62  ;;  %v4243_v63 = vmul.f32 (!%p4674_p13), %v4686_v51, %v7411_v7 }
 0x70b   : > { %4144 = vst [vmem:[#allocation2 + $0x78] sm:$0xff] %v4128_v16  ;;  %v4693_v44 = vsel (!%p4674_p13), %vm4202_vm14, 1.0, %v5597_v14  ;;  %v4694_v19 = vsel (!%p4674_p13), %vm4203_vm15, 1.0, %v5597_v14  ;;  %v4248_v42 = vmul.f32 (!%p4674_p13), %v4691_v61, %v7468_v58  ;;  %v4252_v62 = vmul.f32 (!%p4674_p13), %v4695_v38, %v7496_v45 }
 0x70c   : > { %v4250_v1 = vmul.f32 %v4693_v44, %v7483_v29  ;;  %v4251_v8 = vmul.f32 %v4694_v19, %v7486_v11  ;;  %v4253_v7 = vmul.f32 %v4696_v15, %v7501_v12  ;;  %v4255_v5 = vmul.f32 %v4698_v20, %v4128_v16 }
 0x70d   : > { %v4263_v2 = vadd.f32 %v4243_v63, %v4242_v32  ;;  %v4284_v21 = vadd.f32 %v4249_v22, %v4248_v42  ;;  %v4257_v58 = vrot.slane %v4256_v26, 4  ;;  %v4271_v29 = vrot.slane %v4270_v25, 4 }
 0x70e   : > { %v4291_v35 = vadd.f32 %v4251_v8, %v4250_v1  ;;  %v4298_v0 = vadd.f32 %v4253_v7, %v4252_v62  ;;  %v4305_v10 = vadd.f32 %v4255_v5, %v4254_v37  ;;  %v4279_v34 = vadd.f32 %v4278_v56, %v4277_v23 }
 0x70f   : > { %v4264_v28 = vrot.slane %v4263_v2, 4  ;;  %v4285_v11 = vrot.slane %v4284_v21, 4  ;;  %v4258_v45 = vadd.f32 %v4257_v58, %v4256_v26  ;;  %v4272_v31 = vadd.f32 %v4271_v29, %v4270_v25 }
 0x710   : > { %v4292_v54 = vrot.slane %v4291_v35, 4  ;;  %v4299_v12 = vrot.slane %v4298_v0, 4  ;;  %v4306_v52 = vrot.slane %v4305_v10, 4  ;;  %v4280_v60 = vrot.slane %v4279_v34, 2 }
 0x711   : > { %v4265_v6 = vadd.f32 %v4264_v28, %v4263_v2  ;;  %v4286_v55 = vadd.f32 %v4285_v11, %v4284_v21  ;;  %v4259_v49 = vrot.slane %v4258_v45, 2  ;;  %v4273_v41 = vrot.slane %v4272_v31, 2 }
 0x712   : > { %v4293_v16 = vadd.f32 %v4292_v54, %v4291_v35  ;;  %v4300_v53 = vadd.f32 %v4299_v12, %v4298_v0  ;;  %v4307_v46 = vadd.f32 %v4306_v52, %v4305_v10  ;;  %v4281_v51 = vadd.f32 %v4280_v60, %v4279_v34 }
 0x713   : > { %v4266_v40 = vrot.slane %v4265_v6, 2  ;;  %v4287_v48 = vrot.slane %v4286_v55, 2  ;;  %v4260_v24 = vadd.f32 %v4259_v49, %v4258_v45  ;;  %v4274_v3 = vadd.f32 %v4273_v41, %v4272_v31 }
 0x714   : > { %v4294_v59 = vrot.slane %v4293_v16, 2  ;;  %v4301_v18 = vrot.slane %v4300_v53, 2  ;;  %v4308_v39 = vrot.slane %v4307_v46, 2  ;;  %v4282_v19 = vrot.slane %v4281_v51, 1 }
 0x715   : > { %v4267_v14 = vadd.f32 %v4266_v40, %v4265_v6  ;;  %v4288_v57 = vadd.f32 %v4287_v48, %v4286_v55  ;;  %v4261_v4 = vrot.slane %v4260_v24, 1  ;;  %v4275_v44 = vrot.slane %v4274_v3, 1 }
 0x716   : > { %v4295_v27 = vadd.f32 %v4294_v59, %v4293_v16  ;;  %v4302_v61 = vadd.f32 %v4301_v18, %v4300_v53  ;;  %v4309_v9 = vadd.f32 %v4308_v39, %v4307_v46  ;;  %v4283_v32 = vadd.f32 %v4282_v19, %v4281_v51 }
 0x717   : > { %v4268_v43 = vrot.slane %v4267_v14, 1  ;;  %v4289_v38 = vrot.slane %v4288_v57, 1  ;;  %v4262_v50 = vadd.f32 %v4261_v4, %v4260_v24  ;;  %v4276_v33 = vadd.f32 %v4275_v44, %v4274_v3 }
 0x718   : > { %v4296_v15 = vrot.slane %v4295_v27, 1  ;;  %v4303_v30 = vrot.slane %v4302_v61, 1  ;;  %v4310_v63 = vrot.slane %v4309_v9, 1  ;;  %vm4322_vm5 = vcmask 1042434  }
 0x719   : > { %v4269_v20 = vadd.f32 %v4268_v43, %v4267_v14  ;;  %v4290_v47 = vadd.f32 %v4289_v38, %v4288_v57  ;;  %vm4326_vm7 = vcmask 1044484  }
 0x71a   : > { %v4297_v13 = vadd.f32 %v4296_v15, %v4295_v27  ;;  %v4304_v17 = vadd.f32 %v4303_v30, %v4302_v61  ;;  %v4311_v22 = vadd.f32 %v4310_v63, %v4309_v9 }
 0x71b   : > { %v4321_v36 = vsel %vm4320_vm4, %v4269_v20, %v4262_v50 }
 0x71c   : > { %v4323_v42 = vsel %vm4322_vm5, %v4276_v33, %v4321_v36 }
 0x71d   : > { %v4325_v1 = vsel %vm4324_vm6, %v4283_v32, %v4323_v42 }
 0x71e   : > { %v4327_v8 = vsel %vm4326_vm7, %v4290_v47, %v4325_v1 }
 0x71f   : > { %v4329_v62 = vsel %vm4328_vm8, %v4297_v13, %v4327_v8 }
 0x720   : > { %v4331_v7 = vsel %vm4330_vm9, %v4304_v17, %v4329_v62 }
 0x721   : > { %v4333_v37 = vsel %vm4332_vm10, %v4311_v22, %v4331_v7 }
 0x722   : > { %4335 = vst [vmem:[%s6023_s0] sm:$0xff] %v4333_v37 }
 0x723 PF: > { %s7760_s1 = sld [smem:[#allocation27_spill]]  ;;  %s7761_s11 = sld [smem:[#allocation24_spill]] }
 0x724   : > { %s4700_s23 = sshll.u32 %s5573_s20, 7  ;;  %s7762_s13 = sld [smem:[#allocation46_spill]] }
 0x725   : > { %s4350_s26 = sshll.u32 %s6023_s0, 4  ;;  %s5598_s22 = smov [#allocation9]   ;;  %s4351_s26 = int_to_ptr.vmem [resolvable:$true] %s4350_s26 }
 0x726   : > { %s5459_s21 = scalar_lea.vmem %s4351_s26, 128  ;;  %s5463_s17 = sshll.u32 %s5598_s22, 4  ;;  %s5464_s17 = int_to_ptr.vmem [resolvable:$false] %s5463_s17 }
 0x727   : > { %p5460_p2 = scmp.ne.s32.totalorder %s4351_s26, %s5459_s21  ;;  %s5465_s7 = scalar_lea.vmem %s5464_s17, 256 }
 0x728   : > { %p5466_p5 = scmp.lt.s32.totalorder %s4351_s26, %s5464_s17  ;;  %p5467_p3 = scmp.lt.s32.totalorder %s5465_s7, %s5459_s21 }
 0x729   : > { %s4337_s8 = scalar_lea.sflag [#allocation5], %s7760_s1  ;;  %p7763_p11 = scmp.ne.s32.totalorder %s7761_s11, 0 }
 0x72a   : > { %s7575_s30 = scalar_lea.hbm %s7762_s13, %s4700_s23  ;;  %p5468_p1 = por %p5467_p3, %p5466_p5 }
 0x72b   : > { %p5461_p0 = pnand %p5460_p2, %p7763_p11 }
 0x72d   : > { %p5462_p7 = pneg %p5461_p0 }
 0x72f   : > { %p5469_p10 = pnand %p5468_p1, %p5462_p7 }
 0x731   : > { %5472 = shalt.err (!%p5469_p10)
}
 0x732   : > { %s5473_s20 = scalar_lea.hbm %s7575_s30, 128  ;;  %s5477_s14 = scalar_lea.hbm %s7762_s13, 256 }
 0x733   : > { %p5474_p8 = scmp.ne.s32.totalorder %s7575_s30, %s5473_s20  ;;  %p5478_p4 = scmp.lt.u32.totalorder %s7575_s30, %s7762_s13 }
 0x734   : > { %p5479_p12 = scmp.lt.u32.totalorder %s5477_s14, %s5473_s20  ;;  %p5481_p2 = scmp.lt.u32.totalorder %s5473_s20, %s7575_s30 }
 0x735   : > { %p5475_p9 = pnand %p5474_p8, %p7763_p11 }
 0x736   : > { %p5480_p13 = por %p5479_p12, %p5478_p4 }
 0x737   : > { %p5476_p6 = pneg %p5475_p9 }
 0x738   : > { %p5482_p0 = por %p5481_p2, %p5480_p13 }
 0x73a   : > { %p5483_p7 = pnand %p5482_p0, %p5476_p6 }
 0x73c   : > { %5486 = shalt.err (!%p5483_p7)
}
 0x73d   : > { %5032 = dma.vmem_to_hbm [thread:$0]  (%p7763_p11), %s4351_s26, 128, %s7575_s30, %s4337_s8  }
 0x73e PF: > { %s7764_s18 = sld [smem:[#allocation20_spill]]  ;;  %s7765_s19 = sld [smem:[#allocation15_spill]] }
 0x73f   : > { %s7766_s29 = sld [smem:[#allocation25_spill]] }
 0x744   : > { %p5049_p5 = scmp.ge.s32.totalorder %s7764_s18, 2  ;;  %s4362_s5 = sand.u32 1, %s7765_s19  }
 0x745   : > { %p7767_p3 = scmp.ne.s32.totalorder %s7766_s29, 0  ;;  %s4363_s28 = scalar_lea.sflag [#allocation5], %s4362_s5 }
 0x747   : > { %p5045_p1 = pnand %p5049_p5, %p7767_p3 }
 0x749   : > { %5540 = dma.done.wait (!%p5045_p1), %s4363_s28, 128  }
 0x74a   : > { %5542 = vsyncadd (!%p5045_p1), %s4363_s28, 4294967168  ;;  %s37_s2 = sadd.s32 1, %s7764_s18   ;;  %s7768_s27 = sld [smem:[#allocation13_spill]] }
 0x74b   : > { %p34_p10 = scmp.ge.s32.totalorder %s37_s2, 6   ;;  %s7769_s28 = sld [smem:[#allocation14_spill]] }
 0x74c   : > { %s7770_s29 = sld [smem:[#allocation22_spill]]  ;;  %s7771_s30 = sld [smem:[#allocation16_spill]] }
 0x74d   : > { %s7772_s0 = sld [smem:[#allocation17_spill]]  ;;  %s7773_s19 = sld [smem:[#allocation26_spill]] }
 0x74e   : > { %s7774_s1 = sld [smem:[#allocation18_spill]]  ;;  %s7775_s20 = sld [smem:[#allocation19_spill]] }
 0x74f   : > { %s7776_s21 = sld [smem:[#allocation21_spill]]  ;;  %s7777_s22 = sld [smem:[#allocation23_spill]] }
 0x750   :  { %36 = sbr.rel (!%p34_p10) target bundleno = 31 (0x1f), region = 196 }
 0x757   :  { %4368 = vsyncpa [#allocation4], 1 }
 0x758   :  { %4370 = vsyncpa [#allocation4 + $0x1], 1 }
 0x759   :  { %4371 = vsyncpa [#allocation7], 1 }
 0x75a   :  { %4373 = vsyncpa [#allocation7 + $0x1], 1 }
 0x75b   :  { %4374 = vsyncpa [#allocation5], 1 }
 0x75c   :  { %4376 = vsyncpa [#allocation5 + $0x1], 1 }

</bundles_post_ra>
